<compile_context>
chip_gen: v7x
topology: tpu7x:2x2x1
jax: 0.10.0
libtpu: 0.0.40
codegen_flags: <defaults>
</compile_context>

<pallas_src>
import functools

import jax
import jax.numpy as jnp
from jax import lax
from jax.experimental import pallas as pl
from jax.experimental.pallas import tpu as pltpu

C_IN = 3       # network input channels
C_MID = 16     # hidden channels
C_OUT = 64     # 1x1-conv output channels
POOL = 4       # MaxPool(4, 4)
K_TAPS = 9     # 3x3 taps
_COL0 = 8      # sublane offset of the activation interior inside the padded
               # scratch (multiple of 8 -> all in-kernel stores are aligned)

# f32 keeps exact parity with the f32 reference (1e-4).  On v6e/v7x,
# jnp.bfloat16 here runs the MXU natively and halves operand traffic
# (accumulation stays f32) at ~1e-2 accuracy.
MATMUL_DTYPE = jnp.float32


# ------------------------------ fused kernel --------------------------------

def _fused_kernel(x_ref, wconv_ref, w1x1_ref, o_ref, xpad_ref,
                  *, H, W, n_layers):
    """Whole network for one batch block (grid is over batch blocks).

    x_ref:     (B, H, W, 3)             input block, NHWC
    wconv_ref: (n_layers, 144, 16)      im2col-flattened 3x3 weights
                                        (row = dy*48 + dx*16 + ci)
    w1x1_ref:  (16, 64)                 1x1 conv weights
    o_ref:     (B, Ho*Wo, 64)           output block (row = oh*Wo + ow)
    xpad_ref:  VMEM (B, H+2, W+16, 16)  zero-padded activation, reused per layer
    """
    B = x_ref.shape[0]
    Ho, Wo = H // POOL, W // POOL
    W_pad = xpad_ref.shape[2]

    # ---- padding prologue (every store lands on an aligned sublane offset) --
    # Re-done every grid step: scratch is stale across steps (possibly NaN bit
    # patterns on the very first step), and a program_id==0-only init is
    # megacore-unsafe.  Only the border cells the taps read are zeroed.
    zrow = jnp.zeros((B, 1, W_pad, C_MID), jnp.float32)
    xpad_ref[:, 0:1, :, :] = zrow                       # top border row
    xpad_ref[:, H + 1:H + 2, :, :] = zrow               # bottom border row
    zcol = jnp.zeros((B, H + 2, _COL0, C_MID), jnp.float32)
    xpad_ref[:, :, 0:_COL0, :] = zcol                   # left border columns
    xpad_ref[:, :, _COL0 + W:W_pad, :] = zcol           # right border columns

    # Single aligned interior store: x in channels 0:3, explicit zeros in 3:16.
    x_in = x_ref[...].astype(jnp.float32)
    zch = jnp.zeros((B, H, W, C_MID - C_IN), jnp.float32)
    xpad_ref[:, 1:H + 1, _COL0:_COL0 + W, :] = jnp.concatenate([x_in, zch], -1)

    act = None
    for layer in range(n_layers):                        # static unroll
        # dx (W) shift hoisted out of the dy loop: 3 column slabs, only 2 of
        # which are sublane-unaligned reads (offsets 7 / 9); dy is a free
        # leading-dim slice of these values.
        cols = [xpad_ref[:, :, _COL0 - 1 + dx:_COL0 - 1 + dx + W, :]
                for dx in range(3)]                      # each (B, H+2, W, 16)
        wide = jnp.concatenate(cols, axis=-1)            # (B, H+2, W, 48)
        # im2col panel, K = 9*16 = 144, lane order dy*48 + dx*16 + ci.
        panel = jnp.concatenate([wide[:, dy:dy + H] for dy in range(3)],
                                axis=-1)                 # (B, H, W, 144)
        panel2 = panel.reshape(B * H * W, K_TAPS * C_MID)
        w_l = wconv_ref[layer]                           # (144, 16)
        if MATMUL_DTYPE != jnp.float32:
            panel2 = panel2.astype(MATMUL_DTYPE)
            w_l = w_l.astype(MATMUL_DTYPE)
        act = lax.dot_general(                           # single MXU matmul
            panel2, w_l,
            dimension_numbers=(((1,), (0,)), ((), ())),
            preferred_element_type=jnp.float32)          # (B*H*W, 16) f32

        if layer + 1 < n_layers:
            # Hoisted ReLU fused into the aligned re-pad store; the border is
            # never rewritten so it stays exactly zero (relu(0) == 0).
            xpad_ref[:, 1:H + 1, _COL0:_COL0 + W, :] = (
                jnp.maximum(act, 0.0).reshape(B, H, W, C_MID))

    # ---- MaxPool(4, 4), scratch-free ----------------------------------------
    act4 = act.reshape(B, H, W, C_MID)
    t = act4.reshape(B, Ho, POOL, W, C_MID).max(axis=2)      # H dir (free dim)
    p = t.reshape(B, Ho, Wo, POOL, C_MID).max(axis=3)        # W dir (sublanes)
    pooled = p.reshape(B * Ho * Wo, C_MID)                   # (B*Ho*Wo, 16)

    # ---- 1x1 conv (no bias), stored as one lane-denser block ----------------
    w1 = w1x1_ref[...]
    if MATMUL_DTYPE != jnp.float32:
        pooled = pooled.astype(MATMUL_DTYPE)
        w1 = w1.astype(MATMUL_DTYPE)
    out = lax.dot_general(pooled, w1,
                          dimension_numbers=(((1,), (0,)), ((), ())),
                          preferred_element_type=jnp.float32)  # (B*Ho*Wo, 64)
    o_ref[...] = out.reshape(B, Ho * Wo, C_OUT)


# ------------------------------ wrappers -------------------------------------

def prepare_params(params, n_conv):
    """One-time conversion of OIHW params to the kernel-consumed layout."""
    w0 = jnp.transpose(params["conv0_oihw"], (2, 3, 1, 0))            # (3,3,3,16)
    w0 = jnp.pad(w0, ((0, 0), (0, 0), (0, C_MID - C_IN), (0, 0)))     # Cin 3->16
    ws = [w0]
    for i in range(n_conv):
        ws.append(jnp.transpose(params[f"conv{i + 1}_oihw"], (2, 3, 1, 0)))
    wconv = jnp.stack(ws, 0).reshape(n_conv + 1, K_TAPS * C_MID, C_MID)
    return {
        "wconv": wconv.astype(jnp.float32),                # (n_layers, 144, 16)
        "w1x1": params["conv1x1_oihw"][:, :, 0, 0].T.astype(jnp.float32),
    }


def _pick_batch_block(n):
    # Fold batch into the matmul M dimension while keeping grid length >= 2
    # so both v7x TensorCores get work (harmless serial loop on v5e/v6e).
    if n >= 4 and n % 2 == 0:
        return n // 2
    return 1


@functools.partial(jax.jit, static_argnames=("n_conv",))
def task_forward(x_nchw, prepped, n_conv):
    n_layers = n_conv + 1
    x = jnp.transpose(x_nchw, (0, 2, 3, 1))       # NCHW -> NHWC (outside kernel)
    N, H, W, _ = x.shape
    assert H % POOL == 0 and W % POOL == 0
    Ho, Wo = H // POOL, W // POOL
    B_blk = _pick_batch_block(N)

    kernel = functools.partial(_fused_kernel, H=H, W=W, n_layers=n_layers)
    out_flat = pl.pallas_call(
        kernel,
        out_shape=jax.ShapeDtypeStruct((N, Ho * Wo, C_OUT), jnp.float32),
        grid_spec=pltpu.PrefetchScalarGridSpec(
            num_scalar_prefetch=0,
            grid=(N // B_blk,),
            in_specs=[
                pl.BlockSpec((B_blk, H, W, C_IN), lambda b: (b, 0, 0, 0)),
                pl.BlockSpec((n_layers, K_TAPS * C_MID, C_MID),
                             lambda b: (0, 0, 0)),
                pl.BlockSpec((C_MID, C_OUT), lambda b: (0, 0)),
            ],
            out_specs=pl.BlockSpec((B_blk, Ho * Wo, C_OUT),
                                   lambda b: (b, 0, 0)),
            scratch_shapes=[
                pltpu.VMEM((B_blk, H + 2, W + 2 * _COL0, C_MID), jnp.float32),
            ],
        ),
        compiler_params=pltpu.CompilerParams(
            dimension_semantics=("parallel",)),
    )(x, prepped["wconv"], prepped["w1x1"])
    # (N, oh*Wo + ow, c) -> (N, C, Ho, Wo), NCHW like the PyTorch module.
    return jnp.transpose(out_flat.reshape(N, Ho, Wo, C_OUT), (0, 3, 1, 2))


# --------------------------- parameter init / ref ----------------------------

def _kaiming_normal(key, shape_oihw):
    # kaiming_normal_(mode='fan_in', nonlinearity='relu'): std = sqrt(2/fan_in)
    _, cin, kh, kw = shape_oihw
    fan_in = cin * kh * kw
    return jax.random.normal(key, shape_oihw, jnp.float32) * jnp.sqrt(2.0 / fan_in)


def init_params(key, n_conv):
    keys = jax.random.split(key, n_conv + 2)
    params = {"conv0_oihw": _kaiming_normal(keys[0], (16, 3, 3, 3))}
    for i in range(n_conv):
        params[f"conv{i + 1}_oihw"] = _kaiming_normal(keys[i + 1], (16, 16, 3, 3))
    params["conv1x1_oihw"] = _kaiming_normal(keys[n_conv + 1], (64, 16, 1, 1))
    return params


def ref_forward(x_nchw, params, n_conv):
    dn = ("NCHW", "OIHW", "NCHW")
    out = lax.conv_general_dilated(x_nchw, params["conv0_oihw"], (1, 1),
                                   ((1, 1), (1, 1)), dimension_numbers=dn)
    for i in range(n_conv):
        out = jnp.maximum(out, 0.0)
        out = lax.conv_general_dilated(out, params[f"conv{i + 1}_oihw"], (1, 1),
                                       ((1, 1), (1, 1)), dimension_numbers=dn)
    out = lax.reduce_window(out, -jnp.inf, lax.max,
                            (1, 1, POOL, POOL), (1, 1, POOL, POOL), "VALID")
    out = lax.conv_general_dilated(out, params["conv1x1_oihw"], (1, 1),
                                   ((0, 0), (0, 0)), dimension_numbers=dn)
    return out


# ----------------------------------- main ------------------------------------

if __name__ == "__main__":
    for n_conv in (2, 0):
        key = jax.random.PRNGKey(0)
        k_params, k_x = jax.random.split(key)
        params = init_params(k_params, n_conv)
        prepped = prepare_params(params, n_conv)
        x = jax.random.normal(k_x, (2, 3, 16, 16), jnp.float32)  # NCHW

        out = jax.block_until_ready(task_forward(x, prepped, n_conv))
        assert out.shape == (2, C_OUT, 4, 4), out.shape

        ref = jax.block_until_ready(ref_forward(x, params, n_conv))
        err = float(jnp.max(jnp.abs(out - ref)))
        assert jnp.allclose(out, ref, rtol=1e-4, atol=1e-4), err

    print("KERNEL_OK")
</pallas_src>

<mosaic_0001>
module attributes {stable_mosaic.version = 11 : i64} {
  func.func @_fused_kernel(%arg0: i32, %arg1: memref<1x16x16x3xf32, #tpu.memory_space<vmem>>, %arg2: memref<3x144x16xf32, #tpu.memory_space<vmem>>, %arg3: memref<16x64xf32, #tpu.memory_space<vmem>>, %arg4: memref<1x16x64xf32, #tpu.memory_space<vmem>>, %arg5: memref<1x18x32x16xf32, #tpu.memory_space<vmem>>) attributes {dimension_semantics = [#tpu.dimension_semantics<parallel>], iteration_bounds = array<i64: 2>, scalar_prefetch = 0 : i64, scratch_operands = 1 : i64, tpu.core_type = #tpu.core_type<tc>, window_params = [{transform_indices = @transform_0, window_bounds = array<i64: 1, 16, 16, 3>}, {pipeline_mode = #tpu.pipeline_mode<synchronous>, transform_indices = @transform_1, window_bounds = array<i64: 3, 144, 16>}, {pipeline_mode = #tpu.pipeline_mode<synchronous>, transform_indices = @transform_2, window_bounds = array<i64: 16, 64>}, {transform_indices = @transform_3, window_bounds = array<i64: 1, 16, 64>}]} {
    %cst = arith.constant 0.000000e+00 : f32
    %0 = vector.broadcast %cst : f32 to vector<1x1x32x16xf32>
    %c0 = arith.constant 0 : index
    %c0_0 = arith.constant 0 : index
    %c0_1 = arith.constant 0 : index
    %c0_2 = arith.constant 0 : index
    %1 = vector.load %arg5[%c0, %c0_0, %c0_1, %c0_2] : memref<1x18x32x16xf32, #tpu.memory_space<vmem>>, vector<1x1x32x16xf32>
    tpu.vector_store %arg5[%c0, %c0_0, %c0_1, %c0_2], %0 {strides = array<i32>} : memref<1x18x32x16xf32, #tpu.memory_space<vmem>>, vector<1x1x32x16xf32>,
    %c0_3 = arith.constant 0 : index
    %c17 = arith.constant 17 : index
    %c0_4 = arith.constant 0 : index
    %c0_5 = arith.constant 0 : index
    %2 = vector.load %arg5[%c0_3, %c17, %c0_4, %c0_5] : memref<1x18x32x16xf32, #tpu.memory_space<vmem>>, vector<1x1x32x16xf32>
    tpu.vector_store %arg5[%c0_3, %c17, %c0_4, %c0_5], %0 {strides = array<i32>} : memref<1x18x32x16xf32, #tpu.memory_space<vmem>>, vector<1x1x32x16xf32>,
    %cst_6 = arith.constant 0.000000e+00 : f32
    %3 = vector.broadcast %cst_6 : f32 to vector<1x18x8x16xf32>
    %c0_7 = arith.constant 0 : index
    %c0_8 = arith.constant 0 : index
    %c0_9 = arith.constant 0 : index
    %c0_10 = arith.constant 0 : index
    %4 = vector.load %arg5[%c0_7, %c0_8, %c0_9, %c0_10] : memref<1x18x32x16xf32, #tpu.memory_space<vmem>>, vector<1x18x8x16xf32>
    tpu.vector_store %arg5[%c0_7, %c0_8, %c0_9, %c0_10], %3 {strides = array<i32>} : memref<1x18x32x16xf32, #tpu.memory_space<vmem>>, vector<1x18x8x16xf32>,
    %c0_11 = arith.constant 0 : index
    %c0_12 = arith.constant 0 : index
    %c24 = arith.constant 24 : index
    %c0_13 = arith.constant 0 : index
    %5 = vector.load %arg5[%c0_11, %c0_12, %c24, %c0_13] : memref<1x18x32x16xf32, #tpu.memory_space<vmem>>, vector<1x18x8x16xf32>
    tpu.vector_store %arg5[%c0_11, %c0_12, %c24, %c0_13], %3 {strides = array<i32>} : memref<1x18x32x16xf32, #tpu.memory_space<vmem>>, vector<1x18x8x16xf32>,
    %c0_14 = arith.constant 0 : index
    %c0_15 = arith.constant 0 : index
    %c0_16 = arith.constant 0 : index
    %c0_17 = arith.constant 0 : index
    %6 = vector.load %arg1[%c0_14, %c0_15, %c0_16, %c0_17] : memref<1x16x16x3xf32, #tpu.memory_space<vmem>>, vector<1x16x16x3xf32>
    %cst_18 = arith.constant 0.000000e+00 : f32
    %7 = vector.broadcast %cst_18 : f32 to vector<1x16x16x13xf32>
    %8 = tpu.concatenate %6, %7 in 3 : vector<1x16x16x3xf32>, vector<1x16x16x13xf32> -> vector<1x16x16x16xf32>
    %c0_19 = arith.constant 0 : index
    %c1 = arith.constant 1 : index
    %c8 = arith.constant 8 : index
    %c0_20 = arith.constant 0 : index
    %9 = vector.load %arg5[%c0_19, %c1, %c8, %c0_20] : memref<1x18x32x16xf32, #tpu.memory_space<vmem>>, vector<1x16x16x16xf32>
    tpu.vector_store %arg5[%c0_19, %c1, %c8, %c0_20], %8 {strides = array<i32>} : memref<1x18x32x16xf32, #tpu.memory_space<vmem>>, vector<1x16x16x16xf32>,
    %c0_21 = arith.constant 0 : index
    %c0_22 = arith.constant 0 : index
    %c7 = arith.constant 7 : index
    %c0_23 = arith.constant 0 : index
    %10 = vector.load %arg5[%c0_21, %c0_22, %c7, %c0_23] : memref<1x18x32x16xf32, #tpu.memory_space<vmem>>, vector<1x18x16x16xf32>
    %c0_24 = arith.constant 0 : index
    %c0_25 = arith.constant 0 : index
    %c8_26 = arith.constant 8 : index
    %c0_27 = arith.constant 0 : index
    %11 = vector.load %arg5[%c0_24, %c0_25, %c8_26, %c0_27] : memref<1x18x32x16xf32, #tpu.memory_space<vmem>>, vector<1x18x16x16xf32>
    %c0_28 = arith.constant 0 : index
    %c0_29 = arith.constant 0 : index
    %c9 = arith.constant 9 : index
    %c0_30 = arith.constant 0 : index
    %12 = vector.load %arg5[%c0_28, %c0_29, %c9, %c0_30] : memref<1x18x32x16xf32, #tpu.memory_space<vmem>>, vector<1x18x16x16xf32>
    %13 = tpu.concatenate %10, %11, %12 in 3 : vector<1x18x16x16xf32>, vector<1x18x16x16xf32>, vector<1x18x16x16xf32> -> vector<1x18x16x48xf32>
    %14 = vector.extract_strided_slice %13 {offsets = [0, 0, 0, 0], sizes = [1, 16, 16, 48], strides = [1, 1, 1, 1]} : vector<1x18x16x48xf32> to vector<1x16x16x48xf32>
    %15 = vector.extract_strided_slice %13 {offsets = [0, 1, 0, 0], sizes = [1, 16, 16, 48], strides = [1, 1, 1, 1]} : vector<1x18x16x48xf32> to vector<1x16x16x48xf32>
    %16 = vector.extract_strided_slice %13 {offsets = [0, 2, 0, 0], sizes = [1, 16, 16, 48], strides = [1, 1, 1, 1]} : vector<1x18x16x48xf32> to vector<1x16x16x48xf32>
    %17 = tpu.concatenate %14, %15, %16 in 3 : vector<1x16x16x48xf32>, vector<1x16x16x48xf32>, vector<1x16x16x48xf32> -> vector<1x16x16x144xf32>
    %18 = vector.shape_cast %17 : vector<1x16x16x144xf32> to vector<256x144xf32>
    %c0_31 = arith.constant 0 : index
    %c0_32 = arith.constant 0 : index
    %c0_33 = arith.constant 0 : index
    %19 = vector.load %arg2[%c0_31, %c0_32, %c0_33] : memref<3x144x16xf32, #tpu.memory_space<vmem>>, vector<1x144x16xf32>
    %20 = vector.shape_cast %19 : vector<1x144x16xf32> to vector<144x16xf32>
    %cst_34 = arith.constant dense<0.000000e+00> : vector<256x16xf32>
    %21 = tpu.matmul %18, %20, %cst_34 {dimension_numbers = #tpu.dot_dimension_numbers<[1], [0], [0], [1], [0, 0, 1, 1], [], []>} : vector<256x144xf32>, vector<144x16xf32>, vector<256x16xf32> -> vector<256x16xf32>
    %cst_35 = arith.constant 0.000000e+00 : f32
    %22 = vector.broadcast %cst_35 : f32 to vector<256x16xf32>
    %23 = arith.maximumf %21, %22 : vector<256x16xf32>
    %24 = vector.shape_cast %23 : vector<256x16xf32> to vector<1x16x16x16xf32>
    %c0_36 = arith.constant 0 : index
    %c1_37 = arith.constant 1 : index
    %c8_38 = arith.constant 8 : index
    %c0_39 = arith.constant 0 : index
    %25 = vector.load %arg5[%c0_36, %c1_37, %c8_38, %c0_39] : memref<1x18x32x16xf32, #tpu.memory_space<vmem>>, vector<1x16x16x16xf32>
    tpu.vector_store %arg5[%c0_36, %c1_37, %c8_38, %c0_39], %24 {strides = array<i32>} : memref<1x18x32x16xf32, #tpu.memory_space<vmem>>, vector<1x16x16x16xf32>,
    %c0_40 = arith.constant 0 : index
    %c0_41 = arith.constant 0 : index
    %c7_42 = arith.constant 7 : index
    %c0_43 = arith.constant 0 : index
    %26 = vector.load %arg5[%c0_40, %c0_41, %c7_42, %c0_43] : memref<1x18x32x16xf32, #tpu.memory_space<vmem>>, vector<1x18x16x16xf32>
    %c0_44 = arith.constant 0 : index
    %c0_45 = arith.constant 0 : index
    %c8_46 = arith.constant 8 : index
    %c0_47 = arith.constant 0 : index
    %27 = vector.load %arg5[%c0_44, %c0_45, %c8_46, %c0_47] : memref<1x18x32x16xf32, #tpu.memory_space<vmem>>, vector<1x18x16x16xf32>
    %c0_48 = arith.constant 0 : index
    %c0_49 = arith.constant 0 : index
    %c9_50 = arith.constant 9 : index
    %c0_51 = arith.constant 0 : index
    %28 = vector.load %arg5[%c0_48, %c0_49, %c9_50, %c0_51] : memref<1x18x32x16xf32, #tpu.memory_space<vmem>>, vector<1x18x16x16xf32>
    %29 = tpu.concatenate %26, %27, %28 in 3 : vector<1x18x16x16xf32>, vector<1x18x16x16xf32>, vector<1x18x16x16xf32> -> vector<1x18x16x48xf32>
    %30 = vector.extract_strided_slice %29 {offsets = [0, 0, 0, 0], sizes = [1, 16, 16, 48], strides = [1, 1, 1, 1]} : vector<1x18x16x48xf32> to vector<1x16x16x48xf32>
    %31 = vector.extract_strided_slice %29 {offsets = [0, 1, 0, 0], sizes = [1, 16, 16, 48], strides = [1, 1, 1, 1]} : vector<1x18x16x48xf32> to vector<1x16x16x48xf32>
    %32 = vector.extract_strided_slice %29 {offsets = [0, 2, 0, 0], sizes = [1, 16, 16, 48], strides = [1, 1, 1, 1]} : vector<1x18x16x48xf32> to vector<1x16x16x48xf32>
    %33 = tpu.concatenate %30, %31, %32 in 3 : vector<1x16x16x48xf32>, vector<1x16x16x48xf32>, vector<1x16x16x48xf32> -> vector<1x16x16x144xf32>
    %34 = vector.shape_cast %33 : vector<1x16x16x144xf32> to vector<256x144xf32>
    %c1_52 = arith.constant 1 : index
    %c0_53 = arith.constant 0 : index
    %c0_54 = arith.constant 0 : index
    %35 = vector.load %arg2[%c1_52, %c0_53, %c0_54] : memref<3x144x16xf32, #tpu.memory_space<vmem>>, vector<1x144x16xf32>
    %36 = vector.shape_cast %35 : vector<1x144x16xf32> to vector<144x16xf32>
    %cst_55 = arith.constant dense<0.000000e+00> : vector<256x16xf32>
    %37 = tpu.matmul %34, %36, %cst_55 {dimension_numbers = #tpu.dot_dimension_numbers<[1], [0], [0], [1], [0, 0, 1, 1], [], []>} : vector<256x144xf32>, vector<144x16xf32>, vector<256x16xf32> -> vector<256x16xf32>
    %cst_56 = arith.constant 0.000000e+00 : f32
    %38 = vector.broadcast %cst_56 : f32 to vector<256x16xf32>
    %39 = arith.maximumf %37, %38 : vector<256x16xf32>
    %40 = vector.shape_cast %39 : vector<256x16xf32> to vector<1x16x16x16xf32>
    %c0_57 = arith.constant 0 : index
    %c1_58 = arith.constant 1 : index
    %c8_59 = arith.constant 8 : index
    %c0_60 = arith.constant 0 : index
    %41 = vector.load %arg5[%c0_57, %c1_58, %c8_59, %c0_60] : memref<1x18x32x16xf32, #tpu.memory_space<vmem>>, vector<1x16x16x16xf32>
    tpu.vector_store %arg5[%c0_57, %c1_58, %c8_59, %c0_60], %40 {strides = array<i32>} : memref<1x18x32x16xf32, #tpu.memory_space<vmem>>, vector<1x16x16x16xf32>,
    %c0_61 = arith.constant 0 : index
    %c0_62 = arith.constant 0 : index
    %c7_63 = arith.constant 7 : index
    %c0_64 = arith.constant 0 : index
    %42 = vector.load %arg5[%c0_61, %c0_62, %c7_63, %c0_64] : memref<1x18x32x16xf32, #tpu.memory_space<vmem>>, vector<1x18x16x16xf32>
    %c0_65 = arith.constant 0 : index
    %c0_66 = arith.constant 0 : index
    %c8_67 = arith.constant 8 : index
    %c0_68 = arith.constant 0 : index
    %43 = vector.load %arg5[%c0_65, %c0_66, %c8_67, %c0_68] : memref<1x18x32x16xf32, #tpu.memory_space<vmem>>, vector<1x18x16x16xf32>
    %c0_69 = arith.constant 0 : index
    %c0_70 = arith.constant 0 : index
    %c9_71 = arith.constant 9 : index
    %c0_72 = arith.constant 0 : index
    %44 = vector.load %arg5[%c0_69, %c0_70, %c9_71, %c0_72] : memref<1x18x32x16xf32, #tpu.memory_space<vmem>>, vector<1x18x16x16xf32>
    %45 = tpu.concatenate %42, %43, %44 in 3 : vector<1x18x16x16xf32>, vector<1x18x16x16xf32>, vector<1x18x16x16xf32> -> vector<1x18x16x48xf32>
    %46 = vector.extract_strided_slice %45 {offsets = [0, 0, 0, 0], sizes = [1, 16, 16, 48], strides = [1, 1, 1, 1]} : vector<1x18x16x48xf32> to vector<1x16x16x48xf32>
    %47 = vector.extract_strided_slice %45 {offsets = [0, 1, 0, 0], sizes = [1, 16, 16, 48], strides = [1, 1, 1, 1]} : vector<1x18x16x48xf32> to vector<1x16x16x48xf32>
    %48 = vector.extract_strided_slice %45 {offsets = [0, 2, 0, 0], sizes = [1, 16, 16, 48], strides = [1, 1, 1, 1]} : vector<1x18x16x48xf32> to vector<1x16x16x48xf32>
    %49 = tpu.concatenate %46, %47, %48 in 3 : vector<1x16x16x48xf32>, vector<1x16x16x48xf32>, vector<1x16x16x48xf32> -> vector<1x16x16x144xf32>
    %50 = vector.shape_cast %49 : vector<1x16x16x144xf32> to vector<256x144xf32>
    %c2 = arith.constant 2 : index
    %c0_73 = arith.constant 0 : index
    %c0_74 = arith.constant 0 : index
    %51 = vector.load %arg2[%c2, %c0_73, %c0_74] : memref<3x144x16xf32, #tpu.memory_space<vmem>>, vector<1x144x16xf32>
    %52 = vector.shape_cast %51 : vector<1x144x16xf32> to vector<144x16xf32>
    %cst_75 = arith.constant dense<0.000000e+00> : vector<256x16xf32>
    %53 = tpu.matmul %50, %52, %cst_75 {dimension_numbers = #tpu.dot_dimension_numbers<[1], [0], [0], [1], [0, 0, 1, 1], [], []>} : vector<256x144xf32>, vector<144x16xf32>, vector<256x16xf32> -> vector<256x16xf32>
    %54 = vector.shape_cast %53 : vector<256x16xf32> to vector<1x16x16x16xf32>
    %55 = vector.shape_cast %54 : vector<1x16x16x16xf32> to vector<1x4x4x16x16xf32>
    %cst_76 = arith.constant dense<0xFF800000> : vector<1x4x16x16xf32>
    %56 = vector.multi_reduction <maximumf>, %55, %cst_76 [2] : vector<1x4x4x16x16xf32> to vector<1x4x16x16xf32>
    %57 = vector.shape_cast %56 : vector<1x4x16x16xf32> to vector<1x4x4x4x16xf32>
    %cst_77 = arith.constant dense<0xFF800000> : vector<1x4x4x16xf32>
    %58 = vector.multi_reduction <maximumf>, %57, %cst_77 [3] : vector<1x4x4x4x16xf32> to vector<1x4x4x16xf32>
    %59 = vector.shape_cast %58 : vector<1x4x4x16xf32> to vector<16x16xf32>
    %c0_78 = arith.constant 0 : index
    %c0_79 = arith.constant 0 : index
    %60 = vector.load %arg3[%c0_78, %c0_79] : memref<16x64xf32, #tpu.memory_space<vmem>>, vector<16x64xf32>
    %cst_80 = arith.constant dense<0.000000e+00> : vector<16x64xf32>
    %61 = tpu.matmul %59, %60, %cst_80 {dimension_numbers = #tpu.dot_dimension_numbers<[1], [0], [0], [1], [0, 0, 1, 1], [], []>} : vector<16x16xf32>, vector<16x64xf32>, vector<16x64xf32> -> vector<16x64xf32>
    %62 = vector.shape_cast %61 : vector<16x64xf32> to vector<1x16x64xf32>
    %c0_81 = arith.constant 0 : index
    %c0_82 = arith.constant 0 : index
    %c0_83 = arith.constant 0 : index
    %63 = vector.load %arg4[%c0_81, %c0_82, %c0_83] : memref<1x16x64xf32, #tpu.memory_space<vmem>>, vector<1x16x64xf32>
    tpu.vector_store %arg4[%c0_81, %c0_82, %c0_83], %62 {strides = array<i32>} : memref<1x16x64xf32, #tpu.memory_space<vmem>>, vector<1x16x64xf32>,
    return
  }
  func.func @transform_0(%arg0: i32) -> (i32, i32, i32, i32) {
    %c0_i32 = arith.constant 0 : i32
    %c0_i32_0 = arith.constant 0 : i32
    %c0_i32_1 = arith.constant 0 : i32
    %c0_i32_2 = arith.constant 0 : i32
    return %arg0, %c0_i32, %c0_i32_0, %c0_i32_1 : i32, i32, i32, i32
  }
  func.func @transform_1(%arg0: i32) -> (i32, i32, i32) {
    %c0_i32 = arith.constant 0 : i32
    %c0_i32_0 = arith.constant 0 : i32
    %c0_i32_1 = arith.constant 0 : i32
    %c0_i32_2 = arith.constant 0 : i32
    return %c0_i32, %c0_i32_0, %c0_i32_1 : i32, i32, i32
  }
  func.func @transform_2(%arg0: i32) -> (i32, i32) {
    %c0_i32 = arith.constant 0 : i32
    %c0_i32_0 = arith.constant 0 : i32
    %c0_i32_1 = arith.constant 0 : i32
    return %c0_i32, %c0_i32_0 : i32, i32
  }
  func.func @transform_3(%arg0: i32) -> (i32, i32, i32) {
    %c0_i32 = arith.constant 0 : i32
    %c0_i32_0 = arith.constant 0 : i32
    %c0_i32_1 = arith.constant 0 : i32
    return %arg0, %c0_i32, %c0_i32_0 : i32, i32, i32
  }
}

</mosaic_0001>

<bundles_post_ra>
// kernel: task_forward.1
= control target key start
LH: loop header
LB: loop body
LE: loop exit
PB: predicated region body
PF: predicated region fallthrough
CT: control target
= control target key end

     0   :  { %8 = vsyncpa [#allocation4], 0  ;;  %s6694_s0 = inlined_call_operand.vmem [shape: f32[2,16,16,3], index: 0, kind: input, shape index: {}]   ;;  %s6695_s1 = inlined_call_operand.vmem [shape: f32[3,144,16], index: 1, kind: input, shape index: {}]   ;;  %s6696_s2 = inlined_call_operand.vmem [shape: f32[16,64], index: 2, kind: input, shape index: {}]   ;;  %s6697_s3 = inlined_call_operand.hbm [shape: f32[2,16,64], index: 3, kind: output, shape index: {}]  }
   0x1   :  { %10 = vsyncpa [#allocation4 + $0x1], 0  ;;  %s4618_s12 = smov 0   ;;  %s4620_s13 = smov 0  }
   0x2   :  { %s4622_s14 = smov 0   ;;  %s4624_s15 = smov 0  }
   0x3 LB: > { %s4639_s16 = sadd.s32 4294967295, %s4587_s15   ;;  %s4031_s17 = sadd.s32 4294967294, %s4587_s15   ;;  %s4587_s15 = sphi %s4624_s15, %s6703_s15   ;;  %s4583_s14 = sphi %s4622_s14, %s6702_s14   ;;  %s4579_s13 = sphi %s4620_s13, %s6701_s13   ;;  %s4575_s12 = sphi %s4618_s12, %s6700_s12  }
   0x4   : > { %s4643_s18 = sadd.s32 1, %s4587_s15   ;;  %s91_s19 = sadd.s32 1, %s4583_s14 }
   0x5   : > { %s88_s20 = ssub.s32 %s4587_s15, %s4643_s18  ;;  %p101_p0 = scmp.ne.s32.totalorder %s4583_s14, %s4579_s13 }
   0x6   : > { %p89_p1 = scmp.eq.s32.totalorder %s88_s20, 0  ;;  %p102_p2 = scmp.eq.s32.totalorder %s4639_s16, 1 }
   0x7   : > { %p107_p3 = scmp.ne.s32.totalorder %s4579_s13, %s4575_s12  ;;  %p108_p4 = scmp.eq.s32.totalorder %s4031_s17, 1 }
   0x8   : > { %s4654_s21 = scalar_select %p89_p1, %s4583_s14, %s91_s19  }
   0x9   : > { %p4656_p5 = por %p102_p2, %p101_p0  ;;  %p4660_p6 = por %p108_p4, %p107_p3 }
   0xa   : > { %p4034_p7 = scmp.ge.s32.totalorder %s4587_s15, 1  ;;  %p140_p8 = scmp.lt.s32.totalorder %s4587_s15, 3 }
   0xc   : > { %p141_p9 = pnand %p4034_p7, %p140_p8 }
   0xd   : > { %p164_p10 = scmp.lt.s32.totalorder (!%p141_p9), %s4639_s16, 1  ;;  %vm169_vm0 = vcmask (!%p141_p9), 130048   ;;  %v4589_v0 = vmov (!%p141_p9), 0.0   ;;  %vm247_vm1 = vcmask (!%p141_p9), 23552   ;;  %s4590_s29 = smov (!%p141_p9), 16   ;;  %vm745_vm2 = vcmask (!%p141_p9), 261120  }
   0xe   : > { %144 = sbr.rel (%p141_p9) target bundleno = 2055 (0x807), region = 32  ;;  %198 = vst.msk [vmem:[#allocation2 + $0x38] sm:$0xff] (!%p141_p9), %vm169_vm0, %v4589_v0  ;;  %170 = vst.msk [vmem:[#allocation2] sm:$0xff] (!%p141_p9), %vm169_vm0, %v4589_v0  ;;  %s4591_s30 = smov (!%p141_p9), 32   ;;  %vm1008_vm3 = vcmask (!%p141_p9), 392192   ;;  %vm1041_vm4 = vcmask (!%p141_p9), 785408  }
   0xf   : > { %171 = vst.msk [vmem:[#allocation2 + $0x8] sm:$0xff] (!%p141_p9), %vm169_vm0, %v4589_v0  ;;  %172 = vst.msk [vmem:[#allocation2 + $0x10] sm:$0xff] (!%p141_p9), %vm169_vm0, %v4589_v0  ;;  %s4593_s8 = smov (!%p141_p9), 48   ;;  %s4594_s9 = smov (!%p141_p9), 96   ;;  %vm3721_vm5 = vcmask (!%p141_p9), 125952   ;;  %vm3852_vm6 = vcmask (!%p141_p9), 1041409  }
  0x10   : > { %173 = vst.msk [vmem:[#allocation2 + $0x18] sm:$0xff] (!%p141_p9), %vm169_vm0, %v4589_v0  ;;  %175 = vst.msk [vmem:[#allocation2 + $0x220] sm:$0xff] (!%p141_p9), %vm169_vm0, %v4589_v0  ;;  %vm3854_vm7 = vcmask (!%p141_p9), 1042434   ;;  %vm3856_vm8 = vcmask (!%p141_p9), 1043459   ;;  %vm3858_vm9 = vcmask (!%p141_p9), 1044484   ;;  %vm3860_vm10 = vcmask (!%p141_p9), 1045509  }
  0x11   : > { %176 = vst.msk [vmem:[#allocation2 + $0x228] sm:$0xff] (!%p141_p9), %vm169_vm0, %v4589_v0  ;;  %177 = vst.msk [vmem:[#allocation2 + $0x230] sm:$0xff] (!%p141_p9), %vm169_vm0, %v4589_v0  ;;  %vm3862_vm11 = vcmask (!%p141_p9), 1046534   ;;  %vm3864_vm12 = vcmask (!%p141_p9), 1047559   ;;  %s161_s17 = sand.u32 (!%p141_p9), 1, %s4579_s13   ;;  %vm3952_vm13 = vcmask (!%p141_p9), 523264  }
  0x12   : > { %178 = vst.msk [vmem:[#allocation2 + $0x238] sm:$0xff] (!%p141_p9), %vm169_vm0, %v4589_v0  ;;  %180 = vst.msk [vmem:[#allocation2 + $0x20] sm:$0xff] (!%p141_p9), %vm169_vm0, %v4589_v0  ;;  %s4035_s19 = sshll.u32 (!%p141_p9), %s161_s17, 4  ;;  %s6653_s4 = scalar_lea.sflag (!%p141_p9), [#allocation4], %s161_s17 }
  0x13   : > { %181 = vst.msk [vmem:[#allocation2 + $0x40] sm:$0xff] (!%p141_p9), %vm169_vm0, %v4589_v0  ;;  %182 = vst.msk [vmem:[#allocation2 + $0x60] sm:$0xff] (!%p141_p9), %vm169_vm0, %v4589_v0  ;;  %s163_s20 = scalar_lea.vmem (!%p141_p9), [#allocation3], %s4035_s19 }
  0x14   : > { %183 = vst.msk [vmem:[#allocation2 + $0x80] sm:$0xff] (!%p141_p9), %vm169_vm0, %v4589_v0  ;;  %184 = vst.msk [vmem:[#allocation2 + $0xa0] sm:$0xff] (!%p141_p9), %vm169_vm0, %v4589_v0 }
  0x15   : > { %185 = vst.msk [vmem:[#allocation2 + $0xc0] sm:$0xff] %vm169_vm0, %v4589_v0  ;;  %186 = vst.msk [vmem:[#allocation2 + $0xe0] sm:$0xff] %vm169_vm0, %v4589_v0  ;;  %s165_s24 = scalar_select %p164_p10, %s4639_s16, 1 }
  0x16   : > { %187 = vst.msk [vmem:[#allocation2 + $0x100] sm:$0xff] %vm169_vm0, %v4589_v0  ;;  %188 = vst.msk [vmem:[#allocation2 + $0x120] sm:$0xff] %vm169_vm0, %v4589_v0 }
  0x17   : > { %189 = vst.msk [vmem:[#allocation2 + $0x140] sm:$0xff] %vm169_vm0, %v4589_v0  ;;  %190 = vst.msk [vmem:[#allocation2 + $0x160] sm:$0xff] %vm169_vm0, %v4589_v0  ;;  %s4177_s25 = sshll.u32 %s165_s24, 8  ;;  %s3969_s24 = sshll.u32 %s163_s20, 4  ;;  %s6646_s24 = int_to_ptr.vmem [resolvable:$true] %s3969_s24 }
  0x18   : > { %191 = vst.msk [vmem:[#allocation2 + $0x180] sm:$0xff] %vm169_vm0, %v4589_v0  ;;  %192 = vst.msk [vmem:[#allocation2 + $0x1a0] sm:$0xff] %vm169_vm0, %v4589_v0  ;;  %s4717_s28 = scalar_lea.vmem %s6694_s0, %s4177_s25  ;;  %s4178_s25 = sshll.u32 %s4639_s16, 8 }
  0x19   : > { %193 = vst.msk [vmem:[#allocation2 + $0x1c0] sm:$0xff] %vm169_vm0, %v4589_v0  ;;  %194 = vst.msk [vmem:[#allocation2 + $0x1e0] sm:$0xff] %vm169_vm0, %v4589_v0  ;;  %v215_v1 = vld [vmem:[%s4717_s28] sm:$0xff]  ;;  %v216_v2 = vld [vmem:[%s4717_s28 + $0x8] sm:$0xff]  ;;  %s4525_s5 = scalar_lea.vmem %s6646_s24, 256  ;;  %s4595_s16 = smov [#allocation3]  }
  0x1a   : > { %195 = vst.msk [vmem:[#allocation2 + $0x200] sm:$0xff] %vm169_vm0, %v4589_v0  ;;  %199 = vst.msk [vmem:[#allocation2 + $0x58] sm:$0xff] %vm169_vm0, %v4589_v0  ;;  %v217_v3 = vld [vmem:[%s4717_s28 + $0x10] sm:$0xff]  ;;  %v248_v4 = vsel %vm247_vm1, %v215_v1, 0.0  ;;  %v249_v5 = vsel %vm247_vm1, %v216_v2, 0.0  ;;  %v218_v7 = vld [vmem:[%s4717_s28 + $0x18] sm:$0xff]  ;;  %p4526_p11 = scmp.ne.s32.totalorder %s6646_s24, %s4525_s5 }
  0x1b   : > { %200 = vst.msk [vmem:[#allocation2 + $0x78] sm:$0xff] %vm169_vm0, %v4589_v0  ;;  %201 = vst.msk [vmem:[#allocation2 + $0x98] sm:$0xff] %vm169_vm0, %v4589_v0  ;;  %v250_v6 = vsel %vm247_vm1, %v217_v3, 0.0  ;;  %v219_v8 = vld [vmem:[%s4717_s28 + $0x20] sm:$0xff]  ;;  %v220_v9 = vld [vmem:[%s4717_s28 + $0x28] sm:$0xff]  ;;  %v251_v10 = vsel %vm247_vm1, %v218_v7, 0.0 }
  0x1c   : > { %202 = vst.msk [vmem:[#allocation2 + $0xb8] sm:$0xff] %vm169_vm0, %v4589_v0  ;;  %203 = vst.msk [vmem:[#allocation2 + $0xd8] sm:$0xff] %vm169_vm0, %v4589_v0  ;;  %v252_v11 = vsel %vm247_vm1, %v219_v8, 0.0  ;;  %v253_v12 = vsel %vm247_vm1, %v220_v9, 0.0  ;;  %v221_v13 = vld [vmem:[%s4717_s28 + $0x30] sm:$0xff]  ;;  %v222_v14 = vld [vmem:[%s4717_s28 + $0x38] sm:$0xff]  ;;  %p4527_p12 = pnand %p4526_p11, %p4656_p5 }
  0x1d   : > { %204 = vst.msk [vmem:[#allocation2 + $0xf8] sm:$0xff] %vm169_vm0, %v4589_v0  ;;  %205 = vst.msk [vmem:[#allocation2 + $0x118] sm:$0xff] %vm169_vm0, %v4589_v0  ;;  %v223_v15 = vld [vmem:[%s4717_s28 + $0x40] sm:$0xff]  ;;  %v254_v16 = vsel %vm247_vm1, %v221_v13, 0.0  ;;  %v255_v17 = vsel %vm247_vm1, %v222_v14, 0.0  ;;  %v224_v19 = vld [vmem:[%s4717_s28 + $0x48] sm:$0xff] }
  0x1e   : > { %206 = vst.msk [vmem:[#allocation2 + $0x138] sm:$0xff] %vm169_vm0, %v4589_v0  ;;  %207 = vst.msk [vmem:[#allocation2 + $0x158] sm:$0xff] %vm169_vm0, %v4589_v0  ;;  %v256_v18 = vsel %vm247_vm1, %v223_v15, 0.0  ;;  %v225_v20 = vld [vmem:[%s4717_s28 + $0x50] sm:$0xff]  ;;  %v226_v21 = vld [vmem:[%s4717_s28 + $0x58] sm:$0xff]  ;;  %v257_v22 = vsel %vm247_vm1, %v224_v19, 0.0  ;;  %p4528_p13 = pneg %p4527_p12 }
  0x1f   : > { %208 = vst.msk [vmem:[#allocation2 + $0x178] sm:$0xff] %vm169_vm0, %v4589_v0  ;;  %209 = vst.msk [vmem:[#allocation2 + $0x198] sm:$0xff] %vm169_vm0, %v4589_v0  ;;  %v258_v23 = vsel %vm247_vm1, %v225_v20, 0.0  ;;  %v259_v24 = vsel %vm247_vm1, %v226_v21, 0.0  ;;  %v227_v25 = vld [vmem:[%s4717_s28 + $0x60] sm:$0xff]  ;;  %v228_v26 = vld [vmem:[%s4717_s28 + $0x68] sm:$0xff] }
  0x20   : > { %210 = vst.msk [vmem:[#allocation2 + $0x1b8] sm:$0xff] %vm169_vm0, %v4589_v0  ;;  %211 = vst.msk [vmem:[#allocation2 + $0x1d8] sm:$0xff] %vm169_vm0, %v4589_v0  ;;  %v229_v27 = vld [vmem:[%s4717_s28 + $0x70] sm:$0xff]  ;;  %v260_v28 = vsel %vm247_vm1, %v227_v25, 0.0  ;;  %v261_v29 = vsel %vm247_vm1, %v228_v26, 0.0  ;;  %v230_v30 = vld [vmem:[%s4717_s28 + $0x78] sm:$0xff] }
  0x21   : > { %212 = vst.msk [vmem:[#allocation2 + $0x1f8] sm:$0xff] %vm169_vm0, %v4589_v0  ;;  %213 = vst.msk [vmem:[#allocation2 + $0x218] sm:$0xff] %vm169_vm0, %v4589_v0  ;;  %v262_v31 = vsel %vm247_vm1, %v229_v27, 0.0  ;;  %v263_v32 = vsel %vm247_vm1, %v230_v30, 0.0  ;;  %v231_v33 = vld [vmem:[%s4717_s28 + $0x80] sm:$0xff]  ;;  %v232_v35 = vld [vmem:[%s4717_s28 + $0x88] sm:$0xff] }
  0x22   : > { %179 = vst.msk [vmem:[#allocation2] sm:$0xff] %vm169_vm0, %v4589_v0  ;;  %196 = vst.msk [vmem:[#allocation2 + $0x220] sm:$0xff] %vm169_vm0, %v4589_v0  ;;  %v264_v34 = vsel %vm247_vm1, %v231_v33, 0.0  ;;  %v233_v36 = vld [vmem:[%s4717_s28 + $0x90] sm:$0xff]  ;;  %v234_v37 = vld [vmem:[%s4717_s28 + $0x98] sm:$0xff]  ;;  %v265_v38 = vsel %vm247_vm1, %v232_v35, 0.0 }
  0x23   : > { %197 = vst.msk [vmem:[#allocation2 + $0x18] sm:$0xff] %vm169_vm0, %v4589_v0  ;;  %214 = vst.msk [vmem:[#allocation2 + $0x238] sm:$0xff] %vm169_vm0, %v4589_v0  ;;  %v266_v39 = vsel %vm247_vm1, %v233_v36, 0.0  ;;  %v267_v40 = vsel %vm247_vm1, %v234_v37, 0.0  ;;  %v235_v41 = vld [vmem:[%s4717_s28 + $0xa0] sm:$0xff]  ;;  %v236_v42 = vld [vmem:[%s4717_s28 + $0xa8] sm:$0xff] }
  0x24   : > { %281 = vst.msk [vmem:[#allocation2 + $0x28] sm:$0xff] %vm169_vm0, %v248_v4  ;;  %282 = vst.msk [vmem:[#allocation2 + $0x30] sm:$0xff] %vm169_vm0, %v249_v5  ;;  %v237_v43 = vld [vmem:[%s4717_s28 + $0xb0] sm:$0xff]  ;;  %v268_v47 = vsel %vm247_vm1, %v235_v41, 0.0  ;;  %v269_v48 = vsel %vm247_vm1, %v236_v42, 0.0  ;;  %v238_v59 = vld [vmem:[%s4717_s28 + $0xb8] sm:$0xff] }
  0x25   : > { %283 = vst.msk [vmem:[#allocation2 + $0x48] sm:$0xff] %vm169_vm0, %v250_v6  ;;  %284 = vst.msk [vmem:[#allocation2 + $0x50] sm:$0xff] %vm169_vm0, %v251_v10  ;;  %v270_v49 = vsel %vm247_vm1, %v237_v43, 0.0  ;;  %v271_v60 = vsel %vm247_vm1, %v238_v59, 0.0  ;;  %v239_v61 = vld [vmem:[%s4717_s28 + $0xc0] sm:$0xff]  ;;  %v240_v62 = vld [vmem:[%s4717_s28 + $0xc8] sm:$0xff] }
  0x26   : > { %285 = vst.msk [vmem:[#allocation2 + $0x68] sm:$0xff] %vm169_vm0, %v252_v11  ;;  %286 = vst.msk [vmem:[#allocation2 + $0x70] sm:$0xff] %vm169_vm0, %v253_v12  ;;  %v272_v0 = vsel %vm247_vm1, %v239_v61, 0.0  ;;  %v273_v1 = vsel %vm247_vm1, %v240_v62, 0.0  ;;  %v241_v2 = vld [vmem:[%s4717_s28 + $0xd0] sm:$0xff]  ;;  %v242_v9 = vld [vmem:[%s4717_s28 + $0xd8] sm:$0xff] }
  0x27   : > { %287 = vst.msk [vmem:[#allocation2 + $0x88] sm:$0xff] %vm169_vm0, %v254_v16  ;;  %288 = vst.msk [vmem:[#allocation2 + $0x90] sm:$0xff] %vm169_vm0, %v255_v17  ;;  %v274_v4 = vsel %vm247_vm1, %v241_v2, 0.0  ;;  %v275_v10 = vsel %vm247_vm1, %v242_v9, 0.0  ;;  %v243_v15 = vld [vmem:[%s4717_s28 + $0xe0] sm:$0xff]  ;;  %v244_v19 = vld [vmem:[%s4717_s28 + $0xe8] sm:$0xff] }
  0x28   : > { %289 = vst.msk [vmem:[#allocation2 + $0xa8] sm:$0xff] %vm169_vm0, %v256_v18  ;;  %290 = vst.msk [vmem:[#allocation2 + $0xb0] sm:$0xff] %vm169_vm0, %v257_v22  ;;  %v276_v16 = vsel %vm247_vm1, %v243_v15, 0.0  ;;  %v277_v20 = vsel %vm247_vm1, %v244_v19, 0.0  ;;  %v245_v27 = vld [vmem:[%s4717_s28 + $0xf0] sm:$0xff]  ;;  %v349_v35 = vld [vmem:[#allocation2 + $0x8] sm:$0xff] }
  0x29   : > { %291 = vst.msk [vmem:[#allocation2 + $0xc8] sm:$0xff] %vm169_vm0, %v258_v23  ;;  %292 = vst.msk [vmem:[#allocation2 + $0xd0] sm:$0xff] %vm169_vm0, %v259_v24  ;;  %v350_v36 = vld [vmem:[#allocation2 + $0x10] sm:$0xff]  ;;  %v1079_v61 = vld [vmem:[%s6695_s1 + $0x28] sm:$0xff]  ;;  %s4529_s6 = sshll.u32 %s4595_s16, 4  ;;  %s4530_s6 = int_to_ptr.vmem [resolvable:$false] %s4529_s6 }
  0x2a   : > { %293 = vst.msk [vmem:[#allocation2 + $0xe8] sm:$0xff] %vm169_vm0, %v260_v28  ;;  %294 = vst.msk [vmem:[#allocation2 + $0xf0] sm:$0xff] %vm169_vm0, %v261_v29  ;;  %v278_v28 = vsel %vm247_vm1, %v245_v27, 0.0  ;;  %v4350_v37 = vpack.i.bf16 %v350_v36, %v349_v35  ;;  %v1081_v2 = vld [vmem:[%s6695_s1 + $0x38] sm:$0xff]  ;;  %v1087_v15 = vld [vmem:[%s6695_s1 + $0x68] sm:$0xff]  ;;  %s4531_s7 = scalar_lea.vmem %s4530_s6, 512  ;;  %p4532_p0 = scmp.lt.s32.totalorder %s6646_s24, %s4530_s6 }
  0x2b   : > { %295 = vst.msk [vmem:[#allocation2 + $0x108] sm:$0xff] %vm169_vm0, %v262_v31  ;;  %296 = vst.msk [vmem:[#allocation2 + $0x110] sm:$0xff] %vm169_vm0, %v263_v32  ;;  %v351_v44 = vld [vmem:[#allocation2 + $0x28] sm:$0xff]  ;;  %v352_v45 = vld [vmem:[#allocation2 + $0x30] sm:$0xff]  ;;  %p4533_p1 = scmp.lt.s32.totalorder %s4531_s7, %s4525_s5 }
  0x2c   : > { %297 = vst.msk [vmem:[#allocation2 + $0x128] sm:$0xff] %vm169_vm0, %v264_v34  ;;  %v387_v46 = vld [vmem:[#allocation2 + $0x29] sm:$0xff]  ;;  %298 = vst.msk [vmem:[#allocation2 + $0x130] sm:$0xff] %vm169_vm0, %v265_v38  ;;  %v4340_v50 = vpack.i.bf16 %v352_v45, %v351_v44  ;;  %v388_v51 = vld [vmem:[#allocation2 + $0x31] sm:$0xff] }
  0x2d   : > { %299 = vst.msk [vmem:[#allocation2 + $0x148] sm:$0xff] %vm169_vm0, %v266_v39  ;;  %300 = vst.msk [vmem:[#allocation2 + $0x150] sm:$0xff] %vm169_vm0, %v267_v40  ;;  %v4345_v52 = vpack.i.bf16 %v388_v51, %v387_v46  ;;  %v353_v53 = vld [vmem:[#allocation2 + $0x48] sm:$0xff]  ;;  %v354_v55 = vld [vmem:[#allocation2 + $0x50] sm:$0xff]  ;;  %p4534_p2 = por %p4533_p1, %p4532_p0 }
  0x2e   : > { %301 = vst.msk [vmem:[#allocation2 + $0x168] sm:$0xff] %vm169_vm0, %v268_v47  ;;  %302 = vst.msk [vmem:[#allocation2 + $0x170] sm:$0xff] %vm169_vm0, %v269_v48  ;;  %4341 = vrot.lane.b32.xlu0 %v4340_v50, %s4590_s29  ;;  %v389_v54 = vld [vmem:[#allocation2 + $0x49] sm:$0xff]  ;;  %v390_v56 = vld [vmem:[#allocation2 + $0x51] sm:$0xff] }
  0x2f   : > { %303 = vst.msk [vmem:[#allocation2 + $0x188] sm:$0xff] %vm169_vm0, %v270_v49  ;;  %4346 = vrot.lane.b32.xlu1 %v4345_v52, %s4591_s30  ;;  %v355_v57 = vld [vmem:[#allocation2 + $0x68] sm:$0xff]  ;;  %v356_v63 = vld [vmem:[#allocation2 + $0x70] sm:$0xff]  ;;  %304 = vst.msk [vmem:[#allocation2 + $0x190] sm:$0xff] %vm169_vm0, %v271_v60  ;;  %v4592_v49 = vmov 0.0|0.0   ;;  %p4535_p3 = pnand %p4534_p2, %p4528_p13 }
  0x30   : > { %v391_v58 = vld [vmem:[#allocation2 + $0x69] sm:$0xff]  ;;  %v392_v3 = vld [vmem:[#allocation2 + $0x71] sm:$0xff]  ;;  %305 = vst.msk [vmem:[#allocation2 + $0x1a8] sm:$0xff] %vm169_vm0, %v272_v0  ;;  %306 = vst.msk [vmem:[#allocation2 + $0x1b0] sm:$0xff] %vm169_vm0, %v273_v1  ;;  %4190 = vmatprep.subr.bf16.mxu0 %v4592_v49  ;;  %4275 = vmatprep.subr.bf16.mxu1 %v4592_v49 }
  0x31   : > { %307 = vst.msk [vmem:[#allocation2 + $0x1c8] sm:$0xff] %vm169_vm0, %v274_v4  ;;  %v357_v5 = vld [vmem:[#allocation2 + $0x88] sm:$0xff]  ;;  %v358_v7 = vld [vmem:[#allocation2 + $0x90] sm:$0xff]  ;;  %308 = vst.msk [vmem:[#allocation2 + $0x1d0] sm:$0xff] %vm169_vm0, %v275_v10 }
  0x32   : > { %465 = vrot.lane.b32.xlu0 %v353_v53, %s4590_s29  ;;  %v393_v6 = vld [vmem:[#allocation2 + $0x89] sm:$0xff]  ;;  %v394_v8 = vld [vmem:[#allocation2 + $0x91] sm:$0xff]  ;;  %309 = vst.msk [vmem:[#allocation2 + $0x1e8] sm:$0xff] %vm169_vm0, %v276_v16  ;;  %310 = vst.msk [vmem:[#allocation2 + $0x1f0] sm:$0xff] %vm169_vm0, %v277_v20 }
  0x33   : > { %609 = vrot.lane.b32.xlu1 %v389_v54, %s4591_s30  ;;  %v359_v11 = vld [vmem:[#allocation2 + $0xa8] sm:$0xff]  ;;  %v360_v13 = vld [vmem:[#allocation2 + $0xb0] sm:$0xff]  ;;  %311 = vst.msk [vmem:[#allocation2 + $0x208] sm:$0xff] %vm169_vm0, %v278_v28  ;;  %v246_v31 = vld [vmem:[%s4717_s28 + $0xf8] sm:$0xff]  ;;  %s6651_s28 = scalar_lea.hbm %s6697_s3, %s4178_s25 }
  0x34   : > { %v395_v12 = vld [vmem:[#allocation2 + $0xa9] sm:$0xff]  ;;  %v396_v14 = vld [vmem:[#allocation2 + $0xb1] sm:$0xff]  ;;  %v279_v32 = vsel %vm247_vm1, %v246_v31, 0.0  ;;  %v1074_v50 = vld [vmem:[%s6695_s1] sm:$0xff] }
  0x35   : > { %v361_v17 = vld [vmem:[#allocation2 + $0xc8] sm:$0xff]  ;;  %v362_v21 = vld [vmem:[#allocation2 + $0xd0] sm:$0xff]  ;;  %312 = vst.msk [vmem:[#allocation2 + $0x210] sm:$0xff] %vm169_vm0, %v279_v32  ;;  %v1078_v60 = vld [vmem:[%s6695_s1 + $0x20] sm:$0xff] }
  0x36   : > { %467 = vrot.lane.b32.xlu0 %v354_v55, %s4590_s29  ;;  %v397_v18 = vld [vmem:[#allocation2 + $0xc9] sm:$0xff]  ;;  %v398_v22 = vld [vmem:[#allocation2 + $0xd1] sm:$0xff]  ;;  %v4197_v62 = vpack.c.bf16 %v1079_v61, %v1078_v60 }
  0x37   : > { %611 = vrot.lane.b32.xlu1 %v390_v56, %s4591_s30  ;;  %v363_v23 = vld [vmem:[#allocation2 + $0xe8] sm:$0xff]  ;;  %v364_v25 = vld [vmem:[#allocation2 + $0xf0] sm:$0xff]  ;;  %v1077_v56 = vld [vmem:[%s6695_s1 + $0x18] sm:$0xff] }
  0x38   : > { %v399_v24 = vld [vmem:[#allocation2 + $0xe9] sm:$0xff]  ;;  %v400_v26 = vld [vmem:[#allocation2 + $0xf1] sm:$0xff] }
  0x39   : > { %v365_v29 = vld [vmem:[#allocation2 + $0x108] sm:$0xff]  ;;  %v366_v33 = vld [vmem:[#allocation2 + $0x110] sm:$0xff]  ;;  %v1089_v19 = vld [vmem:[%s6695_s1 + $0x78] sm:$0xff] }
  0x3a   : > { %469 = vrot.lane.b32.xlu0 %v355_v57, %s4590_s29  ;;  %v401_v30 = vld [vmem:[#allocation2 + $0x109] sm:$0xff]  ;;  %v402_v34 = vld [vmem:[#allocation2 + $0x111] sm:$0xff] }
  0x3b   : > { %613 = vrot.lane.b32.xlu1 %v391_v58, %s4591_s30  ;;  %v367_v38 = vld [vmem:[#allocation2 + $0x128] sm:$0xff]  ;;  %v386_v40 = vld [vmem:[#allocation2 + $0x11] sm:$0xff] }
  0x3c   : > { %v385_v39 = vld [vmem:[#allocation2 + $0x9] sm:$0xff]  ;;  %v406_v45 = vld [vmem:[#allocation2 + $0x151] sm:$0xff] }
  0x3d   : > { %v4355_v41 = vpack.i.bf16 %v386_v40, %v385_v39  ;;  %v403_v42 = vld [vmem:[#allocation2 + $0x129] sm:$0xff]  ;;  %v404_v46 = vld [vmem:[#allocation2 + $0x131] sm:$0xff] }
  0x3e   : > { %471 = vrot.lane.b32.xlu0 %v356_v63, %s4590_s29  ;;  %v405_v43 = vld [vmem:[#allocation2 + $0x149] sm:$0xff]  ;;  %v410_v63 = vld [vmem:[#allocation2 + $0x191] sm:$0xff] }
  0x3f   : > { %615 = vrot.lane.b32.xlu1 %v392_v3, %s4591_s30  ;;  %v368_v44 = vld [vmem:[#allocation2 + $0x130] sm:$0xff]  ;;  %v373_v47 = vld [vmem:[#allocation2 + $0x188] sm:$0xff] }
  0x40   : > { %v369_v48 = vld [vmem:[#allocation2 + $0x148] sm:$0xff]  ;;  %v370_v54 = vld [vmem:[#allocation2 + $0x150] sm:$0xff] }
  0x41   : > { %v1075_v51 = vld [vmem:[%s6695_s1 + $0x8] sm:$0xff]  ;;  %v1076_v55 = vld [vmem:[%s6695_s1 + $0x10] sm:$0xff] }
  0x42   : > { %473 = vrot.lane.b32.xlu0 %v357_v5, %s4590_s29  ;;  %v4191_v52 = vpack.c.bf16 %v1075_v51, %v1074_v50  ;;  %v409_v53 = vld [vmem:[#allocation2 + $0x189] sm:$0xff]  ;;  %v4194_v57 = vpack.c.bf16 %v1077_v56, %v1076_v55  ;;  %v408_v9 = vld [vmem:[#allocation2 + $0x171] sm:$0xff] }
  0x43   : > { %617 = vrot.lane.b32.xlu1 %v393_v6, %s4591_s30  ;;  %v374_v58 = vld [vmem:[#allocation2 + $0x190] sm:$0xff]  ;;  %v371_v59 = vld [vmem:[#allocation2 + $0x168] sm:$0xff]  ;;  %v1082_v6 = vld [vmem:[%s6695_s1 + $0x40] sm:$0xff] }
  0x44   : > { %4192 = vmatpush1.bf16.msra.mxu0 %v4191_v52  ;;  %4284 = vmatpush1.bf16.msra.mxu1 %v4191_v52  ;;  %v407_v0 = vld [vmem:[#allocation2 + $0x169] sm:$0xff] }
  0x45   : > { %4193 = vmatprep.subr.bf16.mxu0 %v4592_v49  ;;  %4276 = vmatprep.subr.bf16.mxu1 %v4592_v49  ;;  %v1080_v1 = vld [vmem:[%s6695_s1 + $0x30] sm:$0xff]  ;;  %v377_v4 = vld [vmem:[#allocation2 + $0x1c8] sm:$0xff] }
  0x46   : > { %475 = vrot.lane.b32.xlu0 %v358_v7, %s4590_s29  ;;  %v4200_v3 = vpack.c.bf16 %v1081_v2, %v1080_v1  ;;  %v372_v5 = vld [vmem:[#allocation2 + $0x170] sm:$0xff]  ;;  %v1083_v7 = vld [vmem:[%s6695_s1 + $0x48] sm:$0xff] }
  0x47   : > { %619 = vrot.lane.b32.xlu1 %v394_v8, %s4591_s30  ;;  %v4203_v8 = vpack.c.bf16 %v1083_v7, %v1082_v6  ;;  %v1084_v10 = vld [vmem:[%s6695_s1 + $0x50] sm:$0xff]  ;;  %v315_v27 = vld [vmem:[#allocation2 + $0x27] sm:$0xff] }
  0x48   : > { %4195 = vmatpush1.bf16.msra.mxu0 %v4194_v57  ;;  %4285 = vmatpush1.bf16.msra.mxu1 %v4194_v57  ;;  %v316_v28 = vld [vmem:[#allocation2 + $0x2f] sm:$0xff]  ;;  %v317_v36 = vld [vmem:[#allocation2 + $0x47] sm:$0xff] }
  0x49   : > { %4196 = vmatprep.subr.bf16.mxu0 %v4592_v49  ;;  %4277 = vmatprep.subr.bf16.mxu1 %v4592_v49  ;;  %v320_v55 = vld [vmem:[#allocation2 + $0x6f] sm:$0xff] }
  0x4a   : > { %477 = vrot.lane.b32.xlu0 %v359_v11, %s4590_s29  ;;  %v1085_v11 = vld [vmem:[%s6695_s1 + $0x58] sm:$0xff] }
  0x4b   : > { %621 = vrot.lane.b32.xlu1 %v395_v12, %s4591_s30  ;;  %v4206_v12 = vpack.c.bf16 %v1085_v11, %v1084_v10 }
  0x4c   : > { %4198 = vmatpush1.bf16.msra.mxu0 %v4197_v62  ;;  %4286 = vmatpush1.bf16.msra.mxu1 %v4197_v62  ;;  %v321_v62 = vld [vmem:[#allocation2 + $0x87] sm:$0xff] }
  0x4d   : > { %4199 = vmatprep.subr.bf16.mxu0 %v4592_v49  ;;  %4278 = vmatprep.subr.bf16.mxu1 %v4592_v49 }
  0x4e   : > { %479 = vrot.lane.b32.xlu0 %v360_v13, %s4590_s29  ;;  %v375_v13 = vld [vmem:[#allocation2 + $0x1a8] sm:$0xff] }
  0x4f   : > { %623 = vrot.lane.b32.xlu1 %v396_v14, %s4591_s30  ;;  %v1086_v14 = vld [vmem:[%s6695_s1 + $0x60] sm:$0xff] }
  0x50   : > { %4201 = vmatpush1.bf16.msra.mxu0 %v4200_v3  ;;  %4287 = vmatpush1.bf16.msra.mxu1 %v4200_v3  ;;  %v4209_v16 = vpack.c.bf16 %v1087_v15, %v1086_v14 }
  0x51   : > { %4202 = vmatprep.subr.bf16.mxu0 %v4592_v49  ;;  %4279 = vmatprep.subr.bf16.mxu1 %v4592_v49 }
  0x52   : > { %481 = vrot.lane.b32.xlu0 %v361_v17, %s4590_s29  ;;  %v411_v17 = vld [vmem:[#allocation2 + $0x1a9] sm:$0xff] }
  0x53   : > { %625 = vrot.lane.b32.xlu1 %v397_v18, %s4591_s30  ;;  %v1088_v18 = vld [vmem:[%s6695_s1 + $0x70] sm:$0xff] }
  0x54   : > { %4204 = vmatpush1.bf16.msra.mxu0 %v4203_v8  ;;  %4288 = vmatpush1.bf16.msra.mxu1 %v4203_v8  ;;  %v4212_v20 = vpack.c.bf16 %v1089_v19, %v1088_v18  ;;  %v323_v8 = vld [vmem:[#allocation2 + $0xa7] sm:$0xff] }
  0x55   : > { %4205 = vmatprep.subr.bf16.mxu0 %v4592_v49  ;;  %4280 = vmatprep.subr.bf16.mxu1 %v4592_v49  ;;  %v325_v19 = vld [vmem:[#allocation2 + $0xc7] sm:$0xff] }
  0x56   : > { %483 = vrot.lane.b32.xlu0 %v362_v21, %s4590_s29  ;;  %v376_v21 = vld [vmem:[#allocation2 + $0x1b0] sm:$0xff] }
  0x57   : > { %627 = vrot.lane.b32.xlu1 %v398_v22, %s4591_s30  ;;  %v1090_v22 = vld [vmem:[%s6695_s1 + $0x80] sm:$0xff] }
  0x58   : > { %4207 = vmatpush1.bf16.msra.mxu0 %v4206_v12  ;;  %4289 = vmatpush1.bf16.msra.mxu1 %v4206_v12  ;;  %v324_v12 = vld [vmem:[#allocation2 + $0xaf] sm:$0xff] }
  0x59   : > { %4208 = vmatprep.subr.bf16.mxu0 %v4592_v49  ;;  %4281 = vmatprep.subr.bf16.mxu1 %v4592_v49 }
  0x5a   : > { %485 = vrot.lane.b32.xlu0 %v363_v23, %s4590_s29  ;;  %v1091_v23 = vld [vmem:[%s6695_s1 + $0x88] sm:$0xff] }
  0x5b   : > { %629 = vrot.lane.b32.xlu1 %v399_v24, %s4591_s30  ;;  %v4215_v24 = vpack.c.bf16 %v1091_v23, %v1090_v22 }
  0x5c   : > { %4210 = vmatpush1.bf16.msra.mxu0 %v4209_v16  ;;  %4290 = vmatpush1.bf16.msra.mxu1 %v4209_v16 }
  0x5d   : > { %4211 = vmatprep.subr.bf16.mxu0 %v4592_v49  ;;  %4282 = vmatprep.subr.bf16.mxu1 %v4592_v49 }
  0x5e   : > { %487 = vrot.lane.b32.xlu0 %v364_v25, %s4590_s29  ;;  %v412_v25 = vld [vmem:[#allocation2 + $0x1b1] sm:$0xff] }
  0x5f   : > { %631 = vrot.lane.b32.xlu1 %v400_v26, %s4591_s30 }
  0x60   : > { %4213 = vmatpush1.bf16.msra.mxu0 %v4212_v20  ;;  %4291 = vmatpush1.bf16.msra.mxu1 %v4212_v20 }
  0x61   : > { %4214 = vmatprep.subr.bf16.mxu0 %v4592_v49  ;;  %4283 = vmatprep.subr.bf16.mxu1 %v4592_v49 }
  0x62   : > { %489 = vrot.lane.b32.xlu0 %v365_v29, %s4590_s29 }
  0x63   : > { %633 = vrot.lane.b32.xlu1 %v401_v30, %s4591_s30 }
  0x64   : > { %4216 = vmatpush1.bf16.msra.mxu0 %v4215_v24  ;;  %4292 = vmatpush1.bf16.msra.mxu1 %v4215_v24  ;;  %v326_v24 = vld [vmem:[#allocation2 + $0xcf] sm:$0xff] }
  0x65   : > { %4217 = vmatprep.subr.bf16.mxu1 %v4592_v49  ;;  %4244 = vmatprep.subr.bf16.mxu0 %v4592_v49 }
  0x66   : > { %491 = vrot.lane.b32.xlu0 %v366_v33, %s4590_s29 }
  0x67   : > { %635 = vrot.lane.b32.xlu1 %v402_v34, %s4591_s30 }
  0x6a   : > { %493 = vrot.lane.b32.xlu0 %v367_v38, %s4590_s29 }
  0x6b   : > { %4351 = vrot.lane.b32.xlu1 %v4350_v37, %s4590_s29 }
  0x6e   : > { %637 = vrot.lane.b32.xlu0 %v403_v42, %s4591_s30 }
  0x6f   : > { %4356 = vrot.lane.b32.xlu1 %v4355_v41, %s4591_s30 }
  0x72   : > { %641 = vrot.lane.b32.xlu0 %v405_v43, %s4591_s30  ;;  %v318_v43 = vld [vmem:[#allocation2 + $0x4f] sm:$0xff] }
  0x73   : > { %495 = vrot.lane.b32.xlu1 %v368_v44, %s4590_s29 }
  0x76   : > { %643 = vrot.lane.b32.xlu0 %v406_v45, %s4591_s30 }
  0x77   : > { %639 = vrot.lane.b32.xlu1 %v404_v46, %s4591_s30 }
  0x7a   : > { %505 = vrot.lane.b32.xlu0 %v373_v47, %s4590_s29  ;;  %v319_v47 = vld [vmem:[#allocation2 + $0x67] sm:$0xff] }
  0x7b   : > { %497 = vrot.lane.b32.xlu1 %v369_v48, %s4590_s29 }
  0x7e   : > { %649 = vrot.lane.b32.xlu0 %v409_v53, %s4591_s30 }
  0x7f   : > { %499 = vrot.lane.b32.xlu1 %v370_v54, %s4590_s29 }
  0x82   : > { %507 = vrot.lane.b32.xlu0 %v374_v58, %s4590_s29 }
  0x83   : > { %501 = vrot.lane.b32.xlu1 %v371_v59, %s4590_s29 }
  0x86   : > { %651 = vrot.lane.b32.xlu0 %v410_v63, %s4591_s30 }
  0x87   : > { %645 = vrot.lane.b32.xlu1 %v407_v0, %s4591_s30  ;;  %v322_v0 = vld [vmem:[#allocation2 + $0x8f] sm:$0xff] }
  0x8a   : > { %513 = vrot.lane.b32.xlu0 %v377_v4, %s4590_s29 }
  0x8b   : > { %503 = vrot.lane.b32.xlu1 %v372_v5, %s4590_s29 }
  0x8f   : > { %647 = vrot.lane.b32.xlu1 %v408_v9, %s4591_s30 }
  0x93   : > { %509 = vrot.lane.b32.xlu1 %v375_v13, %s4590_s29 }
  0x97   : > { %653 = vrot.lane.b32.xlu1 %v411_v17, %s4591_s30 }
  0x9b   : > { %511 = vrot.lane.b32.xlu1 %v376_v21, %s4590_s29 }
  0x9f   : > { %655 = vrot.lane.b32.xlu1 %v412_v25, %s4591_s30 }
  0xa0   : > { %v4342_v26 = vpop.permute.xlu0 %4341 }
  0xa1   : > { %v4344_v29 = vunpack.i.h.bf16 %v4342_v26  ;;  %v4343_v30 = vunpack.i.l.bf16 %v4342_v26  ;;  %v4347_v31 = vpop.permute.xlu1 %4346 }
  0xa2   : > { %v4349_v32 = vunpack.i.h.bf16 %v4347_v31  ;;  %v4348_v33 = vunpack.i.l.bf16 %v4347_v31  ;;  %v413_v31 = vld [vmem:[#allocation2 + $0x1c9] sm:$0xff] }
  0xa3   : > { %v711_v34 = vsel %vm169_vm0, %v315_v27, %v4343_v30  ;;  %v712_v35 = vsel %vm169_vm0, %v316_v28, %v4344_v29  ;;  %v327_v30 = vld [vmem:[#allocation2 + $0xe7] sm:$0xff] }
  0xa4   : > { %v466_v37 = vpop.permute.xlu0 %465  ;;  %v4945_v38 = vsel %vm745_vm2, %v711_v34, %v4348_v33  ;;  %v4948_v39 = vsel %vm745_vm2, %v712_v35, %v4349_v32 }
  0xa5   : > { %v610_v40 = vpop.permute.xlu1 %609  ;;  %v4360_v41 = vpack.i.bf16 %v4948_v39, %v4945_v38  ;;  %v713_v42 = vsel %vm169_vm0, %v317_v36, %v466_v37  ;;  %v378_v37 = vld [vmem:[#allocation2 + $0x1d0] sm:$0xff] }
  0xa6   : > { %v4955_v46 = vsel %vm745_vm2, %v713_v42, %v610_v40 }
  0xa7   : > { %4361 = vrot.lane.b32.xlu0 %v4360_v41, %s4593_s8  ;;  %v328_v41 = vld [vmem:[#allocation2 + $0xef] sm:$0xff] }
  0xa8   : > { %v468_v44 = vpop.permute.xlu0 %467 }
  0xa9   : > { %v612_v45 = vpop.permute.xlu1 %611  ;;  %v714_v48 = vsel %vm169_vm0, %v318_v43, %v468_v44  ;;  %v379_v43 = vld [vmem:[#allocation2 + $0x1e8] sm:$0xff]  ;;  %v414_v44 = vld [vmem:[#allocation2 + $0x1d1] sm:$0xff] }
  0xaa   : > { %v4965_v54 = vsel %vm745_vm2, %v714_v48, %v612_v45 }
  0xab   : > { %912 = vrot.lane.b32.xlu0 %v4955_v46, %s4594_s9  ;;  %v4365_v58 = vpack.i.bf16 %v4965_v54, %v4955_v46 }
  0xac   : > { %v470_v50 = vpop.permute.xlu0 %469 }
  0xad   : > { %v715_v51 = vsel %vm169_vm0, %v319_v47, %v470_v50  ;;  %v614_v52 = vpop.permute.xlu1 %613  ;;  %v415_v50 = vld [vmem:[#allocation2 + $0x1e9] sm:$0xff] }
  0xae   : > { %v4962_v53 = vsel %vm745_vm2, %v715_v51, %v614_v52 }
  0xaf   : > { %916 = vrot.lane.b32.xlu1 %v4962_v53, %s4594_s9  ;;  %914 = vrot.lane.b32.xlu0 %v4965_v54, %s4594_s9 }
  0xb0   : > { %v472_v56 = vpop.permute.xlu0 %471 }
  0xb1   : > { %v616_v57 = vpop.permute.xlu1 %615  ;;  %v716_v59 = vsel %vm169_vm0, %v320_v55, %v472_v56  ;;  %v329_v55 = vld [vmem:[#allocation2 + $0x107] sm:$0xff]  ;;  %v380_v56 = vld [vmem:[#allocation2 + $0x1f0] sm:$0xff] }
  0xb2   : > { %v4976_v63 = vsel %vm745_vm2, %v716_v59, %v616_v57 }
  0xb3   : > { %4366 = vrot.lane.b32.xlu0 %v4365_v58, %s4593_s8  ;;  %v4370_v5 = vpack.i.bf16 %v4976_v63, %v4962_v53 }
  0xb4   : > { %v474_v60 = vpop.permute.xlu0 %473 }
  0xb5   : > { %v618_v61 = vpop.permute.xlu1 %617  ;;  %v717_v2 = vsel %vm169_vm0, %v321_v62, %v474_v60  ;;  %v416_v62 = vld [vmem:[#allocation2 + $0x1f1] sm:$0xff] }
  0xb6   : > { %v4991_v7 = vsel %vm745_vm2, %v717_v2, %v618_v61  ;;  %v330_v61 = vld [vmem:[#allocation2 + $0x10f] sm:$0xff] }
  0xb7   : > { %918 = vrot.lane.b32.xlu0 %v4976_v63, %s4594_s9 }
  0xb8   : > { %v476_v1 = vpop.permute.xlu0 %475 }
  0xb9   : > { %v718_v3 = vsel %vm169_vm0, %v322_v0, %v476_v1  ;;  %v620_v4 = vpop.permute.xlu1 %619 }
  0xba   : > { %v4985_v6 = vsel %vm745_vm2, %v718_v3, %v620_v4 }
  0xbb   : > { %922 = vrot.lane.b32.xlu1 %v4985_v6, %s4594_s9  ;;  %4371 = vrot.lane.b32.xlu0 %v4370_v5, %s4593_s8  ;;  %v4375_v11 = vpack.i.bf16 %v4985_v6, %v4991_v7  ;;  %v381_v5 = vld [vmem:[#allocation2 + $0x208] sm:$0xff] }
  0xbc   : > { %v478_v9 = vpop.permute.xlu0 %477 }
  0xbd   : > { %v622_v10 = vpop.permute.xlu1 %621  ;;  %v719_v13 = vsel %vm169_vm0, %v323_v8, %v478_v9  ;;  %v331_v9 = vld [vmem:[#allocation2 + $0x127] sm:$0xff] }
  0xbe   : > { %v5001_v17 = vsel %vm745_vm2, %v719_v13, %v622_v10  ;;  %v417_v10 = vld [vmem:[#allocation2 + $0x209] sm:$0xff] }
  0xbf   : > { %4376 = vrot.lane.b32.xlu1 %v4375_v11, %s4593_s8  ;;  %920 = vrot.lane.b32.xlu0 %v4991_v7, %s4594_s9 }
  0xc0   : > { %v480_v14 = vpop.permute.xlu0 %479 }
  0xc1   : > { %v720_v15 = vsel %vm169_vm0, %v324_v12, %v480_v14  ;;  %v624_v16 = vpop.permute.xlu1 %623 }
  0xc2   : > { %v5004_v18 = vsel %vm745_vm2, %v720_v15, %v624_v16  ;;  %v382_v16 = vld [vmem:[#allocation2 + $0x210] sm:$0xff] }
  0xc3   : > { %924 = vrot.lane.b32.xlu1 %v5001_v17, %s4594_s9  ;;  %926 = vrot.lane.b32.xlu0 %v5004_v18, %s4594_s9  ;;  %v4380_v23 = vpack.i.bf16 %v5004_v18, %v5001_v17 }
  0xc4   : > { %v482_v20 = vpop.permute.xlu0 %481 }
  0xc5   : > { %v721_v21 = vsel %vm169_vm0, %v325_v19, %v482_v20  ;;  %v626_v22 = vpop.permute.xlu1 %625  ;;  %v332_v20 = vld [vmem:[#allocation2 + $0x12f] sm:$0xff] }
  0xc6   : > { %v5015_v26 = vsel %vm745_vm2, %v721_v21, %v626_v22  ;;  %v383_v21 = vld [vmem:[#allocation2 + $0x228] sm:$0xff]  ;;  %v418_v22 = vld [vmem:[#allocation2 + $0x211] sm:$0xff] }
  0xc7   : > { %4381 = vrot.lane.b32.xlu0 %v4380_v23, %s4593_s8 }
  0xc8   : > { %v484_v25 = vpop.permute.xlu0 %483 }
  0xc9   : > { %v722_v27 = vsel %vm169_vm0, %v326_v24, %v484_v25  ;;  %v628_v28 = vpop.permute.xlu1 %627 }
  0xca   : > { %v5019_v29 = vsel %vm745_vm2, %v722_v27, %v628_v28  ;;  %v419_v27 = vld [vmem:[#allocation2 + $0x229] sm:$0xff] }
  0xcb   : > { %930 = vrot.lane.b32.xlu1 %v5019_v29, %s4594_s9  ;;  %928 = vrot.lane.b32.xlu0 %v5015_v26, %s4594_s9  ;;  %v4385_v33 = vpack.i.bf16 %v5019_v29, %v5015_v26 }
  0xcc   : > { %v486_v32 = vpop.permute.xlu0 %485 }
  0xcd   : > { %v723_v34 = vsel %vm169_vm0, %v327_v30, %v486_v32  ;;  %v630_v35 = vpop.permute.xlu1 %629 }
  0xce   : > { %v5031_v36 = vsel %vm745_vm2, %v723_v34, %v630_v35  ;;  %v384_v34 = vld [vmem:[#allocation2 + $0x230] sm:$0xff] }
  0xcf   : > { %4386 = vrot.lane.b32.xlu1 %v4385_v33, %s4593_s8  ;;  %657 = vrot.lane.b32.xlu0 %v413_v31, %s4591_s30  ;;  %v333_v31 = vld [vmem:[#allocation2 + $0x147] sm:$0xff]  ;;  %v420_v33 = vld [vmem:[#allocation2 + $0x231] sm:$0xff] }
  0xd0   : > { %v488_v42 = vpop.permute.xlu0 %487 }
  0xd1   : > { %v632_v40 = vpop.permute.xlu1 %631  ;;  %v724_v45 = vsel %vm169_vm0, %v328_v41, %v488_v42 }
  0xd2   : > { %v5040_v51 = vsel %vm745_vm2, %v724_v45, %v632_v40  ;;  %v334_v40 = vld [vmem:[#allocation2 + $0x14f] sm:$0xff] }
  0xd3   : > { %932 = vrot.lane.b32.xlu1 %v5031_v36, %s4594_s9  ;;  %515 = vrot.lane.b32.xlu0 %v378_v37, %s4590_s29  ;;  %v4390_v57 = vpack.i.bf16 %v5040_v51, %v5031_v36 }
  0xd4   : > { %v490_v48 = vpop.permute.xlu0 %489 }
  0xd5   : > { %v634_v47 = vpop.permute.xlu1 %633  ;;  %v725_v58 = vsel %vm169_vm0, %v329_v55, %v490_v48  ;;  %v336_v55 = vld [vmem:[#allocation2 + $0x16f] sm:$0xff] }
  0xd6   : > { %v5053_v0 = vsel %vm745_vm2, %v725_v58, %v634_v47  ;;  %v335_v47 = vld [vmem:[#allocation2 + $0x167] sm:$0xff] }
  0xd7   : > { %517 = vrot.lane.b32.xlu1 %v379_v43, %s4590_s29  ;;  %659 = vrot.lane.b32.xlu0 %v414_v44, %s4591_s30 }
  0xd8   : > { %v492_v59 = vpop.permute.xlu0 %491 }
  0xd9   : > { %v636_v52 = vpop.permute.xlu1 %635  ;;  %v726_v1 = vsel %vm169_vm0, %v330_v61, %v492_v59  ;;  %v337_v61 = vld [vmem:[#allocation2 + $0x187] sm:$0xff] }
  0xda   : > { %v5062_v4 = vsel %vm745_vm2, %v726_v1, %v636_v52 }
  0xdb   : > { %661 = vrot.lane.b32.xlu1 %v415_v50, %s4591_s30  ;;  %934 = vrot.lane.b32.xlu0 %v5040_v51, %s4594_s9  ;;  %v4395_v12 = vpack.i.bf16 %v5062_v4, %v5053_v0 }
  0xdc   : > { %v494_v3 = vpop.permute.xlu0 %493 }
  0xdd   : > { %v5048_v60 = vpop.permute.xlu1 %4351  ;;  %v727_v11 = vsel %vm169_vm0, %v331_v9, %v494_v3 }
  0xdf   : > { %519 = vrot.lane.b32.xlu1 %v380_v56, %s4590_s29  ;;  %4391 = vrot.lane.b32.xlu0 %v4390_v57, %s4593_s8 }
  0xe0   : > { %v638_v13 = vpop.permute.xlu0 %637 }
  0xe1   : > { %v5056_v2 = vpop.permute.xlu1 %4356  ;;  %v5073_v15 = vsel %vm745_vm2, %v727_v11, %v638_v13 }
  0xe3   : > { %663 = vrot.lane.b32.xlu1 %v416_v62, %s4591_s30  ;;  %936 = vrot.lane.b32.xlu0 %v5053_v0, %s4594_s9 }
  0xe4   : > { %v642_v25 = vpop.permute.xlu0 %641 }
  0xe5   : > { %v496_v8 = vpop.permute.xlu1 %495 }
  0xe6   : > { %v728_v23 = vsel %vm169_vm0, %v332_v20, %v496_v8  ;;  %v338_v8 = vld [vmem:[#allocation2 + $0x18f] sm:$0xff] }
  0xe7   : > { %938 = vrot.lane.b32.xlu1 %v5062_v4, %s4594_s9  ;;  %521 = vrot.lane.b32.xlu0 %v381_v5, %s4590_s29 }
  0xe8   : > { %v644_v32 = vpop.permute.xlu0 %643 }
  0xe9   : > { %v640_v14 = vpop.permute.xlu1 %639 }
  0xea   : > { %v5082_v28 = vsel %vm745_vm2, %v728_v23, %v640_v14  ;;  %v313_v23 = vld [vmem:[#allocation2 + $0x7] sm:$0xff] }
  0xeb   : > { %4396 = vrot.lane.b32.xlu1 %v4395_v12, %s4593_s8  ;;  %665 = vrot.lane.b32.xlu0 %v417_v10, %s4591_s30  ;;  %v4400_v43 = vpack.i.bf16 %v5082_v28, %v5073_v15  ;;  %v339_v10 = vld [vmem:[#allocation2 + $0x1a7] sm:$0xff] }
  0xec   : > { %v506_v44 = vpop.permute.xlu0 %505 }
  0xed   : > { %v498_v19 = vpop.permute.xlu1 %497  ;;  %v733_v5 = vsel %vm169_vm0, %v337_v61, %v506_v44 }
  0xee   : > { %v729_v35 = vsel %vm169_vm0, %v333_v31, %v498_v19  ;;  %v340_v19 = vld [vmem:[#allocation2 + $0x1af] sm:$0xff] }
  0xef   : > { %940 = vrot.lane.b32.xlu1 %v5073_v15, %s4594_s9  ;;  %523 = vrot.lane.b32.xlu0 %v382_v16, %s4590_s29  ;;  %v5091_v41 = vsel %vm745_vm2, %v729_v35, %v642_v25 }
  0xf0   : > { %v650_v56 = vpop.permute.xlu0 %649 }
  0xf1   : > { %v500_v24 = vpop.permute.xlu1 %499  ;;  %v5124_v9 = vsel %vm745_vm2, %v733_v5, %v650_v56 }
  0xf2   : > { %v730_v42 = vsel %vm169_vm0, %v334_v40, %v500_v24  ;;  %v4359_v40 = vunpack.i.h.bf16 %v5056_v2 }
  0xf3   : > { %525 = vrot.lane.b32.xlu1 %v383_v21, %s4590_s29  ;;  %667 = vrot.lane.b32.xlu0 %v418_v22, %s4591_s30  ;;  %v5100_v48 = vsel %vm745_vm2, %v730_v42, %v644_v32  ;;  %v4353_v21 = vunpack.i.l.bf16 %v5048_v60  ;;  %v4354_v32 = vunpack.i.h.bf16 %v5048_v60 }
  0xf4   : > { %v508_v1 = vpop.permute.xlu0 %507 }
  0xf5   : > { %v502_v30 = vpop.permute.xlu1 %501  ;;  %v734_v11 = vsel %vm169_vm0, %v338_v8, %v508_v1 }
  0xf6   : > { %v731_v50 = vsel %vm169_vm0, %v335_v47, %v502_v30  ;;  %v709_v30 = vsel %vm169_vm0, %v313_v23, %v4353_v21 }
  0xf7   : > { %669 = vrot.lane.b32.xlu1 %v419_v27, %s4591_s30  ;;  %942 = vrot.lane.b32.xlu0 %v5082_v28, %s4594_s9  ;;  %v4358_v27 = vunpack.i.l.bf16 %v5056_v2 }
  0xf8   : > { %v652_v12 = vpop.permute.xlu0 %651 }
  0xf9   : > { %v646_v37 = vpop.permute.xlu1 %645  ;;  %v5133_v16 = vsel %vm745_vm2, %v734_v11, %v652_v12 }
  0xfa   : > { %v5108_v57 = vsel %vm745_vm2, %v731_v50, %v646_v37  ;;  %v746_v37 = vsel %vm745_vm2, %v709_v30, %v4358_v27 }
  0xfb   : > { %671 = vrot.lane.b32.xlu1 %v420_v33, %s4591_s30  ;;  %527 = vrot.lane.b32.xlu0 %v384_v34, %s4590_s29  ;;  %v314_v34 = vld [vmem:[#allocation2 + $0xf] sm:$0xff] }
  0xfc   : > { %v5139_v20 = vpop.permute.xlu0 %513 }
  0xfd   : > { %v504_v45 = vpop.permute.xlu1 %503 }
  0xfe   : > { %v732_v58 = vsel %vm169_vm0, %v336_v55, %v504_v45 }
  0xff   : > { %944 = vrot.lane.b32.xlu1 %v5091_v41, %s4594_s9  ;;  %4401 = vrot.lane.b32.xlu0 %v4400_v43, %s4593_s8  ;;  %v710_v43 = vsel %vm169_vm0, %v314_v34, %v4354_v32 }
 0x100   : > { %v747_v47 = vsel %vm745_vm2, %v710_v43, %v4359_v40  ;;  %v341_v40 = vld [vmem:[#allocation2 + $0x1c7] sm:$0xff] }
 0x101   : > { %v648_v52 = vpop.permute.xlu1 %647 }
 0x102   : > { %v5116_v62 = vsel %vm745_vm2, %v732_v58, %v648_v52 }
 0x103   : > { %850 = vrot.lane.b32.xlu1 %v5091_v41, %s4593_s8  ;;  %946 = vrot.lane.b32.xlu0 %v5100_v48, %s4594_s9 }
 0x105   : > { %v510_v59 = vpop.permute.xlu1 %509 }
 0x106   : > { %v735_v14 = vsel %vm169_vm0, %v339_v10, %v510_v59 }
 0x107   : > { %852 = vrot.lane.b32.xlu1 %v5100_v48, %s4593_s8  ;;  %948 = vrot.lane.b32.xlu0 %v5108_v57, %s4594_s9 }
 0x109   : > { %v654_v3 = vpop.permute.xlu1 %653 }
 0x10a   : > { %v5143_v22 = vsel %vm745_vm2, %v735_v14, %v654_v3 }
 0x10b   : > { %854 = vrot.lane.b32.xlu1 %v5108_v57, %s4593_s8  ;;  %950 = vrot.lane.b32.xlu0 %v5116_v62, %s4594_s9 }
 0x10d   : > { %v512_v13 = vpop.permute.xlu1 %511 }
 0x10e   : > { %v736_v24 = vsel %vm169_vm0, %v340_v19, %v512_v13 }
 0x10f   : > { %856 = vrot.lane.b32.xlu1 %v5116_v62, %s4593_s8  ;;  %952 = vrot.lane.b32.xlu0 %v5124_v9, %s4594_s9 }
 0x111   : > { %v656_v25 = vpop.permute.xlu1 %655 }
 0x112   : > { %v5153_v31 = vsel %vm745_vm2, %v736_v24, %v656_v25 }
 0x113   : > { %858 = vrot.lane.b32.xlu1 %v5124_v9, %s4593_s8  ;;  %954 = vrot.lane.b32.xlu0 %v5133_v16, %s4594_s9 }
 0x117   : > { %860 = vrot.lane.b32.xlu1 %v5133_v16, %s4593_s8  ;;  %956 = vrot.lane.b32.xlu0 %v5143_v22, %s4594_s9 }
 0x119   : > { %v4362_v33 = vpop.permute.xlu0 %4361 }
 0x11a   : > { %v4363_v35 = vunpack.i.l.bf16 %v4362_v33  ;;  %v4364_v60 = vunpack.i.h.bf16 %v4362_v33 }
 0x11b   : > { %862 = vrot.lane.b32.xlu1 %v5143_v22, %s4593_s8  ;;  %958 = vrot.lane.b32.xlu0 %v5153_v31, %s4594_s9 }
 0x11c   : > { %v1009_v42 = vsel %vm1008_vm3, %v746_v37, %v4363_v35  ;;  %v1010_v52 = vsel %vm1008_vm3, %v747_v47, %v4364_v60  ;;  %v737_v60 = vsel %vm169_vm0, %v341_v40, %v5139_v20 }
 0x11d   : > { %v913_v44 = vpop.permute.xlu0 %912 }
 0x11e   : > { %4038 = vmatprep.mubr.msk.f32.mxu0 %vm169_vm0, %v913_v44  ;;  %v1042_v45 = vsel %vm1041_vm4, %v1009_v42, %v913_v44 }
 0x11f   : > { %864 = vrot.lane.b32.xlu1 %v5153_v31, %s4593_s8  ;;  %1221 = vmatmul.mubr.f32.vlgmr.msra.gmra.mrb[0].mxu0 %v1042_v45 }
 0x121   : > { %v915_v50 = vpop.permute.xlu0 %914  ;;  %v917_v55 = vpop.permute.xlu1 %916 }
 0x122   : > { %4039 = vmatprep.mubr.msk.f32.mxu0 %vm169_vm0, %v915_v50  ;;  %v1043_v2 = vsel %vm1041_vm4, %v1010_v52, %v915_v50 }
 0x123   : > { %1226 = vmatmul.mubr.f32.gmra.mrb[2].mxu0 %v1043_v2  ;;  %v342_v2 = vld [vmem:[#allocation2 + $0x1cf] sm:$0xff] }
 0x124   : > { %4040 = vmatprep.mubr.msk.f32.mxu0 %vm169_vm0, %v917_v55 }
 0x125   : > { %v4367_v56 = vpop.permute.xlu0 %4366 }
 0x126   : > { %v4369_v58 = vunpack.i.h.bf16 %v4367_v56  ;;  %v4368_v59 = vunpack.i.l.bf16 %v4367_v56  ;;  %v343_v56 = vld [vmem:[#allocation2 + $0x1e7] sm:$0xff] }
 0x128   : > { %v1011_v61 = vsel %vm1008_vm3, %v4945_v38, %v4368_v59  ;;  %v1012_v5 = vsel %vm1008_vm3, %v4948_v39, %v4369_v58 }
 0x129   : > { %v919_v1 = vpop.permute.xlu0 %918  ;;  %v1044_v3 = vsel %vm1041_vm4, %v1011_v61, %v917_v55 }
 0x12a   : > { %1231 = vmatmul.mubr.f32.gmra.mrb[4].mxu0 %v1044_v3  ;;  %v1045_v11 = vsel %vm1041_vm4, %v1012_v5, %v919_v1 }
 0x12b   : > { %4041 = vmatprep.mubr.msk.f32.mxu0 %vm169_vm0, %v919_v1 }
 0x12d   : > { %v923_v8 = vpop.permute.xlu1 %922  ;;  %v4372_v10 = vpop.permute.xlu0 %4371 }
 0x12e   : > { %v4373_v12 = vunpack.i.l.bf16 %v4372_v10  ;;  %1236 = vmatmul.mubr.f32.gmra.mrb[6].mxu0 %v1045_v11  ;;  %v4374_v13 = vunpack.i.h.bf16 %v4372_v10 }
 0x130   : > { %v1013_v14 = vsel %vm1008_vm3, %v4955_v46, %v4373_v12  ;;  %v1014_v39 = vsel %vm1008_vm3, %v4965_v54, %v4374_v13 }
 0x131   : > { %v4377_v38 = vpop.permute.xlu1 %4376  ;;  %v921_v19 = vpop.permute.xlu0 %920  ;;  %v1047_v25 = vsel %vm1041_vm4, %v1014_v39, %v923_v8 }
 0x132   : > { %4042 = vmatprep.mubr.msk.f32.mxu0 %vm169_vm0, %v921_v19  ;;  %v1046_v21 = vsel %vm1041_vm4, %v1013_v14, %v921_v19  ;;  %v4378_v23 = vunpack.i.l.bf16 %v4377_v38  ;;  %v4379_v27 = vunpack.i.h.bf16 %v4377_v38  ;;  %v344_v14 = vld [vmem:[#allocation2 + $0x1ef] sm:$0xff] }
 0x133   : > { %1241 = vmatmul.mubr.f32.gmra.mrb[8].mxu0 %v1046_v21 }
 0x134   : > { %4043 = vmatprep.mubr.msk.f32.mxu0 %vm169_vm0, %v923_v8  ;;  %v1015_v46 = vsel %vm1008_vm3, %v4962_v53, %v4378_v23  ;;  %v1016_v54 = vsel %vm1008_vm3, %v4976_v63, %v4379_v27 }
 0x135   : > { %v927_v24 = vpop.permute.xlu0 %926  ;;  %v925_v30 = vpop.permute.xlu1 %924 }
 0x136   : > { %v1048_v33 = vsel %vm1041_vm4, %v1015_v46, %v925_v30  ;;  %v1049_v42 = vsel %vm1041_vm4, %v1016_v54, %v927_v24  ;;  %v345_v46 = vld [vmem:[#allocation2 + $0x207] sm:$0xff] }
 0x137   : > { %1246 = vmatmul.mubr.f32.gmra.mrb[10].mxu0 %v1047_v25 }
 0x138   : > { %4044 = vmatprep.mubr.msk.f32.mxu0 %vm169_vm0, %v925_v30 }
 0x139   : > { %v4382_v32 = vpop.permute.xlu0 %4381 }
 0x13a   : > { %v4383_v34 = vunpack.i.l.bf16 %v4382_v32  ;;  %v4384_v43 = vunpack.i.h.bf16 %v4382_v32 }
 0x13b   : > { %1251 = vmatmul.mubr.f32.gmra.mrb[12].mxu0 %v1048_v33 }
 0x13c   : > { %4045 = vmatprep.mubr.msk.f32.mxu0 %vm169_vm0, %v927_v24  ;;  %v1017_v53 = vsel %vm1008_vm3, %v4991_v7, %v4383_v34  ;;  %v1018_v7 = vsel %vm1008_vm3, %v4985_v6, %v4384_v43  ;;  %v346_v43 = vld [vmem:[#allocation2 + $0x20f] sm:$0xff] }
 0x13d   : > { %v931_v35 = vpop.permute.xlu1 %930  ;;  %v929_v37 = vpop.permute.xlu0 %928 }
 0x13e   : > { %v1050_v47 = vsel %vm1041_vm4, %v1017_v53, %v929_v37  ;;  %v1051_v55 = vsel %vm1041_vm4, %v1018_v7, %v931_v35 }
 0x13f   : > { %1256 = vmatmul.mubr.f32.gmra.mrb[14].mxu0 %v1049_v42 }
 0x140   : > { %4046 = vmatprep.mubr.msk.f32.mxu0 %vm169_vm0, %v929_v37 }
 0x141   : > { %v4387_v44 = vpop.permute.xlu1 %4386  ;;  %v658_v63 = vpop.permute.xlu0 %657 }
 0x142   : > { %v5202_v45 = vsel %vm745_vm2, %v737_v60, %v658_v63  ;;  %v4388_v50 = vunpack.i.l.bf16 %v4387_v44  ;;  %v4389_v59 = vunpack.i.h.bf16 %v4387_v44 }
 0x143   : > { %866 = vrot.lane.b32.xlu1 %v5202_v45, %s4593_s8  ;;  %960 = vrot.lane.b32.xlu0 %v5202_v45, %s4594_s9 }
 0x144   : > { %1261 = vmatmul.mubr.f32.gmra.mrb[16].mxu0 %v1050_v47  ;;  %v1019_v58 = vsel %vm1008_vm3, %v5001_v17, %v4388_v50  ;;  %v1020_v11 = vsel %vm1008_vm3, %v5004_v18, %v4389_v59  ;;  %v347_v47 = vld [vmem:[#allocation2 + $0x227] sm:$0xff] }
 0x145   : > { %v933_v52 = vpop.permute.xlu1 %932  ;;  %v516_v20 = vpop.permute.xlu0 %515  ;;  %4047 = vmatprep.mubr.msk.f32.mxu0 %vm169_vm0, %v931_v35 }
 0x146   : > { %v738_v61 = vsel %vm169_vm0, %v342_v2, %v516_v20  ;;  %v1052_v17 = vsel %vm1041_vm4, %v1019_v58, %v933_v52 }
 0x148   : > { %1266 = vmatmul.mubr.f32.gmra.mrb[18].mxu0 %v1051_v55 }
 0x149   : > { %v518_v1 = vpop.permute.xlu1 %517  ;;  %v660_v3 = vpop.permute.xlu0 %659  ;;  %4048 = vmatprep.mubr.msk.f32.mxu0 %vm169_vm0, %v933_v52 }
 0x14a   : > { %v5218_v6 = vsel %vm745_vm2, %v738_v61, %v660_v3  ;;  %v739_v5 = vsel %vm169_vm0, %v343_v56, %v518_v1  ;;  %v348_v61 = vld [vmem:[#allocation2 + $0x22f] sm:$0xff] }
 0x14b   : > { %868 = vrot.lane.b32.xlu1 %v5218_v6, %s4593_s8  ;;  %962 = vrot.lane.b32.xlu0 %v5218_v6, %s4594_s9 }
 0x14c   : > { %1271 = vmatmul.mubr.f32.gmra.mrb[20].mxu0 %v1052_v17 }
 0x14d   : > { %v662_v8 = vpop.permute.xlu1 %661  ;;  %v935_v10 = vpop.permute.xlu0 %934 }
 0x14e   : > { %v5229_v12 = vsel %vm745_vm2, %v739_v5, %v662_v8  ;;  %4049 = vmatprep.mubr.msk.f32.mxu0 %vm169_vm0, %v935_v10  ;;  %v1053_v13 = vsel %vm1041_vm4, %v1020_v11, %v935_v10 }
 0x14f   : > { %870 = vrot.lane.b32.xlu1 %v5229_v12, %s4593_s8  ;;  %964 = vrot.lane.b32.xlu0 %v5229_v12, %s4594_s9 }
 0x150   : > { %1276 = vmatmul.mubr.f32.gmra.mrb[22].mxu0 %v1053_v13 }
 0x151   : > { %v520_v38 = vpop.permute.xlu1 %519  ;;  %v4392_v19 = vpop.permute.xlu0 %4391 }
 0x152   : > { %v4393_v21 = vunpack.i.l.bf16 %v4392_v19  ;;  %v740_v18 = vsel %vm169_vm0, %v344_v14, %v520_v38  ;;  %v4394_v39 = vunpack.i.h.bf16 %v4392_v19 }
 0x154   : > { %v1021_v23 = vsel %vm1008_vm3, %v5015_v26, %v4393_v21  ;;  %v1022_v33 = vsel %vm1008_vm3, %v5019_v29, %v4394_v39 }
 0x155   : > { %v664_v24 = vpop.permute.xlu1 %663  ;;  %v937_v25 = vpop.permute.xlu0 %936 }
 0x156   : > { %v5241_v27 = vsel %vm745_vm2, %v740_v18, %v664_v24  ;;  %4050 = vmatprep.mubr.msk.f32.mxu0 %vm169_vm0, %v937_v25  ;;  %v1054_v30 = vsel %vm1041_vm4, %v1021_v23, %v937_v25 }
 0x157   : > { %872 = vrot.lane.b32.xlu1 %v5241_v27, %s4593_s8  ;;  %966 = vrot.lane.b32.xlu0 %v5241_v27, %s4594_s9 }
 0x158   : > { %1281 = vmatmul.mubr.f32.gmra.mrb[24].mxu0 %v1054_v30 }
 0x159   : > { %v939_v32 = vpop.permute.xlu1 %938  ;;  %v522_v26 = vpop.permute.xlu0 %521 }
 0x15a   : > { %4051 = vmatprep.mubr.msk.f32.mxu0 %vm169_vm0, %v939_v32  ;;  %v1055_v54 = vsel %vm1041_vm4, %v1022_v33, %v939_v32  ;;  %v741_v34 = vsel %vm169_vm0, %v345_v46, %v522_v26 }
 0x15c   : > { %1286 = vmatmul.mubr.f32.gmra.mrb[26].mxu0 %v1055_v54 }
 0x15d   : > { %v4397_v35 = vpop.permute.xlu1 %4396  ;;  %v666_v37 = vpop.permute.xlu0 %665 }
 0x15e   : > { %v4398_v40 = vunpack.i.l.bf16 %v4397_v35  ;;  %v778_v42 = vsel %vm745_vm2, %v741_v34, %v666_v37  ;;  %v4399_v50 = vunpack.i.h.bf16 %v4397_v35 }
 0x15f   : > { %874 = vrot.lane.b32.xlu1 %v778_v42, %s4593_s8  ;;  %968 = vrot.lane.b32.xlu0 %v778_v42, %s4594_s9 }
 0x160   : > { %v1023_v29 = vsel %vm1008_vm3, %v5031_v36, %v4398_v40  ;;  %v1024_v56 = vsel %vm1008_vm3, %v5040_v51, %v4399_v50 }
 0x161   : > { %v941_v53 = vpop.permute.xlu1 %940  ;;  %v524_v60 = vpop.permute.xlu0 %523 }
 0x162   : > { %4052 = vmatprep.mubr.msk.f32.mxu0 %vm169_vm0, %v941_v53  ;;  %v1056_v44 = vsel %vm1041_vm4, %v1023_v29, %v941_v53  ;;  %v742_v63 = vsel %vm169_vm0, %v346_v43, %v524_v60 }
 0x163   : > { %1291 = vmatmul.mubr.f32.gmra.mrb[28].mxu0 %v1056_v44 }
 0x165   : > { %v526_v7 = vpop.permute.xlu1 %525  ;;  %v668_v52 = vpop.permute.xlu0 %667 }
 0x166   : > { %v779_v20 = vsel %vm745_vm2, %v742_v63, %v668_v52  ;;  %v743_v2 = vsel %vm169_vm0, %v347_v47, %v526_v7 }
 0x167   : > { %876 = vrot.lane.b32.xlu1 %v779_v20, %s4593_s8  ;;  %970 = vrot.lane.b32.xlu0 %v779_v20, %s4594_s9 }
 0x169   : > { %v670_v36 = vpop.permute.xlu1 %669  ;;  %v943_v55 = vpop.permute.xlu0 %942 }
 0x16a   : > { %v780_v58 = vsel %vm745_vm2, %v743_v2, %v670_v36  ;;  %4053 = vmatprep.mubr.msk.f32.mxu0 %vm169_vm0, %v943_v55  ;;  %v1057_v59 = vsel %vm1041_vm4, %v1024_v56, %v943_v55  ;;  %v1481_v56 = vld [vmem:[#allocation2 + $0x8] sm:$0xff] }
 0x16b   : > { %972 = vrot.lane.b32.xlu0 %v780_v58, %s4594_s9  ;;  %1296 = vmatmul.mubr.f32.gmra.mrb[30].mxu0 %v1057_v59  ;;  %v1482_v58 = vld [vmem:[#allocation2 + $0x10] sm:$0xff] }
 0x16c   : > { %v4405_v59 = vpack.i.bf16 %v1482_v58, %v1481_v56 }
 0x16d   : > { %v672_v1 = vpop.permute.xlu1 %671  ;;  %v528_v3 = vpop.permute.xlu0 %527 }
 0x16e   : > { %v744_v5 = vsel %vm169_vm0, %v348_v61, %v528_v3  ;;  %v1517_v61 = vld [vmem:[#allocation2 + $0x9] sm:$0xff] }
 0x16f   : > { %v781_v17 = vsel %vm745_vm2, %v744_v5, %v672_v1  ;;  %v1518_v1 = vld [vmem:[#allocation2 + $0x11] sm:$0xff] }
 0x170   : > { %974 = vrot.lane.b32.xlu0 %v781_v17, %s4594_s9  ;;  %v4410_v3 = vpack.i.bf16 %v1518_v1, %v1517_v61 }
 0x171   : > { %v945_v8 = vpop.permute.xlu1 %944  ;;  %v4402_v51 = vpop.permute.xlu0 %4401 }
 0x172   : > { %v4404_v10 = vunpack.i.h.bf16 %v4402_v51  ;;  %v4403_v11 = vunpack.i.l.bf16 %v4402_v51  ;;  %4054 = vmatprep.mubr.msk.f32.mxu0 %vm169_vm0, %v945_v8 }
 0x174   : > { %v1025_v13 = vsel %vm1008_vm3, %v5053_v0, %v4403_v11  ;;  %v1026_v14 = vsel %vm1008_vm3, %v5062_v4, %v4404_v10  ;;  %4406 = vrot.lane.b32.xlu0 %v4405_v59, %s4590_s29 }
 0x175   : > { %v851_v38 = vpop.permute.xlu1 %850  ;;  %v947_v19 = vpop.permute.xlu0 %946  ;;  %v1058_v21 = vsel %vm1041_vm4, %v1025_v13, %v945_v8 }
 0x176   : > { %1301 = vmatmul.mubr.f32.gmra.mrb[32].mxu0 %v1058_v21  ;;  %4055 = vmatprep.mubr.msk.f32.mxu1 %vm169_vm0, %v947_v19  ;;  %v1059_v18 = vsel %vm1041_vm4, %v1026_v14, %v947_v19  ;;  %v1027_v23 = vsel %vm1008_vm3, %v5073_v15, %v851_v38 }
 0x177   : > { %1306 = vmatmul.mubr.f32.vlgmr.msra.gmra.mrb[0].mxu1 %v1059_v18 }
 0x178   : > { %4411 = vrot.lane.b32.xlu0 %v4410_v3, %s4591_s30 }
 0x179   : > { %v853_v39 = vpop.permute.xlu1 %852  ;;  %v949_v24 = vpop.permute.xlu0 %948 }
 0x17a   : > { %4056 = vmatprep.mubr.msk.f32.mxu1 %vm169_vm0, %v949_v24  ;;  %v1060_v0 = vsel %vm1041_vm4, %v1027_v23, %v949_v24  ;;  %v1028_v4 = vsel %vm1008_vm3, %v5082_v28, %v853_v39 }
 0x17b   : > { %1311 = vmatmul.mubr.f32.gmra.mrb[2].mxu1 %v1060_v0 }
 0x17d   : > { %v855_v25 = vpop.permute.xlu1 %854  ;;  %v951_v30 = vpop.permute.xlu0 %950 }
 0x17e   : > { %4057 = vmatprep.mubr.msk.f32.mxu1 %vm169_vm0, %v951_v30  ;;  %v1061_v46 = vsel %vm1041_vm4, %v1028_v4, %v951_v30  ;;  %v1029_v15 = vsel %vm1008_vm3, %v5091_v41, %v855_v25 }
 0x17f   : > { %1316 = vmatmul.mubr.f32.gmra.mrb[4].mxu1 %v1061_v46 }
 0x181   : > { %v857_v32 = vpop.permute.xlu1 %856  ;;  %v953_v26 = vpop.permute.xlu0 %952 }
 0x182   : > { %4058 = vmatprep.mubr.msk.f32.mxu1 %vm169_vm0, %v953_v26  ;;  %v1062_v33 = vsel %vm1041_vm4, %v1029_v15, %v953_v26  ;;  %v1030_v28 = vsel %vm1008_vm3, %v5100_v48, %v857_v32 }
 0x183   : > { %1321 = vmatmul.mubr.f32.gmra.mrb[6].mxu1 %v1062_v33 }
 0x185   : > { %v859_v54 = vpop.permute.xlu1 %858  ;;  %v955_v34 = vpop.permute.xlu0 %954 }
 0x186   : > { %4059 = vmatprep.mubr.msk.f32.mxu1 %vm169_vm0, %v955_v34  ;;  %v1063_v35 = vsel %vm1041_vm4, %v1030_v28, %v955_v34  ;;  %v1031_v41 = vsel %vm1008_vm3, %v5108_v57, %v859_v54 }
 0x187   : > { %1326 = vmatmul.mubr.f32.gmra.mrb[8].mxu1 %v1063_v35 }
 0x189   : > { %v957_v37 = vpop.permute.xlu0 %956  ;;  %v861_v40 = vpop.permute.xlu1 %860 }
 0x18a   : > { %4060 = vmatprep.mubr.msk.f32.mxu1 %vm169_vm0, %v957_v37  ;;  %v1064_v42 = vsel %vm1041_vm4, %v1031_v41, %v957_v37  ;;  %v1032_v48 = vsel %vm1008_vm3, %v5116_v62, %v861_v40 }
 0x18b   : > { %1331 = vmatmul.mubr.f32.gmra.mrb[10].mxu1 %v1064_v42 }
 0x18d   : > { %v959_v43 = vpop.permute.xlu0 %958  ;;  %v863_v53 = vpop.permute.xlu1 %862 }
 0x18e   : > { %4061 = vmatprep.mubr.msk.f32.mxu1 %vm169_vm0, %v959_v43  ;;  %v1065_v29 = vsel %vm1041_vm4, %v1032_v48, %v959_v43  ;;  %v1033_v57 = vsel %vm1008_vm3, %v5124_v9, %v863_v53 }
 0x18f   : > { %1336 = vmatmul.mubr.f32.gmra.mrb[12].mxu1 %v1065_v29 }
 0x191   : > { %v865_v63 = vpop.permute.xlu1 %864 }
 0x192   : > { %v1034_v62 = vsel %vm1008_vm3, %v5133_v16, %v865_v63 }
 0x1b5   : > { %v961_v60 = vpop.permute.xlu0 %960  ;;  %v867_v50 = vpop.permute.xlu1 %866 }
 0x1b6   : > { %4062 = vmatprep.mubr.msk.f32.mxu1 %vm169_vm0, %v961_v60  ;;  %v1066_v44 = vsel %vm1041_vm4, %v1033_v57, %v961_v60  ;;  %v1035_v9 = vsel %vm1008_vm3, %v5143_v22, %v867_v50 }
 0x1b7   : > { %1341 = vmatmul.mubr.f32.gmra.mrb[14].mxu1 %v1066_v44 }
 0x1bd   : > { %v963_v47 = vpop.permute.xlu0 %962  ;;  %v869_v2 = vpop.permute.xlu1 %868 }
 0x1be   : > { %4063 = vmatprep.mubr.msk.f32.mxu1 %vm169_vm0, %v963_v47  ;;  %v1067_v7 = vsel %vm1041_vm4, %v1034_v62, %v963_v47  ;;  %v1036_v16 = vsel %vm1008_vm3, %v5153_v31, %v869_v2 }
 0x1bf   : > { %1346 = vmatmul.mubr.f32.gmra.mrb[16].mxu1 %v1067_v7 }
 0x1c1   : > { %v965_v52 = vpop.permute.xlu0 %964  ;;  %v871_v22 = vpop.permute.xlu1 %870 }
 0x1c2   : > { %4064 = vmatprep.mubr.msk.f32.mxu1 %vm169_vm0, %v965_v52  ;;  %v1068_v20 = vsel %vm1041_vm4, %v1035_v9, %v965_v52  ;;  %v1037_v5 = vsel %vm1008_vm3, %v5202_v45, %v871_v22 }
 0x1c3   : > { %1351 = vmatmul.mubr.f32.gmra.mrb[18].mxu1 %v1068_v20 }
 0x1c9   : > { %v967_v36 = vpop.permute.xlu0 %966  ;;  %v873_v8 = vpop.permute.xlu1 %872 }
 0x1ca   : > { %4065 = vmatprep.mubr.msk.f32.mxu1 %vm169_vm0, %v967_v36  ;;  %v1069_v55 = vsel %vm1041_vm4, %v1036_v16, %v967_v36  ;;  %v1038_v51 = vsel %vm1008_vm3, %v5218_v6, %v873_v8 }
 0x1cb   : > { %1356 = vmatmul.mubr.f32.gmra.mrb[20].mxu1 %v1069_v55 }
 0x1d1   : > { %v969_v17 = vpop.permute.xlu0 %968  ;;  %v875_v11 = vpop.permute.xlu1 %874 }
 0x1d2   : > { %4066 = vmatprep.mubr.msk.f32.mxu1 %vm169_vm0, %v969_v17  ;;  %v1070_v31 = vsel %vm1041_vm4, %v1037_v5, %v969_v17  ;;  %v1039_v45 = vsel %vm1008_vm3, %v5229_v12, %v875_v11 }
 0x1d3   : > { %1361 = vmatmul.mubr.f32.gmra.mrb[22].mxu1 %v1070_v31 }
 0x1d9   : > { %v971_v10 = vpop.permute.xlu0 %970  ;;  %v877_v19 = vpop.permute.xlu1 %876 }
 0x1da   : > { %4067 = vmatprep.mubr.msk.f32.mxu1 %vm169_vm0, %v971_v10  ;;  %v1071_v13 = vsel %vm1041_vm4, %v1038_v51, %v971_v10  ;;  %v1040_v6 = vsel %vm1008_vm3, %v5241_v27, %v877_v19 }
 0x1db   : > { %1366 = vmatmul.mubr.f32.gmra.mrb[24].mxu1 %v1071_v13 }
 0x1dd   : > { %v973_v14 = vpop.permute.xlu0 %972 }
 0x1de   : > { %4068 = vmatprep.mubr.msk.f32.mxu1 %vm169_vm0, %v973_v14  ;;  %v1072_v38 = vsel %vm1041_vm4, %v1039_v45, %v973_v14 }
 0x1df   : > { %1371 = vmatmul.mubr.f32.gmra.mrb[26].mxu1 %v1072_v38 }
 0x1e2   : > { %v975_v21 = vpop.permute.xlu0 %974 }
 0x1e3   : > { %4069 = vmatprep.mubr.msk.f32.mxu1 %vm169_vm0, %v975_v21  ;;  %v1073_v18 = vsel %vm1041_vm4, %v1040_v6, %v975_v21 }
 0x1e4   : > { %1376 = vmatmul.mubr.f32.gmra.mrb[28].mxu1 %v1073_v18 }
 0x1f2   : > { %v1222_v23 = vpop.f32.mrb[0].mxu0 }
 0x1f3   : > { %v1381_v39 = vmax.f32 %v1222_v23, 0.0  ;;  %v1224_v24 = vpop.f32.mrb[1].mxu0 }
 0x1f5   : > { %1413 = vst.msk [vmem:[#allocation2 + $0x28] sm:$0xff] %vm169_vm0, %v1381_v39 }
 0x1f6   : > { %v1227_v12 = vpop.f32.mrb[2].mxu0 }
 0x1f7   : > { %v1382_v0 = vmax.f32 %v1227_v12, 0.0  ;;  %v1229_v4 = vpop.f32.mrb[3].mxu0 }
 0x1f9   : > { %1414 = vst.msk [vmem:[#allocation2 + $0x30] sm:$0xff] %vm169_vm0, %v1382_v0 }
 0x1fc   : > { %v1483_v27 = vld [vmem:[#allocation2 + $0x28] sm:$0xff] }
 0x1fd   : > { %v1232_v25 = vpop.f32.mrb[4].mxu0 }
 0x1fe   : > { %v1383_v30 = vmax.f32 %v1232_v25, 0.0  ;;  %v1234_v46 = vpop.f32.mrb[5].mxu0 }
 0x200   : > { %1415 = vst.msk [vmem:[#allocation2 + $0x48] sm:$0xff] %vm169_vm0, %v1383_v30  ;;  %v1484_v15 = vld [vmem:[#allocation2 + $0x30] sm:$0xff] }
 0x201   : > { %v1237_v32 = vpop.f32.mrb[6].mxu0  ;;  %v4415_v26 = vpack.i.bf16 %v1484_v15, %v1483_v27  ;;  %v1519_v54 = vld [vmem:[#allocation2 + $0x29] sm:$0xff]  ;;  %v1520_v34 = vld [vmem:[#allocation2 + $0x31] sm:$0xff] }
 0x202   : > { %v1384_v33 = vmax.f32 %v1237_v32, 0.0  ;;  %v1239_v28 = vpop.f32.mrb[7].mxu0  ;;  %v4420_v35 = vpack.i.bf16 %v1520_v34, %v1519_v54 }
 0x203   : > { %4416 = vrot.lane.b32.xlu1 %v4415_v26, %s4590_s29 }
 0x204   : > { %1416 = vst.msk [vmem:[#allocation2 + $0x50] sm:$0xff] %vm169_vm0, %v1384_v33 }
 0x206   : > { %v1242_v41 = vpop.f32.mrb[8].mxu0 }
 0x207   : > { %v1385_v37 = vmax.f32 %v1242_v41, 0.0  ;;  %4421 = vrot.lane.b32.xlu1 %v4420_v35, %s4591_s30  ;;  %v1244_v40 = vpop.f32.mrb[9].mxu0  ;;  %v1485_v33 = vld [vmem:[#allocation2 + $0x48] sm:$0xff] }
 0x209   : > { %1417 = vst.msk [vmem:[#allocation2 + $0x68] sm:$0xff] %vm169_vm0, %v1385_v37 }
 0x20a   : > { %v1247_v42 = vpop.f32.mrb[10].mxu0 }
 0x20b   : > { %v1386_v48 = vmax.f32 %v1247_v42, 0.0  ;;  %v1249_v43 = vpop.f32.mrb[11].mxu0  ;;  %v1521_v41 = vld [vmem:[#allocation2 + $0x49] sm:$0xff] }
 0x20c   : > { %v1522_v43 = vld [vmem:[#allocation2 + $0x51] sm:$0xff] }
 0x20d   : > { %1418 = vst.msk [vmem:[#allocation2 + $0x70] sm:$0xff] %vm169_vm0, %v1386_v48 }
 0x20e   : > { %v1252_v29 = vpop.f32.mrb[12].mxu0 }
 0x20f   : > { %v1387_v53 = vmax.f32 %v1252_v29, 0.0  ;;  %v1254_v57 = vpop.f32.mrb[13].mxu0 }
 0x211   : > { %1419 = vst.msk [vmem:[#allocation2 + $0x88] sm:$0xff] %vm169_vm0, %v1387_v53  ;;  %v1486_v53 = vld [vmem:[#allocation2 + $0x50] sm:$0xff] }
 0x212   : > { %v1257_v60 = vpop.f32.mrb[14].mxu0 }
 0x213   : > { %v1388_v44 = vmax.f32 %v1257_v60, 0.0  ;;  %v1259_v63 = vpop.f32.mrb[15].mxu0  ;;  %v1487_v60 = vld [vmem:[#allocation2 + $0x68] sm:$0xff] }
 0x214   : > { %v1488_v63 = vld [vmem:[#allocation2 + $0x70] sm:$0xff] }
 0x215   : > { %1420 = vst.msk [vmem:[#allocation2 + $0x90] sm:$0xff] %vm169_vm0, %v1388_v44 }
 0x217   : > { %v1262_v62 = vpop.f32.mrb[16].mxu0 }
 0x218   : > { %v1389_v47 = vmax.f32 %v1262_v62, 0.0  ;;  %v1264_v50 = vpop.f32.mrb[17].mxu0 }
 0x219   : > { %v1523_v50 = vld [vmem:[#allocation2 + $0x69] sm:$0xff] }
 0x21a   : > { %1421 = vst.msk [vmem:[#allocation2 + $0xa8] sm:$0xff] %vm169_vm0, %v1389_v47 }
 0x21b   : > { %v1267_v7 = vpop.f32.mrb[18].mxu0 }
 0x21c   : > { %v1390_v9 = vmax.f32 %v1267_v7, 0.0  ;;  %v1269_v52 = vpop.f32.mrb[19].mxu0  ;;  %v1489_v7 = vld [vmem:[#allocation2 + $0x88] sm:$0xff] }
 0x21e   : > { %1422 = vst.msk [vmem:[#allocation2 + $0xb0] sm:$0xff] %vm169_vm0, %v1390_v9  ;;  %v1524_v9 = vld [vmem:[#allocation2 + $0x71] sm:$0xff] }
 0x21f   : > { %v1272_v20 = vpop.f32.mrb[20].mxu0 }
 0x220   : > { %v1391_v2 = vmax.f32 %v1272_v20, 0.0  ;;  %v1274_v16 = vpop.f32.mrb[21].mxu0 }
 0x222   : > { %1423 = vst.msk [vmem:[#allocation2 + $0xc8] sm:$0xff] %vm169_vm0, %v1391_v2  ;;  %v1525_v2 = vld [vmem:[#allocation2 + $0x89] sm:$0xff] }
 0x223   : > { %v1277_v36 = vpop.f32.mrb[22].mxu0 }
 0x224   : > { %v1392_v55 = vmax.f32 %v1277_v36, 0.0  ;;  %v1279_v56 = vpop.f32.mrb[23].mxu0  ;;  %v1526_v36 = vld [vmem:[#allocation2 + $0x91] sm:$0xff] }
 0x226   : > { %1424 = vst.msk [vmem:[#allocation2 + $0xd0] sm:$0xff] %vm169_vm0, %v1392_v55  ;;  %v1490_v55 = vld [vmem:[#allocation2 + $0x90] sm:$0xff] }
 0x22b   : > { %v1282_v58 = vpop.f32.mrb[24].mxu0 }
 0x22c   : > { %v1393_v59 = vmax.f32 %v1282_v58, 0.0  ;;  %v1284_v22 = vpop.f32.mrb[25].mxu0 }
 0x22d   : > { %v1491_v22 = vld [vmem:[#allocation2 + $0xa8] sm:$0xff] }
 0x22e   : > { %1425 = vst.msk [vmem:[#allocation2 + $0xe8] sm:$0xff] %vm169_vm0, %v1393_v59 }
 0x22f   : > { %v1287_v61 = vpop.f32.mrb[26].mxu0 }
 0x230   : > { %v1394_v1 = vmax.f32 %v1287_v61, 0.0  ;;  %v1289_v3 = vpop.f32.mrb[27].mxu0  ;;  %v1492_v61 = vld [vmem:[#allocation2 + $0xb0] sm:$0xff] }
 0x232   : > { %1426 = vst.msk [vmem:[#allocation2 + $0xf0] sm:$0xff] %vm169_vm0, %v1394_v1 }
 0x236   : > { %v1292_v5 = vpop.f32.mrb[28].mxu0 }
 0x237   : > { %v1395_v17 = vmax.f32 %v1292_v5, 0.0  ;;  %v1294_v31 = vpop.f32.mrb[29].mxu0 }
 0x239   : > { %1427 = vst.msk [vmem:[#allocation2 + $0x108] sm:$0xff] %vm169_vm0, %v1395_v17 }
 0x23e   : > { %v1297_v8 = vpop.f32.mrb[30].mxu0 }
 0x23f   : > { %v1396_v51 = vmax.f32 %v1297_v8, 0.0  ;;  %v1299_v10 = vpop.f32.mrb[31].mxu0 }
 0x241   : > { %1428 = vst.msk [vmem:[#allocation2 + $0x110] sm:$0xff] %vm169_vm0, %v1396_v51 }
 0x249   : > { %v1302_v11 = vpop.f32.mrb[32].mxu0 }
 0x24a   : > { %v1397_v13 = vmax.f32 %v1302_v11, 0.0  ;;  %v1304_v45 = vpop.f32.mrb[33].mxu0  ;;  %v1307_v14 = vpop.f32.mrb[0].mxu1 }
 0x24b   : > { %v1398_v38 = vmax.f32 %v1307_v14, 0.0  ;;  %v1309_v19 = vpop.f32.mrb[1].mxu1 }
 0x24c   : > { %1429 = vst.msk [vmem:[#allocation2 + $0x128] sm:$0xff] %vm169_vm0, %v1397_v13 }
 0x24d   : > { %1430 = vst.msk [vmem:[#allocation2 + $0x130] sm:$0xff] %vm169_vm0, %v1398_v38 }
 0x24e   : > { %v1312_v6 = vpop.f32.mrb[2].mxu1 }
 0x24f   : > { %v1399_v21 = vmax.f32 %v1312_v6, 0.0  ;;  %v1314_v18 = vpop.f32.mrb[3].mxu1  ;;  %v1493_v6 = vld [vmem:[#allocation2 + $0xc8] sm:$0xff] }
 0x250   : > { %v4071_v18 = vld [vmem:[%s6695_s1 + $0x98] sm:$0xff] }
 0x251   : > { %1431 = vst.msk [vmem:[#allocation2 + $0x148] sm:$0xff] %vm169_vm0, %v1399_v21  ;;  %v4070_v21 = vld [vmem:[%s6695_s1 + $0x90] sm:$0xff] }
 0x252   : > { %v1317_v23 = vpop.f32.mrb[4].mxu1 }
 0x253   : > { %v1400_v39 = vmax.f32 %v1317_v23, 0.0  ;;  %v1319_v24 = vpop.f32.mrb[5].mxu1 }
 0x254   : > { %v1500_v12 = vld [vmem:[#allocation2 + $0x130] sm:$0xff] }
 0x255   : > { %1432 = vst.msk [vmem:[#allocation2 + $0x150] sm:$0xff] %vm169_vm0, %v1400_v39  ;;  %1627 = vrot.lane.b32.xlu0 %v1500_v12, %s4590_s29  ;;  %v1536_v30 = vld [vmem:[#allocation2 + $0x131] sm:$0xff]  ;;  %v4218_v39 = vpack.c.bf16 %v4071_v18, %v4070_v21  ;;  %v1533_v18 = vld [vmem:[#allocation2 + $0x109] sm:$0xff] }
 0x256   : > { %v1322_v0 = vpop.f32.mrb[6].mxu1 }
 0x257   : > { %v1401_v4 = vmax.f32 %v1322_v0, 0.0  ;;  %v1324_v25 = vpop.f32.mrb[7].mxu1  ;;  %v1527_v0 = vld [vmem:[#allocation2 + $0xa9] sm:$0xff]  ;;  %4219 = vmatpush1.bf16.msra.mxu1 %v4218_v39 }
 0x258   : > { %v1501_v46 = vld [vmem:[#allocation2 + $0x148] sm:$0xff]  ;;  %v4072_v25 = vld [vmem:[%s6695_s1 + $0xa0] sm:$0xff]  ;;  %4220 = vmatprep.subr.bf16.mxu1 %v4592_v49 }
 0x259   : > { %1433 = vst.msk [vmem:[#allocation2 + $0x168] sm:$0xff] %vm169_vm0, %v1401_v4  ;;  %1771 = vrot.lane.b32.xlu0 %v1536_v30, %s4591_s30  ;;  %1629 = vrot.lane.b32.xlu1 %v1501_v46, %s4590_s29  ;;  %v4073_v30 = vld [vmem:[%s6695_s1 + $0xa8] sm:$0xff] }
 0x25a   : > { %v1327_v27 = vpop.f32.mrb[8].mxu1  ;;  %v4221_v46 = vpack.c.bf16 %v4073_v30, %v4072_v25  ;;  %v1447_v39 = vld [vmem:[#allocation2 + $0x27] sm:$0xff] }
 0x25b   : > { %v1402_v15 = vmax.f32 %v1327_v27, 0.0  ;;  %v1329_v32 = vpop.f32.mrb[9].mxu1  ;;  %v1528_v27 = vld [vmem:[#allocation2 + $0xb1] sm:$0xff] }
 0x25c   : > { %v1537_v26 = vld [vmem:[#allocation2 + $0x149] sm:$0xff]  ;;  %v1538_v48 = vld [vmem:[#allocation2 + $0x151] sm:$0xff]  ;;  %4222 = vmatpush1.bf16.msra.mxu1 %v4221_v46 }
 0x25d   : > { %1434 = vst.msk [vmem:[#allocation2 + $0x170] sm:$0xff] %vm169_vm0, %v1402_v15  ;;  %1773 = vrot.lane.b32.xlu1 %v1537_v26, %s4591_s30  ;;  %1597 = vrot.lane.b32.xlu0 %v1485_v33, %s4590_s29  ;;  %v1502_v35 = vld [vmem:[#allocation2 + $0x150] sm:$0xff]  ;;  %v4075_v26 = vld [vmem:[%s6695_s1 + $0xb8] sm:$0xff] }
 0x25e   : > { %v1332_v28 = vpop.f32.mrb[10].mxu1  ;;  %v4074_v32 = vld [vmem:[%s6695_s1 + $0xb0] sm:$0xff]  ;;  %4223 = vmatprep.subr.bf16.mxu1 %v4592_v49 }
 0x25f   : > { %v1403_v54 = vmax.f32 %v1332_v28, 0.0  ;;  %v1334_v34 = vpop.f32.mrb[11].mxu1  ;;  %v4224_v28 = vpack.c.bf16 %v4075_v26, %v4074_v32 }
 0x260   : > { %v1503_v29 = vld [vmem:[#allocation2 + $0x168] sm:$0xff] }
 0x261   : > { %1435 = vst.msk [vmem:[#allocation2 + $0x188] sm:$0xff] %vm169_vm0, %v1403_v54  ;;  %1631 = vrot.lane.b32.xlu1 %v1502_v35, %s4590_s29  ;;  %1741 = vrot.lane.b32.xlu0 %v1521_v41, %s4591_s30  ;;  %v1529_v41 = vld [vmem:[#allocation2 + $0xc9] sm:$0xff] }
 0x262   : > { %v1337_v37 = vpop.f32.mrb[12].mxu1  ;;  %4225 = vmatpush1.bf16.msra.mxu1 %v4224_v28 }
 0x263   : > { %v1404_v40 = vmax.f32 %v1337_v37, 0.0  ;;  %v1339_v42 = vpop.f32.mrb[13].mxu1  ;;  %v4076_v37 = vld [vmem:[%s6695_s1 + $0xc0] sm:$0xff]  ;;  %4226 = vmatprep.subr.bf16.mxu1 %v4592_v49 }
 0x264   : > { %v1539_v57 = vld [vmem:[#allocation2 + $0x169] sm:$0xff]  ;;  %v1540_v62 = vld [vmem:[#allocation2 + $0x171] sm:$0xff] }
 0x265   : > { %1436 = vst.msk [vmem:[#allocation2 + $0x190] sm:$0xff] %vm169_vm0, %v1404_v40  ;;  %1775 = vrot.lane.b32.xlu1 %v1538_v48, %s4591_s30  ;;  %1743 = vrot.lane.b32.xlu0 %v1522_v43, %s4591_s30  ;;  %v1504_v44 = vld [vmem:[#allocation2 + $0x170] sm:$0xff]  ;;  %v4077_v40 = vld [vmem:[%s6695_s1 + $0xc8] sm:$0xff] }
 0x266   : > { %v4227_v48 = vpack.c.bf16 %v4077_v40, %v4076_v37 }
 0x268   : > { %v1505_v47 = vld [vmem:[#allocation2 + $0x188] sm:$0xff]  ;;  %4228 = vmatpush1.bf16.msra.mxu1 %v4227_v48 }
 0x269   : > { %1633 = vrot.lane.b32.xlu0 %v1503_v29, %s4590_s29  ;;  %1599 = vrot.lane.b32.xlu1 %v1486_v53, %s4590_s29  ;;  %v1530_v53 = vld [vmem:[#allocation2 + $0xd1] sm:$0xff] }
 0x26a   : > { %4229 = vmatprep.subr.bf16.mxu1 %v4592_v49 }
 0x26c   : > { %v1541_v52 = vld [vmem:[#allocation2 + $0x189] sm:$0xff]  ;;  %v1542_v16 = vld [vmem:[#allocation2 + $0x191] sm:$0xff] }
 0x26d   : > { %1777 = vrot.lane.b32.xlu0 %v1539_v57, %s4591_s30  ;;  %1601 = vrot.lane.b32.xlu1 %v1487_v60, %s4590_s29  ;;  %v1506_v20 = vld [vmem:[#allocation2 + $0x190] sm:$0xff] }
 0x26e   : > { %v1494_v57 = vld [vmem:[#allocation2 + $0xd0] sm:$0xff] }
 0x26f   : > { %v4078_v60 = vld [vmem:[%s6695_s1 + $0xd0] sm:$0xff] }
 0x271   : > { %1635 = vrot.lane.b32.xlu0 %v1504_v44, %s4590_s29  ;;  %1603 = vrot.lane.b32.xlu1 %v1488_v63, %s4590_s29  ;;  %v4079_v44 = vld [vmem:[%s6695_s1 + $0xd8] sm:$0xff] }
 0x272   : > { %v4230_v63 = vpack.c.bf16 %v4079_v44, %v4078_v60 }
 0x274   : > { %4231 = vmatpush1.bf16.msra.mxu1 %v4230_v63 }
 0x275   : > { %1779 = vrot.lane.b32.xlu0 %v1540_v62, %s4591_s30  ;;  %1637 = vrot.lane.b32.xlu1 %v1505_v47, %s4590_s29 }
 0x276   : > { %4232 = vmatprep.subr.bf16.mxu1 %v4592_v49 }
 0x279   : > { %1745 = vrot.lane.b32.xlu0 %v1523_v50, %s4591_s30  ;;  %1605 = vrot.lane.b32.xlu1 %v1489_v7, %s4590_s29 }
 0x27d   : > { %1747 = vrot.lane.b32.xlu0 %v1524_v9, %s4591_s30  ;;  %1781 = vrot.lane.b32.xlu1 %v1541_v52, %s4591_s30  ;;  %v1495_v9 = vld [vmem:[#allocation2 + $0xe8] sm:$0xff]  ;;  %v4080_v52 = vld [vmem:[%s6695_s1 + $0xe0] sm:$0xff] }
 0x281   : > { %1639 = vrot.lane.b32.xlu1 %v1506_v20, %s4590_s29  ;;  %1749 = vrot.lane.b32.xlu0 %v1525_v2, %s4591_s30  ;;  %v4081_v20 = vld [vmem:[%s6695_s1 + $0xe8] sm:$0xff] }
 0x282   : > { %v4233_v2 = vpack.c.bf16 %v4081_v20, %v4080_v52  ;;  %v1451_v52 = vld [vmem:[#allocation2 + $0x67] sm:$0xff] }
 0x284   : > { %4234 = vmatpush1.bf16.msra.mxu1 %v4233_v2 }
 0x285   : > { %1783 = vrot.lane.b32.xlu1 %v1542_v16, %s4591_s30  ;;  %1751 = vrot.lane.b32.xlu0 %v1526_v36, %s4591_s30  ;;  %v5460_v16 = vpop.permute.xlu0 %4406 }
 0x286   : > { %4235 = vmatprep.subr.bf16.mxu1 %v4592_v49 }
 0x289   : > { %1607 = vrot.lane.b32.xlu1 %v1490_v55, %s4590_s29  ;;  %v1496_v55 = vld [vmem:[#allocation2 + $0xf0] sm:$0xff] }
 0x28a   : > { %v1342_v56 = vpop.f32.mrb[14].mxu1 }
 0x28b   : > { %v1405_v58 = vmax.f32 %v1342_v56, 0.0  ;;  %v1344_v59 = vpop.f32.mrb[15].mxu1  ;;  %v4082_v56 = vld [vmem:[%s6695_s1 + $0xf0] sm:$0xff] }
 0x28d   : > { %1437 = vst.msk [vmem:[#allocation2 + $0x1a8] sm:$0xff] %vm169_vm0, %v1405_v58  ;;  %1609 = vrot.lane.b32.xlu1 %v1491_v22, %s4590_s29  ;;  %v4083_v58 = vld [vmem:[%s6695_s1 + $0xf8] sm:$0xff]  ;;  %v4417_v22 = vpop.permute.xlu1 %4416 }
 0x28e   : > { %v4236_v59 = vpack.c.bf16 %v4083_v58, %v4082_v56  ;;  %v1452_v56 = vld [vmem:[#allocation2 + $0x6f] sm:$0xff] }
 0x290   : > { %4237 = vmatpush1.bf16.msra.mxu1 %v4236_v59 }
 0x291   : > { %1611 = vrot.lane.b32.xlu1 %v1492_v61, %s4590_s29  ;;  %v1531_v61 = vld [vmem:[#allocation2 + $0xe9] sm:$0xff]  ;;  %4238 = vmatprep.subr.bf16.mxu1 %v4592_v49 }
 0x292   : > { %v1347_v1 = vpop.f32.mrb[16].mxu1 }
 0x293   : > { %v1406_v3 = vmax.f32 %v1347_v1, 0.0  ;;  %v1349_v5 = vpop.f32.mrb[17].mxu1  ;;  %v1497_v1 = vld [vmem:[#allocation2 + $0x108] sm:$0xff] }
 0x294   : > { %v1507_v17 = vld [vmem:[#allocation2 + $0x1a8] sm:$0xff]  ;;  %v4084_v5 = vld [vmem:[%s6695_s1 + $0x100] sm:$0xff] }
 0x295   : > { %1438 = vst.msk [vmem:[#allocation2 + $0x1b0] sm:$0xff] %vm169_vm0, %v1406_v3  ;;  %1641 = vrot.lane.b32.xlu0 %v1507_v17, %s4590_s29  ;;  %v5473_v3 = vpop.permute.xlu0 %4411  ;;  %v4085_v17 = vld [vmem:[%s6695_s1 + $0x108] sm:$0xff] }
 0x296   : > { %v1352_v31 = vpop.f32.mrb[18].mxu1 }
 0x297   : > { %v1407_v8 = vmax.f32 %v1352_v31, 0.0  ;;  %v1354_v51 = vpop.f32.mrb[19].mxu1  ;;  %v4239_v31 = vpack.c.bf16 %v4085_v17, %v4084_v5 }
 0x298   : > { %v1498_v51 = vld [vmem:[#allocation2 + $0x110] sm:$0xff] }
 0x299   : > { %1439 = vst.msk [vmem:[#allocation2 + $0x1c8] sm:$0xff] %vm169_vm0, %v1407_v8  ;;  %v1532_v8 = vld [vmem:[#allocation2 + $0xf1] sm:$0xff]  ;;  %4240 = vmatpush1.bf16.msra.mxu1 %v4239_v31 }
 0x29a   : > { %4241 = vmatprep.subr.bf16.mxu1 %v4592_v49 }
 0x29c   : > { %v1543_v10 = vld [vmem:[#allocation2 + $0x1a9] sm:$0xff]  ;;  %v1544_v19 = vld [vmem:[#allocation2 + $0x1b1] sm:$0xff] }
 0x29d   : > { %1785 = vrot.lane.b32.xlu0 %v1543_v10, %s4591_s30  ;;  %v1508_v14 = vld [vmem:[#allocation2 + $0x1b0] sm:$0xff]  ;;  %v4422_v10 = vpop.permute.xlu1 %4421 }
 0x29e   : > { %v1357_v11 = vpop.f32.mrb[20].mxu1  ;;  %v4423_v21 = vunpack.i.l.bf16 %v4422_v10 }
 0x29f   : > { %v1408_v13 = vmax.f32 %v1357_v11, 0.0  ;;  %v1359_v45 = vpop.f32.mrb[21].mxu1  ;;  %v4086_v11 = vld [vmem:[%s6695_s1 + $0x110] sm:$0xff] }
 0x2a0   : > { %v1509_v38 = vld [vmem:[#allocation2 + $0x1c8] sm:$0xff] }
 0x2a1   : > { %1440 = vst.msk [vmem:[#allocation2 + $0x1d0] sm:$0xff] %vm169_vm0, %v1408_v13  ;;  %1643 = vrot.lane.b32.xlu0 %v1508_v14, %s4590_s29  ;;  %1645 = vrot.lane.b32.xlu1 %v1509_v38, %s4590_s29  ;;  %v4087_v13 = vld [vmem:[%s6695_s1 + $0x118] sm:$0xff]  ;;  %v4419_v14 = vunpack.i.h.bf16 %v4417_v22  ;;  %v4418_v38 = vunpack.i.l.bf16 %v4417_v22 }
 0x2a2   : > { %v4242_v45 = vpack.c.bf16 %v4087_v13, %v4086_v11 }
 0x2a4   : > { %4243 = vmatpush1.bf16.msra.mxu1 %v4242_v45  ;;  %v1454_v45 = vld [vmem:[#allocation2 + $0x8f] sm:$0xff] }
 0x2a5   : > { %1787 = vrot.lane.b32.xlu0 %v1544_v19, %s4591_s30  ;;  %1613 = vrot.lane.b32.xlu1 %v1493_v6, %s4590_s29  ;;  %v4424_v6 = vunpack.i.h.bf16 %v4422_v10 }
 0x2a6   : > { %v1362_v23 = vpop.f32.mrb[22].mxu1 }
 0x2a7   : > { %v1409_v24 = vmax.f32 %v1362_v23, 0.0  ;;  %v1364_v12 = vpop.f32.mrb[23].mxu1  ;;  %v1499_v23 = vld [vmem:[#allocation2 + $0x128] sm:$0xff] }
 0x2a8   : > { %v1545_v4 = vld [vmem:[#allocation2 + $0x1c9] sm:$0xff]  ;;  %v1546_v35 = vld [vmem:[#allocation2 + $0x1d1] sm:$0xff]  ;;  %v1843_v12 = vsel %vm169_vm0, %v1447_v39, %v4418_v38 }
 0x2a9   : > { %1441 = vst.msk [vmem:[#allocation2 + $0x1e8] sm:$0xff] %vm169_vm0, %v1409_v24  ;;  %1753 = vrot.lane.b32.xlu0 %v1527_v0, %s4591_s30  ;;  %1789 = vrot.lane.b32.xlu1 %v1545_v4, %s4591_s30  ;;  %v1510_v15 = vld [vmem:[#allocation2 + $0x1d0] sm:$0xff]  ;;  %v5502_v30 = vsel %vm745_vm2, %v1843_v12, %v4423_v21 }
 0x2aa   : > { %v1448_v24 = vld [vmem:[#allocation2 + $0x2f] sm:$0xff] }
 0x2ab   : > { %v1844_v0 = vsel %vm169_vm0, %v1448_v24, %v4419_v14 }
 0x2ac   : > { %v5505_v46 = vsel %vm745_vm2, %v1844_v0, %v4424_v6 }
 0x2ad   : > { %1755 = vrot.lane.b32.xlu0 %v1528_v27, %s4591_s30  ;;  %1647 = vrot.lane.b32.xlu1 %v1510_v15, %s4590_s29  ;;  %v1534_v27 = vld [vmem:[#allocation2 + $0x111] sm:$0xff]  ;;  %v1535_v15 = vld [vmem:[#allocation2 + $0x129] sm:$0xff] }
 0x2ae   : > { %v1367_v33 = vpop.f32.mrb[24].mxu1 }
 0x2af   : > { %v1410_v54 = vmax.f32 %v1367_v33, 0.0  ;;  %v1369_v34 = vpop.f32.mrb[25].mxu1  ;;  %v4425_v33 = vpack.i.bf16 %v5505_v46, %v5502_v30 }
 0x2b0   : > { %v1511_v7 = vld [vmem:[#allocation2 + $0x1e8] sm:$0xff] }
 0x2b1   : > { %1442 = vst.msk [vmem:[#allocation2 + $0x1f0] sm:$0xff] %vm169_vm0, %v1410_v54  ;;  %1791 = vrot.lane.b32.xlu1 %v1546_v35, %s4591_s30  ;;  %1757 = vrot.lane.b32.xlu0 %v1529_v41, %s4591_s30  ;;  %v1449_v54 = vld [vmem:[#allocation2 + $0x47] sm:$0xff] }
 0x2b2   : > { %v1372_v42 = vpop.f32.mrb[26].mxu1 }
 0x2b3   : > { %v1411_v43 = vmax.f32 %v1372_v42, 0.0  ;;  %v1374_v29 = vpop.f32.mrb[27].mxu1 }
 0x2b5   : > { %1443 = vst.msk [vmem:[#allocation2 + $0x208] sm:$0xff] %vm169_vm0, %v1411_v43  ;;  %1759 = vrot.lane.b32.xlu0 %v1530_v53, %s4591_s30  ;;  %1615 = vrot.lane.b32.xlu1 %v1494_v57, %s4590_s29  ;;  %v1450_v53 = vld [vmem:[#allocation2 + $0x4f] sm:$0xff] }
 0x2b7   : > { %v1377_v62 = vpop.f32.mrb[28].mxu1 }
 0x2b8   : > { %v1412_v47 = vmax.f32 %v1377_v62, 0.0  ;;  %v1379_v50 = vpop.f32.mrb[29].mxu1  ;;  %v1547_v36 = vld [vmem:[#allocation2 + $0x1e9] sm:$0xff] }
 0x2b9   : > { %1649 = vrot.lane.b32.xlu0 %v1511_v7, %s4590_s29  ;;  %1617 = vrot.lane.b32.xlu1 %v1495_v9, %s4590_s29  ;;  %v1512_v28 = vld [vmem:[#allocation2 + $0x1f0] sm:$0xff] }
 0x2ba   : > { %1444 = vst.msk [vmem:[#allocation2 + $0x210] sm:$0xff] %vm169_vm0, %v1412_v47 }
 0x2bc   : > { %v1513_v48 = vld [vmem:[#allocation2 + $0x208] sm:$0xff] }
 0x2bd   : > { %1793 = vrot.lane.b32.xlu0 %v1547_v36, %s4591_s30  ;;  %1619 = vrot.lane.b32.xlu1 %v1496_v55, %s4590_s29 }
 0x2c1   : > { %1761 = vrot.lane.b32.xlu0 %v1531_v61, %s4591_s30  ;;  %1621 = vrot.lane.b32.xlu1 %v1497_v1, %s4590_s29  ;;  %v1548_v1 = vld [vmem:[#allocation2 + $0x1f1] sm:$0xff]  ;;  %v1549_v6 = vld [vmem:[#allocation2 + $0x209] sm:$0xff] }
 0x2c5   : > { %1763 = vrot.lane.b32.xlu0 %v1532_v8, %s4591_s30  ;;  %1623 = vrot.lane.b32.xlu1 %v1498_v51, %s4590_s29  ;;  %v1453_v8 = vld [vmem:[#allocation2 + $0x87] sm:$0xff] }
 0x2c7   : > { %v5490_v19 = vpop.permute.xlu0 %1627 }
 0x2c9   : > { %1765 = vrot.lane.b32.xlu0 %v1533_v18, %s4591_s30  ;;  %1625 = vrot.lane.b32.xlu1 %v1499_v23, %s4590_s29 }
 0x2cb   : > { %v5497_v4 = vpop.permute.xlu0 %1771  ;;  %v5499_v25 = vpop.permute.xlu1 %1629 }
 0x2cd   : > { %1767 = vrot.lane.b32.xlu0 %v1534_v27, %s4591_s30  ;;  %1769 = vrot.lane.b32.xlu1 %v1535_v15, %s4591_s30 }
 0x2cf   : > { %v5509_v32 = vpop.permute.xlu1 %1773  ;;  %v1598_v26 = vpop.permute.xlu0 %1597 }
 0x2d0   : > { %v1845_v34 = vsel %vm169_vm0, %v1449_v54, %v1598_v26 }
 0x2d1   : > { %1651 = vrot.lane.b32.xlu0 %v1512_v28, %s4590_s29  ;;  %4426 = vrot.lane.b32.xlu1 %v4425_v33, %s4593_s8  ;;  %v1455_v33 = vld [vmem:[#allocation2 + $0xa7] sm:$0xff] }
 0x2d3   : > { %v5516_v35 = vpop.permute.xlu1 %1631  ;;  %v1742_v41 = vpop.permute.xlu0 %1741 }
 0x2d4   : > { %v5519_v37 = vsel %vm745_vm2, %v1845_v34, %v1742_v41 }
 0x2d5   : > { %2043 = vrot.lane.b32.xlu1 %v5519_v37, %s4594_s9 }
 0x2d7   : > { %v5523_v40 = vpop.permute.xlu1 %1775  ;;  %v1744_v42 = vpop.permute.xlu0 %1743 }
 0x2d9   : > { %1653 = vrot.lane.b32.xlu1 %v1513_v48, %s4590_s29 }
 0x2db   : > { %v5526_v43 = vpop.permute.xlu0 %1633  ;;  %v1600_v29 = vpop.permute.xlu1 %1599 }
 0x2dc   : > { %v1846_v57 = vsel %vm169_vm0, %v1450_v53, %v1600_v29 }
 0x2dd   : > { %v5530_v60 = vsel %vm745_vm2, %v1846_v57, %v1744_v42  ;;  %v1456_v42 = vld [vmem:[#allocation2 + $0xaf] sm:$0xff] }
 0x2de   : > { %2045 = vrot.lane.b32.xlu0 %v5530_v60, %s4594_s9  ;;  %v4430_v62 = vpack.i.bf16 %v5530_v60, %v5519_v37 }
 0x2df   : > { %v5534_v44 = vpop.permute.xlu0 %1777  ;;  %v1602_v63 = vpop.permute.xlu1 %1601 }
 0x2e0   : > { %v1847_v20 = vsel %vm169_vm0, %v1451_v52, %v1602_v63  ;;  %v1457_v52 = vld [vmem:[#allocation2 + $0xc7] sm:$0xff] }
 0x2e2   : > { %4431 = vrot.lane.b32.xlu0 %v4430_v62, %s4593_s8 }
 0x2e3   : > { %v5539_v47 = vpop.permute.xlu0 %1635  ;;  %v1604_v50 = vpop.permute.xlu1 %1603 }
 0x2e4   : > { %v1848_v58 = vsel %vm169_vm0, %v1452_v56, %v1604_v50  ;;  %v1458_v56 = vld [vmem:[#allocation2 + $0xcf] sm:$0xff] }
 0x2e7   : > { %v5541_v7 = vpop.permute.xlu0 %1779  ;;  %v5543_v9 = vpop.permute.xlu1 %1637 }
 0x2eb   : > { %v1746_v2 = vpop.permute.xlu0 %1745  ;;  %v1606_v36 = vpop.permute.xlu1 %1605 }
 0x2ec   : > { %v5547_v55 = vsel %vm745_vm2, %v1847_v20, %v1746_v2  ;;  %v1849_v51 = vsel %vm169_vm0, %v1453_v8, %v1606_v36 }
 0x2ed   : > { %2047 = vrot.lane.b32.xlu0 %v5547_v55, %s4594_s9 }
 0x2ef   : > { %v1748_v59 = vpop.permute.xlu0 %1747  ;;  %v5552_v22 = vpop.permute.xlu1 %1781 }
 0x2f0   : > { %v5555_v61 = vsel %vm745_vm2, %v1848_v58, %v1748_v59 }
 0x2f1   : > { %1795 = vrot.lane.b32.xlu0 %v1548_v1, %s4591_s30  ;;  %2049 = vrot.lane.b32.xlu1 %v5555_v61, %s4594_s9  ;;  %v4435_v5 = vpack.i.bf16 %v5555_v61, %v5547_v55 }
 0x2f3   : > { %v5562_v17 = vpop.permute.xlu1 %1639  ;;  %v1750_v31 = vpop.permute.xlu0 %1749 }
 0x2f4   : > { %v5569_v11 = vsel %vm745_vm2, %v1849_v51, %v1750_v31  ;;  %v1514_v51 = vld [vmem:[#allocation2 + $0x210] sm:$0xff] }
 0x2f5   : > { %4436 = vrot.lane.b32.xlu1 %v4435_v5, %s4593_s8 }
 0x2f7   : > { %v5566_v10 = vpop.permute.xlu1 %1783  ;;  %v1752_v14 = vpop.permute.xlu0 %1751 }
 0x2f9   : > { %2051 = vrot.lane.b32.xlu1 %v5569_v11, %s4594_s9 }
 0x2fb   : > { %v1608_v13 = vpop.permute.xlu1 %1607 }
 0x2fc   : > { %v1850_v38 = vsel %vm169_vm0, %v1454_v45, %v1608_v13 }
 0x2fd   : > { %1797 = vrot.lane.b32.xlu1 %v1549_v6, %s4591_s30  ;;  %v5576_v21 = vsel %vm745_vm2, %v1850_v38, %v1752_v14  ;;  %v1459_v14 = vld [vmem:[#allocation2 + $0xe7] sm:$0xff] }
 0x2fe   : > { %2053 = vrot.lane.b32.xlu0 %v5576_v21, %s4594_s9  ;;  %v4440_v18 = vpack.i.bf16 %v5576_v21, %v5569_v11 }
 0x2ff   : > { %v1610_v23 = vpop.permute.xlu1 %1609 }
 0x300   : > { %v1851_v28 = vsel %vm169_vm0, %v1455_v33, %v1610_v23 }
 0x302   : > { %4441 = vrot.lane.b32.xlu0 %v4440_v18, %s4593_s8 }
 0x303   : > { %v1612_v24 = vpop.permute.xlu1 %1611 }
 0x304   : > { %v1852_v48 = vsel %vm169_vm0, %v1456_v42, %v1612_v24  ;;  %v1460_v24 = vld [vmem:[#allocation2 + $0xef] sm:$0xff] }
 0x307   : > { %v5583_v39 = vpop.permute.xlu0 %1641 }
 0x30f   : > { %v5585_v12 = vpop.permute.xlu0 %1785 }
 0x313   : > { %v5587_v0 = vpop.permute.xlu0 %1643  ;;  %v5589_v27 = vpop.permute.xlu1 %1645 }
 0x317   : > { %v5591_v15 = vpop.permute.xlu0 %1787  ;;  %v1614_v26 = vpop.permute.xlu1 %1613 }
 0x318   : > { %v1853_v20 = vsel %vm169_vm0, %v1457_v52, %v1614_v26  ;;  %v1515_v26 = vld [vmem:[#allocation2 + $0x228] sm:$0xff]  ;;  %v4408_v52 = vunpack.i.l.bf16 %v5460_v16 }
 0x31b   : > { %v1754_v54 = vpop.permute.xlu0 %1753  ;;  %v5594_v34 = vpop.permute.xlu1 %1789 }
 0x31c   : > { %v5597_v41 = vsel %vm745_vm2, %v1851_v28, %v1754_v54 }
 0x31d   : > { %2055 = vrot.lane.b32.xlu0 %v5597_v41, %s4594_s9 }
 0x31f   : > { %v1756_v29 = vpop.permute.xlu0 %1755  ;;  %v5602_v53 = vpop.permute.xlu1 %1647 }
 0x320   : > { %v5605_v57 = vsel %vm745_vm2, %v1852_v48, %v1756_v29  ;;  %v1551_v48 = vld [vmem:[#allocation2 + $0x229] sm:$0xff] }
 0x321   : > { %2057 = vrot.lane.b32.xlu1 %v5605_v57, %s4594_s9  ;;  %v4445_v63 = vpack.i.bf16 %v5605_v57, %v5597_v41 }
 0x323   : > { %v5611_v62 = vpop.permute.xlu1 %1791  ;;  %v1758_v50 = vpop.permute.xlu0 %1757 }
 0x324   : > { %v5616_v58 = vsel %vm745_vm2, %v1853_v20, %v1758_v50  ;;  %v1461_v20 = vld [vmem:[#allocation2 + $0x107] sm:$0xff] }
 0x325   : > { %4446 = vrot.lane.b32.xlu1 %v4445_v63, %s4593_s8 }
 0x327   : > { %v1760_v2 = vpop.permute.xlu0 %1759  ;;  %v1616_v36 = vpop.permute.xlu1 %1615 }
 0x328   : > { %v1854_v59 = vsel %vm169_vm0, %v1458_v56, %v1616_v36  ;;  %v1445_v36 = vld [vmem:[#allocation2 + $0x7] sm:$0xff] }
 0x329   : > { %2059 = vrot.lane.b32.xlu1 %v5616_v58, %s4594_s9  ;;  %v5622_v1 = vsel %vm745_vm2, %v1854_v59, %v1760_v2  ;;  %v1462_v2 = vld [vmem:[#allocation2 + $0x10f] sm:$0xff] }
 0x32a   : > { %2061 = vrot.lane.b32.xlu0 %v5622_v1, %s4594_s9  ;;  %v4450_v8 = vpack.i.bf16 %v5622_v1, %v5616_v58 }
 0x32b   : > { %v5626_v5 = vpop.permute.xlu0 %1649  ;;  %v1618_v31 = vpop.permute.xlu1 %1617 }
 0x32c   : > { %v1855_v38 = vsel %vm169_vm0, %v1459_v14, %v1618_v31  ;;  %v4413_v14 = vunpack.i.l.bf16 %v5473_v3 }
 0x32d   : > { %1655 = vrot.lane.b32.xlu1 %v1514_v51, %s4590_s29 }
 0x32e   : > { %4451 = vrot.lane.b32.xlu0 %v4450_v8, %s4593_s8 }
 0x32f   : > { %v5632_v13 = vpop.permute.xlu0 %1793  ;;  %v1620_v45 = vpop.permute.xlu1 %1619 }
 0x330   : > { %v1856_v33 = vsel %vm169_vm0, %v1460_v24, %v1620_v45 }
 0x333   : > { %v1762_v6 = vpop.permute.xlu0 %1761  ;;  %v1622_v18 = vpop.permute.xlu1 %1621 }
 0x334   : > { %v5636_v23 = vsel %vm745_vm2, %v1855_v38, %v1762_v6  ;;  %v1857_v56 = vsel %vm169_vm0, %v1461_v20, %v1622_v18  ;;  %v1841_v38 = vsel %vm169_vm0, %v1445_v36, %v4408_v52  ;;  %v4409_v52 = vunpack.i.h.bf16 %v5460_v16 }
 0x335   : > { %2063 = vrot.lane.b32.xlu0 %v5636_v23, %s4594_s9  ;;  %v4414_v16 = vunpack.i.h.bf16 %v5473_v3 }
 0x337   : > { %v1764_v28 = vpop.permute.xlu0 %1763  ;;  %v1624_v54 = vpop.permute.xlu1 %1623 }
 0x338   : > { %v5642_v42 = vsel %vm745_vm2, %v1856_v33, %v1764_v28  ;;  %v1858_v59 = vsel %vm169_vm0, %v1462_v2, %v1624_v54  ;;  %v1877_v33 = vsel %vm745_vm2, %v1841_v38, %v4413_v14  ;;  %v1464_v28 = vld [vmem:[#allocation2 + $0x12f] sm:$0xff] }
 0x339   : > { %1657 = vrot.lane.b32.xlu0 %v1515_v26, %s4590_s29  ;;  %2065 = vrot.lane.b32.xlu1 %v5642_v42, %s4594_s9  ;;  %v4455_v29 = vpack.i.bf16 %v5642_v42, %v5636_v23  ;;  %v1550_v26 = vld [vmem:[#allocation2 + $0x211] sm:$0xff] }
 0x33b   : > { %v1766_v63 = vpop.permute.xlu0 %1765  ;;  %v1626_v50 = vpop.permute.xlu1 %1625 }
 0x33c   : > { %v5655_v51 = vsel %vm745_vm2, %v1857_v56, %v1766_v63  ;;  %v1446_v56 = vld [vmem:[#allocation2 + $0xf] sm:$0xff] }
 0x33d   : > { %1801 = vrot.lane.b32.xlu0 %v1551_v48, %s4591_s30  ;;  %4456 = vrot.lane.b32.xlu1 %v4455_v29, %s4593_s8  ;;  %v1860_v48 = vsel %vm169_vm0, %v1464_v28, %v5490_v19  ;;  %v1463_v29 = vld [vmem:[#allocation2 + $0x127] sm:$0xff] }
 0x33e   : > { %v5677_v20 = vsel %vm745_vm2, %v1860_v48, %v5497_v4  ;;  %v1859_v2 = vsel %vm169_vm0, %v1463_v29, %v1626_v50  ;;  %v1465_v19 = vld [vmem:[#allocation2 + $0x147] sm:$0xff]  ;;  %v1516_v50 = vld [vmem:[#allocation2 + $0x230] sm:$0xff] }
 0x33f   : > { %v1768_v31 = vpop.permute.xlu0 %1767  ;;  %v1770_v8 = vpop.permute.xlu1 %1769  ;;  %v1861_v4 = vsel %vm169_vm0, %v1465_v19, %v5499_v25  ;;  %v1467_v28 = vld [vmem:[#allocation2 + $0x167] sm:$0xff] }
 0x340   : > { %v5658_v45 = vsel %vm745_vm2, %v1858_v59, %v1768_v31  ;;  %v5683_v59 = vsel %vm745_vm2, %v1859_v2, %v1770_v8  ;;  %v1842_v31 = vsel %vm169_vm0, %v1446_v56, %v4409_v52  ;;  %v5695_v8 = vsel %vm745_vm2, %v1861_v4, %v5509_v32 }
 0x341   : > { %2069 = vrot.lane.b32.xlu0 %v5658_v45, %s4594_s9  ;;  %2067 = vrot.lane.b32.xlu1 %v5655_v51, %s4594_s9  ;;  %v4460_v6 = vpack.i.bf16 %v5658_v45, %v5655_v51  ;;  %v1878_v3 = vsel %vm745_vm2, %v1842_v31, %v4414_v16  ;;  %v1470_v16 = vld [vmem:[#allocation2 + $0x18f] sm:$0xff]  ;;  %v1471_v31 = vld [vmem:[#allocation2 + $0x1a7] sm:$0xff] }
 0x342   : > { %v1866_v4 = vsel %vm169_vm0, %v1470_v16, %v5562_v17  ;;  %v1867_v17 = vsel %vm169_vm0, %v1471_v31, %v5583_v39 }
 0x343   : > { %v4427_v18 = vpop.permute.xlu1 %4426  ;;  %v5697_v14 = vpop.permute.xlu0 %1651 }
 0x344   : > { %v4428_v24 = vunpack.i.l.bf16 %v4427_v18  ;;  %v4429_v38 = vunpack.i.h.bf16 %v4427_v18  ;;  %v1466_v18 = vld [vmem:[#allocation2 + $0x14f] sm:$0xff] }
 0x345   : > { %4461 = vrot.lane.b32.xlu0 %v4460_v6, %s4593_s8  ;;  %1799 = vrot.lane.b32.xlu1 %v1550_v26, %s4591_s30  ;;  %v1552_v6 = vld [vmem:[#allocation2 + $0x231] sm:$0xff]  ;;  %v1862_v26 = vsel %vm169_vm0, %v1466_v18, %v5516_v35 }
 0x346   : > { %v2139_v54 = vsel %vm1008_vm3, %v1877_v33, %v4428_v24  ;;  %v2140_v25 = vsel %vm1008_vm3, %v1878_v3, %v4429_v38  ;;  %v5713_v33 = vsel %vm745_vm2, %v1862_v26, %v5523_v40  ;;  %v1468_v35 = vld [vmem:[#allocation2 + $0x16f] sm:$0xff] }
 0x347   : > { %v2044_v63 = vpop.permute.xlu1 %2043  ;;  %v1472_v3 = vld [vmem:[#allocation2 + $0x1af] sm:$0xff] }
 0x348   : > { %v2171_v36 = vsel %vm1041_vm4, %v2139_v54, %v2044_v63  ;;  %4088 = vmatprep.mubr.msk.f32.mxu1 %vm169_vm0, %v2044_v63  ;;  %v1863_v54 = vsel %vm169_vm0, %v1467_v28, %v5526_v43  ;;  %v1864_v63 = vsel %vm169_vm0, %v1468_v35, %v5539_v47  ;;  %v1469_v43 = vld [vmem:[#allocation2 + $0x187] sm:$0xff] }
 0x349   : > { %2351 = vmatmul.mubr.f32.vlgmr.msra.gmra.mrb[30].mxu1 %v2171_v36  ;;  %2073 = vrot.lane.b32.xlu1 %v5677_v20, %s4594_s9  ;;  %v5723_v29 = vsel %vm745_vm2, %v1863_v54, %v5534_v44  ;;  %v5733_v52 = vsel %vm745_vm2, %v1864_v63, %v5541_v7  ;;  %v1865_v47 = vsel %vm169_vm0, %v1469_v43, %v5543_v9 }
 0x34a   : > { %2071 = vrot.lane.b32.xlu0 %v5683_v59, %s4594_s9  ;;  %v5749_v19 = vsel %vm745_vm2, %v1865_v47, %v5552_v22 }
 0x34b   : > { %v5739_v44 = vpop.permute.xlu1 %1653 }
 0x34d   : > { %2075 = vrot.lane.b32.xlu1 %v5695_v8, %s4594_s9 }
 0x34e   : > { %1659 = vrot.lane.b32.xlu0 %v1516_v50, %s4590_s29  ;;  %v5763_v50 = vsel %vm745_vm2, %v1866_v4, %v5566_v10 }
 0x350   : > { %v2046_v24 = vpop.permute.xlu0 %2045 }
 0x351   : > { %4089 = vmatprep.mubr.msk.f32.mxu1 %vm169_vm0, %v2046_v24  ;;  %1977 = vrot.lane.b32.xlu1 %v5683_v59, %s4593_s8  ;;  %v2172_v32 = vsel %vm1041_vm4, %v2140_v25, %v2046_v24  ;;  %v1868_v25 = vsel %vm169_vm0, %v1472_v3, %v5587_v0 }
 0x352   : > { %1803 = vrot.lane.b32.xlu0 %v1552_v6, %s4591_s30  ;;  %2356 = vmatmul.mubr.f32.gmra.mrb[32].mxu1 %v2172_v32  ;;  %v5773_v6 = vsel %vm745_vm2, %v1867_v17, %v5585_v12  ;;  %v5787_v18 = vsel %vm745_vm2, %v1868_v25, %v5591_v15 }
 0x354   : > { %v4432_v48 = vpop.permute.xlu0 %4431 }
 0x355   : > { %1979 = vrot.lane.b32.xlu1 %v5677_v20, %s4593_s8  ;;  %v4433_v40 = vunpack.i.l.bf16 %v4432_v48  ;;  %v4434_v2 = vunpack.i.h.bf16 %v4432_v48 }
 0x356   : > { %2077 = vrot.lane.b32.xlu0 %v5713_v33, %s4594_s9 }
 0x357   : > { %v2141_v56 = vsel %vm1008_vm3, %v5502_v30, %v4433_v40  ;;  %v2142_v9 = vsel %vm1008_vm3, %v5505_v46, %v4434_v2 }
 0x359   : > { %1981 = vrot.lane.b32.xlu1 %v5695_v8, %s4593_s8 }
 0x35a   : > { %2079 = vrot.lane.b32.xlu0 %v5723_v29, %s4594_s9 }
 0x35d   : > { %1983 = vrot.lane.b32.xlu1 %v5713_v33, %s4593_s8 }
 0x35e   : > { %2081 = vrot.lane.b32.xlu0 %v5733_v52, %s4594_s9 }
 0x35f   : > { %v2048_v36 = vpop.permute.xlu0 %2047 }
 0x360   : > { %4090 = vmatprep.mubr.msk.f32.mxu1 %vm169_vm0, %v2048_v36  ;;  %v2173_v7 = vsel %vm1041_vm4, %v2141_v56, %v2048_v36 }
 0x361   : > { %2361 = vmatmul.mubr.f32.gmra.mrb[34].mxu1 %v2173_v7  ;;  %1985 = vrot.lane.b32.xlu1 %v5723_v29, %s4593_s8 }
 0x362   : > { %2083 = vrot.lane.b32.xlu0 %v5749_v19, %s4594_s9 }
 0x363   : > { %v2050_v30 = vpop.permute.xlu1 %2049  ;;  %v1796_v39 = vpop.permute.xlu0 %1795 }
 0x364   : > { %4091 = vmatprep.mubr.msk.f32.mxu1 %vm169_vm0, %v2050_v30  ;;  %v2174_v22 = vsel %vm1041_vm4, %v2142_v9, %v2050_v30 }
 0x365   : > { %2366 = vmatmul.mubr.f32.gmra.mrb[36].mxu1 %v2174_v22  ;;  %1987 = vrot.lane.b32.xlu1 %v5733_v52, %s4593_s8 }
 0x366   : > { %2085 = vrot.lane.b32.xlu0 %v5763_v50, %s4594_s9 }
 0x367   : > { %v4437_v46 = vpop.permute.xlu1 %4436 }
 0x368   : > { %v4438_v38 = vunpack.i.l.bf16 %v4437_v46  ;;  %v4439_v32 = vunpack.i.h.bf16 %v4437_v46 }
 0x369   : > { %1989 = vrot.lane.b32.xlu1 %v5749_v19, %s4593_s8 }
 0x36a   : > { %2087 = vrot.lane.b32.xlu0 %v5773_v6, %s4594_s9  ;;  %v2143_v10 = vsel %vm1008_vm3, %v5519_v37, %v4438_v38  ;;  %v1473_v37 = vld [vmem:[#allocation2 + $0x1c7] sm:$0xff]  ;;  %v2144_v28 = vsel %vm1008_vm3, %v5530_v60, %v4439_v32 }
 0x36b   : > { %v2052_v24 = vpop.permute.xlu1 %2051  ;;  %v1869_v0 = vsel %vm169_vm0, %v1473_v37, %v5589_v27  ;;  %v1474_v27 = vld [vmem:[#allocation2 + $0x1cf] sm:$0xff] }
 0x36c   : > { %4092 = vmatprep.mubr.msk.f32.mxu1 %vm169_vm0, %v2052_v24  ;;  %v2175_v12 = vsel %vm1041_vm4, %v2143_v10, %v2052_v24  ;;  %v5799_v54 = vsel %vm745_vm2, %v1869_v0, %v5594_v34  ;;  %v1870_v48 = vsel %vm169_vm0, %v1474_v27, %v5602_v53  ;;  %v1475_v34 = vld [vmem:[#allocation2 + $0x1e7] sm:$0xff]  ;;  %v1476_v53 = vld [vmem:[#allocation2 + $0x1ef] sm:$0xff] }
 0x36d   : > { %2371 = vmatmul.mubr.f32.gmra.mrb[38].mxu1 %v2175_v12  ;;  %1991 = vrot.lane.b32.xlu1 %v5763_v50, %s4593_s8  ;;  %v5811_v60 = vsel %vm745_vm2, %v1870_v48, %v5611_v62  ;;  %v1871_v35 = vsel %vm169_vm0, %v1475_v34, %v5626_v5  ;;  %v1872_v62 = vsel %vm169_vm0, %v1476_v53, %v5697_v14 }
 0x36e   : > { %2089 = vrot.lane.b32.xlu0 %v5787_v18, %s4594_s9  ;;  %v5821_v40 = vsel %vm745_vm2, %v1871_v35, %v5632_v13  ;;  %v5830_v63 = vsel %vm745_vm2, %v1872_v62, %v1796_v39  ;;  %v1477_v13 = vld [vmem:[#allocation2 + $0x207] sm:$0xff] }
 0x36f   : > { %v1798_v5 = vpop.permute.xlu1 %1797  ;;  %v1873_v43 = vsel %vm169_vm0, %v1477_v13, %v5739_v44  ;;  %v1479_v62 = vld [vmem:[#allocation2 + $0x227] sm:$0xff] }
 0x370   : > { %v2054_v26 = vpop.permute.xlu0 %2053  ;;  %v1909_v2 = vsel %vm745_vm2, %v1873_v43, %v1798_v5  ;;  %v1478_v5 = vld [vmem:[#allocation2 + $0x20f] sm:$0xff] }
 0x371   : > { %4093 = vmatprep.mubr.msk.f32.mxu1 %vm169_vm0, %v2054_v26  ;;  %1993 = vrot.lane.b32.xlu1 %v5773_v6, %s4593_s8  ;;  %v2176_v15 = vsel %vm1041_vm4, %v2144_v28, %v2054_v26 }
 0x372   : > { %2091 = vrot.lane.b32.xlu0 %v5799_v54, %s4594_s9  ;;  %2376 = vmatmul.mubr.f32.gmra.mrb[40].mxu1 %v2176_v15 }
 0x374   : > { %v4442_v14 = vpop.permute.xlu0 %4441 }
 0x375   : > { %1995 = vrot.lane.b32.xlu1 %v5787_v18, %s4593_s8  ;;  %v4443_v36 = vunpack.i.l.bf16 %v4442_v14  ;;  %v4444_v56 = vunpack.i.h.bf16 %v4442_v14 }
 0x376   : > { %2093 = vrot.lane.b32.xlu0 %v5811_v60, %s4594_s9 }
 0x377   : > { %v2145_v7 = vsel %vm1008_vm3, %v5547_v55, %v4443_v36  ;;  %v2146_v30 = vsel %vm1008_vm3, %v5555_v61, %v4444_v56 }
 0x379   : > { %1997 = vrot.lane.b32.xlu1 %v5799_v54, %s4593_s8 }
 0x37a   : > { %2095 = vrot.lane.b32.xlu0 %v5821_v40, %s4594_s9 }
 0x37d   : > { %1999 = vrot.lane.b32.xlu1 %v5811_v60, %s4593_s8 }
 0x37e   : > { %2097 = vrot.lane.b32.xlu0 %v5830_v63, %s4594_s9 }
 0x381   : > { %2001 = vrot.lane.b32.xlu1 %v5821_v40, %s4593_s8 }
 0x382   : > { %2099 = vrot.lane.b32.xlu0 %v1909_v2, %s4594_s9 }
 0x385   : > { %2003 = vrot.lane.b32.xlu1 %v5830_v63, %s4593_s8 }
 0x389   : > { %2005 = vrot.lane.b32.xlu1 %v1909_v2, %s4593_s8 }
 0x38f   : > { %v2056_v47 = vpop.permute.xlu0 %2055 }
 0x390   : > { %4094 = vmatprep.mubr.msk.f32.mxu1 %vm169_vm0, %v2056_v47  ;;  %v2177_v44 = vsel %vm1041_vm4, %v2145_v7, %v2056_v47 }
 0x391   : > { %2381 = vmatmul.mubr.f32.gmra.mrb[42].mxu1 %v2177_v44 }
 0x393   : > { %v2058_v16 = vpop.permute.xlu1 %2057 }
 0x394   : > { %4095 = vmatprep.mubr.msk.f32.mxu1 %vm169_vm0, %v2058_v16  ;;  %v2178_v9 = vsel %vm1041_vm4, %v2146_v30, %v2058_v16 }
 0x395   : > { %2386 = vmatmul.mubr.f32.gmra.mrb[44].mxu1 %v2178_v9 }
 0x397   : > { %v4447_v4 = vpop.permute.xlu1 %4446 }
 0x398   : > { %v4448_v22 = vunpack.i.l.bf16 %v4447_v4  ;;  %v4449_v55 = vunpack.i.h.bf16 %v4447_v4 }
 0x39a   : > { %v2147_v31 = vsel %vm1008_vm3, %v5569_v11, %v4448_v22  ;;  %v2148_v61 = vsel %vm1008_vm3, %v5576_v21, %v4449_v55  ;;  %v1480_v22 = vld [vmem:[#allocation2 + $0x22f] sm:$0xff] }
 0x39b   : > { %v2060_v46 = vpop.permute.xlu1 %2059 }
 0x39c   : > { %v2062_v17 = vpop.permute.xlu0 %2061  ;;  %4096 = vmatprep.mubr.msk.f32.mxu1 %vm169_vm0, %v2060_v46  ;;  %v2179_v38 = vsel %vm1041_vm4, %v2147_v31, %v2060_v46 }
 0x39d   : > { %2391 = vmatmul.mubr.f32.gmra.mrb[46].mxu1 %v2179_v38  ;;  %v2180_v3 = vsel %vm1041_vm4, %v2148_v61, %v2062_v17  ;;  %v2612_v38 = vld [vmem:[#allocation2 + $0x10] sm:$0xff] }
 0x39e   : > { %4097 = vmatprep.mubr.msk.f32.mxu1 %vm169_vm0, %v2062_v17  ;;  %v2611_v17 = vld [vmem:[#allocation2 + $0x8] sm:$0xff] }
 0x39f   : > { %v1656_v25 = vpop.permute.xlu1 %1655 }
 0x3a0   : > { %v4452_v10 = vpop.permute.xlu0 %4451  ;;  %v1874_v13 = vsel %vm169_vm0, %v1478_v5, %v1656_v25 }
 0x3a1   : > { %2396 = vmatmul.mubr.f32.gmra.mrb[48].mxu1 %v2180_v3  ;;  %v4453_v24 = vunpack.i.l.bf16 %v4452_v10  ;;  %v4454_v11 = vunpack.i.h.bf16 %v4452_v10 }
 0x3a3   : > { %v2149_v32 = vsel %vm1008_vm3, %v5597_v41, %v4453_v24  ;;  %v2150_v21 = vsel %vm1008_vm3, %v5605_v57, %v4454_v11  ;;  %v4465_v24 = vpack.i.bf16 %v2612_v38, %v2611_v17  ;;  %v2647_v11 = vld [vmem:[#allocation2 + $0x9] sm:$0xff] }
 0x3a7   : > { %v2064_v39 = vpop.permute.xlu0 %2063 }
 0x3a8   : > { %4098 = vmatprep.mubr.msk.f32.mxu1 %vm169_vm0, %v2064_v39  ;;  %v2181_v12 = vsel %vm1041_vm4, %v2149_v32, %v2064_v39  ;;  %v2648_v39 = vld [vmem:[#allocation2 + $0x11] sm:$0xff] }
 0x3a9   : > { %2401 = vmatmul.mubr.f32.gmra.mrb[50].mxu1 %v2181_v12 }
 0x3ab   : > { %v1658_v37 = vpop.permute.xlu0 %1657  ;;  %v2066_v0 = vpop.permute.xlu1 %2065 }
 0x3ac   : > { %4099 = vmatprep.mubr.msk.f32.mxu1 %vm169_vm0, %v2066_v0  ;;  %v2182_v26 = vsel %vm1041_vm4, %v2150_v21, %v2066_v0 }
 0x3ad   : > { %2406 = vmatmul.mubr.f32.gmra.mrb[52].mxu1 %v2182_v26 }
 0x3af   : > { %v1802_v28 = vpop.permute.xlu0 %1801  ;;  %v4457_v15 = vpop.permute.xlu1 %4456 }
 0x3b0   : > { %v4458_v27 = vunpack.i.l.bf16 %v4457_v15  ;;  %v4459_v48 = vunpack.i.h.bf16 %v4457_v15 }
 0x3b2   : > { %v2151_v41 = vsel %vm1008_vm3, %v5616_v58, %v4458_v27  ;;  %v2152_v57 = vsel %vm1008_vm3, %v5622_v1, %v4459_v48  ;;  %v1875_v58 = vsel %vm169_vm0, %v1479_v62, %v1658_v37  ;;  %v4470_v37 = vpack.i.bf16 %v2648_v39, %v2647_v11 }
 0x3b3   : > { %v2070_v34 = vpop.permute.xlu0 %2069  ;;  %v2068_v35 = vpop.permute.xlu1 %2067  ;;  %v1911_v7 = vsel %vm745_vm2, %v1875_v58, %v1802_v28 }
 0x3b4   : > { %4100 = vmatprep.mubr.msk.f32.mxu1 %vm169_vm0, %v2068_v35  ;;  %v2183_v53 = vsel %vm1041_vm4, %v2151_v41, %v2068_v35  ;;  %v2184_v56 = vsel %vm1041_vm4, %v2152_v57, %v2070_v34 }
 0x3b5   : > { %2411 = vmatmul.mubr.f32.gmra.mrb[54].mxu1 %v2183_v53 }
 0x3b6   : > { %4101 = vmatprep.mubr.msk.f32.mxu1 %vm169_vm0, %v2070_v34 }
 0x3b7   : > { %v4462_v43 = vpop.permute.xlu0 %4461  ;;  %v1800_v2 = vpop.permute.xlu1 %1799 }
 0x3b8   : > { %v4463_v14 = vunpack.i.l.bf16 %v4462_v43  ;;  %v1910_v36 = vsel %vm745_vm2, %v1874_v13, %v1800_v2  ;;  %v4464_v47 = vunpack.i.h.bf16 %v4462_v43 }
 0x3b9   : > { %2416 = vmatmul.mubr.f32.gmra.mrb[56].mxu1 %v2184_v56  ;;  %2007 = vrot.lane.b32.xlu1 %v1910_v36, %s4593_s8 }
 0x3ba   : > { %2101 = vrot.lane.b32.xlu0 %v1910_v36, %s4594_s9  ;;  %v2153_v1 = vsel %vm1008_vm3, %v5636_v23, %v4463_v14  ;;  %v2154_v9 = vsel %vm1008_vm3, %v5642_v42, %v4464_v47 }
 0x3bb   : > { %v2074_v44 = vpop.permute.xlu1 %2073 }
 0x3bc   : > { %v2072_v16 = vpop.permute.xlu0 %2071  ;;  %v2186_v23 = vsel %vm1041_vm4, %v2154_v9, %v2074_v44 }
 0x3bd   : > { %4102 = vmatprep.mubr.msk.f32.mxu1 %vm169_vm0, %v2072_v16  ;;  %v2185_v30 = vsel %vm1041_vm4, %v2153_v1, %v2072_v16 }
 0x3be   : > { %2103 = vrot.lane.b32.xlu0 %v1911_v7, %s4594_s9  ;;  %2421 = vmatmul.mubr.f32.gmra.mrb[58].mxu1 %v2185_v30 }
 0x3bf   : > { %4103 = vmatprep.mubr.msk.f32.mxu1 %vm169_vm0, %v2074_v44  ;;  %v2076_v4 = vpop.permute.xlu1 %2075 }
 0x3c0   : > { %v1660_v31 = vpop.permute.xlu0 %1659 }
 0x3c1   : > { %v1876_v55 = vsel %vm169_vm0, %v1480_v22, %v1660_v31 }
 0x3c2   : > { %2426 = vmatmul.mubr.f32.gmra.mrb[60].mxu1 %v2186_v23 }
 0x3c3   : > { %4104 = vmatprep.mubr.msk.f32.mxu1 %vm169_vm0, %v2076_v4  ;;  %v1978_v46 = vpop.permute.xlu1 %1977 }
 0x3c4   : > { %v2155_v61 = vsel %vm1008_vm3, %v5655_v51, %v1978_v46  ;;  %v1804_v10 = vpop.permute.xlu0 %1803 }
 0x3c5   : > { %v1912_v42 = vsel %vm745_vm2, %v1876_v55, %v1804_v10  ;;  %v2187_v3 = vsel %vm1041_vm4, %v2155_v61, %v2076_v4 }
 0x3c6   : > { %2105 = vrot.lane.b32.xlu0 %v1912_v42, %s4594_s9  ;;  %2431 = vmatmul.mubr.f32.gmra.mrb[62].mxu1 %v2187_v3 }
 0x3c7   : > { %v1980_v25 = vpop.permute.xlu1 %1979 }
 0x3c8   : > { %v2156_v32 = vsel %vm1008_vm3, %v5658_v45, %v1980_v25  ;;  %v2078_v12 = vpop.permute.xlu0 %2077 }
 0x3c9   : > { %4105 = vmatprep.mubr.msk.f32.mxu1 %vm169_vm0, %v2078_v12  ;;  %v2188_v51 = vsel %vm1041_vm4, %v2156_v32, %v2078_v12 }
 0x3ca   : > { %2436 = vmatmul.mubr.f32.gmra.mrb[64].mxu1 %v2188_v51  ;;  %4466 = vrot.lane.b32.xlu0 %v4465_v24, %s4590_s29 }
 0x3cb   : > { %v1982_v0 = vpop.permute.xlu1 %1981 }
 0x3cc   : > { %v2157_v21 = vsel %vm1008_vm3, %v5683_v59, %v1982_v0  ;;  %v2080_v26 = vpop.permute.xlu0 %2079 }
 0x3cd   : > { %4106 = vmatprep.mubr.msk.f32.mxu1 %vm169_vm0, %v2080_v26  ;;  %v2189_v28 = vsel %vm1041_vm4, %v2157_v21, %v2080_v26 }
 0x3ce   : > { %2441 = vmatmul.mubr.f32.gmra.mrb[66].mxu1 %v2189_v28  ;;  %4471 = vrot.lane.b32.xlu0 %v4470_v37, %s4591_s30 }
 0x3cf   : > { %v1984_v45 = vpop.permute.xlu1 %1983 }
 0x3d0   : > { %v2158_v15 = vsel %vm1008_vm3, %v5677_v20, %v1984_v45  ;;  %v2082_v27 = vpop.permute.xlu0 %2081 }
 0x3d1   : > { %4107 = vmatprep.mubr.msk.f32.mxu1 %vm169_vm0, %v2082_v27  ;;  %v2190_v48 = vsel %vm1041_vm4, %v2158_v15, %v2082_v27 }
 0x3d2   : > { %2446 = vmatmul.mubr.f32.gmra.mrb[68].mxu1 %v2190_v48 }
 0x3d3   : > { %v1986_v41 = vpop.permute.xlu1 %1985 }
 0x3d4   : > { %v2159_v59 = vsel %vm1008_vm3, %v5695_v8, %v1986_v41  ;;  %v2084_v34 = vpop.permute.xlu0 %2083 }
 0x3d5   : > { %4108 = vmatprep.mubr.msk.f32.mxu1 %vm169_vm0, %v2084_v34  ;;  %v2191_v35 = vsel %vm1041_vm4, %v2159_v59, %v2084_v34 }
 0x3d6   : > { %2451 = vmatmul.mubr.f32.gmra.mrb[70].mxu1 %v2191_v35 }
 0x3d7   : > { %v1988_v53 = vpop.permute.xlu1 %1987 }
 0x3d8   : > { %v2160_v20 = vsel %vm1008_vm3, %v5713_v33, %v1988_v53  ;;  %v2086_v62 = vpop.permute.xlu0 %2085 }
 0x3d9   : > { %4109 = vmatprep.mubr.msk.f32.mxu1 %vm169_vm0, %v2086_v62  ;;  %v2192_v57 = vsel %vm1041_vm4, %v2160_v20, %v2086_v62 }
 0x3da   : > { %2456 = vmatmul.mubr.f32.gmra.mrb[72].mxu1 %v2192_v57 }
 0x3db   : > { %v1990_v5 = vpop.permute.xlu1 %1989 }
 0x3dc   : > { %v2161_v8 = vsel %vm1008_vm3, %v5723_v29, %v1990_v5  ;;  %v2088_v13 = vpop.permute.xlu0 %2087 }
 0x3dd   : > { %4110 = vmatprep.mubr.msk.f32.mxu1 %vm169_vm0, %v2088_v13  ;;  %v2193_v43 = vsel %vm1041_vm4, %v2161_v8, %v2088_v13 }
 0x3de   : > { %2461 = vmatmul.mubr.f32.gmra.mrb[74].mxu1 %v2193_v43 }
 0x3df   : > { %v1992_v2 = vpop.permute.xlu1 %1991 }
 0x3e0   : > { %v2162_v33 = vsel %vm1008_vm3, %v5733_v52, %v1992_v2  ;;  %v2090_v58 = vpop.permute.xlu0 %2089 }
 0x3e1   : > { %4111 = vmatprep.mubr.msk.f32.mxu1 %vm169_vm0, %v2090_v58  ;;  %v2194_v14 = vsel %vm1041_vm4, %v2162_v33, %v2090_v58 }
 0x3e2   : > { %2466 = vmatmul.mubr.f32.gmra.mrb[76].mxu1 %v2194_v14 }
 0x3e3   : > { %v1994_v36 = vpop.permute.xlu1 %1993 }
 0x3e4   : > { %v2163_v29 = vsel %vm1008_vm3, %v5749_v19, %v1994_v36  ;;  %v2092_v56 = vpop.permute.xlu0 %2091 }
 0x3e5   : > { %4112 = vmatprep.mubr.msk.f32.mxu1 %vm169_vm0, %v2092_v56  ;;  %v2195_v47 = vsel %vm1041_vm4, %v2163_v29, %v2092_v56 }
 0x3e6   : > { %2471 = vmatmul.mubr.f32.gmra.mrb[78].mxu1 %v2195_v47 }
 0x3e7   : > { %v1996_v1 = vpop.permute.xlu1 %1995 }
 0x3e8   : > { %v2164_v52 = vsel %vm1008_vm3, %v5763_v50, %v1996_v1  ;;  %v2094_v7 = vpop.permute.xlu0 %2093 }
 0x3e9   : > { %4113 = vmatprep.mubr.msk.f32.mxu1 %vm169_vm0, %v2094_v7  ;;  %v2196_v44 = vsel %vm1041_vm4, %v2164_v52, %v2094_v7 }
 0x3ea   : > { %2476 = vmatmul.mubr.f32.gmra.mrb[80].mxu1 %v2196_v44 }
 0x3eb   : > { %v1998_v16 = vpop.permute.xlu1 %1997 }
 0x3ec   : > { %v2165_v19 = vsel %vm1008_vm3, %v5773_v6, %v1998_v16  ;;  %v2096_v30 = vpop.permute.xlu0 %2095 }
 0x3ed   : > { %4114 = vmatprep.mubr.msk.f32.mxu1 %vm169_vm0, %v2096_v30  ;;  %v2197_v9 = vsel %vm1041_vm4, %v2165_v19, %v2096_v30 }
 0x3ee   : > { %2481 = vmatmul.mubr.f32.gmra.mrb[82].mxu1 %v2197_v9 }
 0x3ef   : > { %v2000_v4 = vpop.permute.xlu1 %1999 }
 0x3f0   : > { %v2166_v50 = vsel %vm1008_vm3, %v5787_v18, %v2000_v4  ;;  %v2098_v22 = vpop.permute.xlu0 %2097 }
 0x3f1   : > { %4115 = vmatprep.mubr.msk.f32.mxu1 %vm169_vm0, %v2098_v22  ;;  %v2198_v31 = vsel %vm1041_vm4, %v2166_v50, %v2098_v22 }
 0x3f2   : > { %2486 = vmatmul.mubr.f32.gmra.mrb[84].mxu1 %v2198_v31 }
 0x3f3   : > { %v2002_v23 = vpop.permute.xlu1 %2001 }
 0x3f4   : > { %v2167_v6 = vsel %vm1008_vm3, %v5799_v54, %v2002_v23  ;;  %v2100_v55 = vpop.permute.xlu0 %2099 }
 0x3f5   : > { %4116 = vmatprep.mubr.msk.f32.mxu1 %vm169_vm0, %v2100_v55  ;;  %v2199_v46 = vsel %vm1041_vm4, %v2167_v6, %v2100_v55 }
 0x3f6   : > { %2491 = vmatmul.mubr.f32.gmra.mrb[86].mxu1 %v2199_v46 }
 0x3f7   : > { %v2004_v3 = vpop.permute.xlu1 %2003 }
 0x3f8   : > { %v2168_v54 = vsel %vm1008_vm3, %v5811_v60, %v2004_v3 }
 0x3fb   : > { %v2006_v25 = vpop.permute.xlu1 %2005 }
 0x3fc   : > { %v2169_v12 = vsel %vm1008_vm3, %v5821_v40, %v2006_v25 }
 0x41c   : > { %v2352_v17 = vpop.f32.mrb[30].mxu1 }
 0x41d   : > { %v2511_v38 = vmax.f32 %v2352_v17, 0.0  ;;  %v2354_v61 = vpop.f32.mrb[31].mxu1 }
 0x41f   : > { %2543 = vst.msk [vmem:[#allocation2 + $0x28] sm:$0xff] %vm169_vm0, %v2511_v38 }
 0x425   : > { %v2357_v18 = vpop.f32.mrb[32].mxu1 }
 0x426   : > { %v2512_v10 = vmax.f32 %v2357_v18, 0.0  ;;  %v2359_v42 = vpop.f32.mrb[33].mxu1  ;;  %v2613_v39 = vld [vmem:[#allocation2 + $0x28] sm:$0xff] }
 0x428   : > { %2544 = vst.msk [vmem:[#allocation2 + $0x30] sm:$0xff] %vm169_vm0, %v2512_v10 }
 0x42b   : > { %v2008_v45 = vpop.permute.xlu1 %2007 }
 0x42c   : > { %v2102_v24 = vpop.permute.xlu0 %2101  ;;  %v2170_v40 = vsel %vm1008_vm3, %v5830_v63, %v2008_v45 }
 0x42d   : > { %4117 = vmatprep.mubr.msk.f32.mxu1 %vm169_vm0, %v2102_v24  ;;  %v2200_v11 = vsel %vm1041_vm4, %v2168_v54, %v2102_v24 }
 0x42e   : > { %2496 = vmatmul.mubr.f32.gmra.mrb[88].mxu1 %v2200_v11 }
 0x42f   : > { %v2614_v32 = vld [vmem:[#allocation2 + $0x30] sm:$0xff] }
 0x430   : > { %v2104_v51 = vpop.permute.xlu0 %2103  ;;  %v4475_v37 = vpack.i.bf16 %v2614_v32, %v2613_v39  ;;  %v2649_v21 = vld [vmem:[#allocation2 + $0x29] sm:$0xff]  ;;  %v2650_v60 = vld [vmem:[#allocation2 + $0x31] sm:$0xff] }
 0x431   : > { %4118 = vmatprep.mubr.msk.f32.mxu1 %vm169_vm0, %v2104_v51  ;;  %v2201_v0 = vsel %vm1041_vm4, %v2169_v12, %v2104_v51  ;;  %v4480_v28 = vpack.i.bf16 %v2650_v60, %v2649_v21 }
 0x432   : > { %2501 = vmatmul.mubr.f32.gmra.mrb[90].mxu1 %v2201_v0  ;;  %4476 = vrot.lane.b32.xlu1 %v4475_v37, %s4590_s29 }
 0x434   : > { %v2362_v26 = vpop.f32.mrb[34].mxu1 }
 0x435   : > { %v2513_v15 = vmax.f32 %v2362_v26, 0.0  ;;  %v2364_v27 = vpop.f32.mrb[35].mxu1 }
 0x436   : > { %4481 = vrot.lane.b32.xlu1 %v4480_v28, %s4591_s30 }
 0x437   : > { %2545 = vst.msk [vmem:[#allocation2 + $0x48] sm:$0xff] %vm169_vm0, %v2513_v15 }
 0x438   : > { %v2106_v48 = vpop.permute.xlu0 %2105  ;;  %v2367_v41 = vpop.f32.mrb[36].mxu1 }
 0x439   : > { %v2514_v59 = vmax.f32 %v2367_v41, 0.0  ;;  %4119 = vmatprep.mubr.msk.f32.mxu1 %vm169_vm0, %v2106_v48  ;;  %v2369_v34 = vpop.f32.mrb[37].mxu1  ;;  %v2202_v35 = vsel %vm1041_vm4, %v2170_v40, %v2106_v48 }
 0x43a   : > { %2506 = vmatmul.mubr.f32.gmra.mrb[92].mxu1 %v2202_v35 }
 0x43b   : > { %2546 = vst.msk [vmem:[#allocation2 + $0x50] sm:$0xff] %vm169_vm0, %v2514_v59 }
 0x43e   : > { %v2615_v53 = vld [vmem:[#allocation2 + $0x48] sm:$0xff] }
 0x43f   : > { %2727 = vrot.lane.b32.xlu0 %v2615_v53, %s4590_s29 }
 0x440   : > { %v2372_v20 = vpop.f32.mrb[38].mxu1 }
 0x441   : > { %v2515_v62 = vmax.f32 %v2372_v20, 0.0  ;;  %v2374_v57 = vpop.f32.mrb[39].mxu1 }
 0x442   : > { %v2616_v5 = vld [vmem:[#allocation2 + $0x50] sm:$0xff] }
 0x443   : > { %v2651_v8 = vld [vmem:[#allocation2 + $0x49] sm:$0xff]  ;;  %2547 = vst.msk [vmem:[#allocation2 + $0x68] sm:$0xff] %vm169_vm0, %v2515_v62  ;;  %2729 = vrot.lane.b32.xlu1 %v2616_v5, %s4590_s29  ;;  %v2652_v2 = vld [vmem:[#allocation2 + $0x51] sm:$0xff] }
 0x444   : > { %2871 = vrot.lane.b32.xlu0 %v2651_v8, %s4591_s30 }
 0x445   : > { %v2377_v63 = vpop.f32.mrb[40].mxu1 }
 0x446   : > { %v2516_v13 = vmax.f32 %v2377_v63, 0.0  ;;  %v2379_v43 = vpop.f32.mrb[41].mxu1 }
 0x448   : > { %2873 = vrot.lane.b32.xlu0 %v2652_v2, %s4591_s30  ;;  %2548 = vst.msk [vmem:[#allocation2 + $0x70] sm:$0xff] %vm169_vm0, %v2516_v13 }
 0x44a   : > { %v2617_v33 = vld [vmem:[#allocation2 + $0x68] sm:$0xff] }
 0x44b   : > { %2731 = vrot.lane.b32.xlu1 %v2617_v33, %s4590_s29 }
 0x44f   : > { %v2618_v58 = vld [vmem:[#allocation2 + $0x70] sm:$0xff] }
 0x450   : > { %v2653_v14 = vld [vmem:[#allocation2 + $0x69] sm:$0xff]  ;;  %2733 = vrot.lane.b32.xlu1 %v2618_v58, %s4590_s29  ;;  %v2654_v36 = vld [vmem:[#allocation2 + $0x71] sm:$0xff] }
 0x451   : > { %2875 = vrot.lane.b32.xlu0 %v2653_v14, %s4591_s30 }
 0x455   : > { %2877 = vrot.lane.b32.xlu0 %v2654_v36, %s4591_s30 }
 0x464   : > { %v2382_v29 = vpop.f32.mrb[42].mxu1 }
 0x465   : > { %v2517_v56 = vmax.f32 %v2382_v29, 0.0  ;;  %v2384_v47 = vpop.f32.mrb[43].mxu1 }
 0x467   : > { %2549 = vst.msk [vmem:[#allocation2 + $0x88] sm:$0xff] %vm169_vm0, %v2517_v56 }
 0x468   : > { %v2387_v1 = vpop.f32.mrb[44].mxu1 }
 0x469   : > { %v2518_v52 = vmax.f32 %v2387_v1, 0.0  ;;  %v2389_v7 = vpop.f32.mrb[45].mxu1 }
 0x46b   : > { %2550 = vst.msk [vmem:[#allocation2 + $0x90] sm:$0xff] %vm169_vm0, %v2518_v52 }
 0x46e   : > { %v2619_v44 = vld [vmem:[#allocation2 + $0x88] sm:$0xff] }
 0x46f   : > { %2735 = vrot.lane.b32.xlu1 %v2619_v44, %s4590_s29 }
 0x470   : > { %v2392_v16 = vpop.f32.mrb[46].mxu1 }
 0x471   : > { %v2519_v19 = vmax.f32 %v2392_v16, 0.0  ;;  %v2394_v30 = vpop.f32.mrb[47].mxu1 }
 0x472   : > { %v2620_v9 = vld [vmem:[#allocation2 + $0x90] sm:$0xff] }
 0x473   : > { %v2655_v4 = vld [vmem:[#allocation2 + $0x89] sm:$0xff]  ;;  %2551 = vst.msk [vmem:[#allocation2 + $0xa8] sm:$0xff] %vm169_vm0, %v2519_v19  ;;  %2737 = vrot.lane.b32.xlu1 %v2620_v9, %s4590_s29  ;;  %v2656_v23 = vld [vmem:[#allocation2 + $0x91] sm:$0xff] }
 0x474   : > { %2879 = vrot.lane.b32.xlu0 %v2655_v4, %s4591_s30  ;;  %v2397_v50 = vpop.f32.mrb[48].mxu1  ;;  %v4120_v4 = vld [vmem:[%s6695_s1 + $0x120] sm:$0xff] }
 0x475   : > { %v2520_v22 = vmax.f32 %v2397_v50, 0.0  ;;  %v2399_v31 = vpop.f32.mrb[49].mxu1  ;;  %v4121_v50 = vld [vmem:[%s6695_s1 + $0x128] sm:$0xff] }
 0x476   : > { %v4245_v31 = vpack.c.bf16 %v4121_v50, %v4120_v4 }
 0x477   : > { %2552 = vst.msk [vmem:[#allocation2 + $0xb0] sm:$0xff] %vm169_vm0, %v2520_v22 }
 0x478   : > { %2881 = vrot.lane.b32.xlu0 %v2656_v23, %s4591_s30  ;;  %4246 = vmatpush1.bf16.msra.mxu0 %v4245_v31  ;;  %v4137_v31 = vld [vmem:[%s6695_s1 + $0x1a8] sm:$0xff] }
 0x479   : > { %4247 = vmatprep.subr.bf16.mxu0 %v4592_v49 }
 0x47a   : > { %v2621_v6 = vld [vmem:[#allocation2 + $0xa8] sm:$0xff] }
 0x47b   : > { %2739 = vrot.lane.b32.xlu1 %v2621_v6, %s4590_s29 }
 0x47c   : > { %v2402_v55 = vpop.f32.mrb[50].mxu1 }
 0x47d   : > { %v2521_v46 = vmax.f32 %v2402_v55, 0.0  ;;  %v2404_v17 = vpop.f32.mrb[51].mxu1 }
 0x47e   : > { %v2622_v38 = vld [vmem:[#allocation2 + $0xb0] sm:$0xff] }
 0x47f   : > { %v2657_v61 = vld [vmem:[#allocation2 + $0xa9] sm:$0xff]  ;;  %2553 = vst.msk [vmem:[#allocation2 + $0xc8] sm:$0xff] %vm169_vm0, %v2521_v46  ;;  %2741 = vrot.lane.b32.xlu1 %v2622_v38, %s4590_s29  ;;  %v2658_v3 = vld [vmem:[#allocation2 + $0xb1] sm:$0xff] }
 0x480   : > { %2883 = vrot.lane.b32.xlu0 %v2657_v61, %s4591_s30  ;;  %v2407_v18 = vpop.f32.mrb[52].mxu1  ;;  %v4122_v17 = vld [vmem:[%s6695_s1 + $0x130] sm:$0xff]  ;;  %v4123_v38 = vld [vmem:[%s6695_s1 + $0x138] sm:$0xff] }
 0x481   : > { %v2522_v10 = vmax.f32 %v2407_v18, 0.0  ;;  %v2409_v42 = vpop.f32.mrb[53].mxu1  ;;  %v4248_v18 = vpack.c.bf16 %v4123_v38, %v4122_v17 }
 0x483   : > { %2554 = vst.msk [vmem:[#allocation2 + $0xd0] sm:$0xff] %vm169_vm0, %v2522_v10  ;;  %4249 = vmatpush1.bf16.msra.mxu0 %v4248_v18  ;;  %v2577_v18 = vld [vmem:[#allocation2 + $0x27] sm:$0xff] }
 0x484   : > { %2885 = vrot.lane.b32.xlu0 %v2658_v3, %s4591_s30  ;;  %4250 = vmatprep.subr.bf16.mxu0 %v4592_v49 }
 0x486   : > { %v2623_v54 = vld [vmem:[#allocation2 + $0xc8] sm:$0xff] }
 0x487   : > { %2743 = vrot.lane.b32.xlu1 %v2623_v54, %s4590_s29 }
 0x488   : > { %v2412_v24 = vpop.f32.mrb[54].mxu1 }
 0x489   : > { %v2523_v25 = vmax.f32 %v2412_v24, 0.0  ;;  %v2414_v11 = vpop.f32.mrb[55].mxu1  ;;  %v4124_v24 = vld [vmem:[%s6695_s1 + $0x140] sm:$0xff] }
 0x48a   : > { %v2624_v39 = vld [vmem:[#allocation2 + $0xd0] sm:$0xff] }
 0x48b   : > { %v2659_v32 = vld [vmem:[#allocation2 + $0xc9] sm:$0xff]  ;;  %2555 = vst.msk [vmem:[#allocation2 + $0xe8] sm:$0xff] %vm169_vm0, %v2523_v25  ;;  %2745 = vrot.lane.b32.xlu1 %v2624_v39, %s4590_s29  ;;  %v2660_v0 = vld [vmem:[#allocation2 + $0xd1] sm:$0xff] }
 0x48c   : > { %2887 = vrot.lane.b32.xlu0 %v2659_v32, %s4591_s30  ;;  %v2417_v12 = vpop.f32.mrb[56].mxu1  ;;  %v4125_v25 = vld [vmem:[%s6695_s1 + $0x148] sm:$0xff] }
 0x48d   : > { %v2524_v51 = vmax.f32 %v2417_v12, 0.0  ;;  %v2419_v37 = vpop.f32.mrb[57].mxu1  ;;  %v4251_v39 = vpack.c.bf16 %v4125_v25, %v4124_v24 }
 0x48f   : > { %2556 = vst.msk [vmem:[#allocation2 + $0xf0] sm:$0xff] %vm169_vm0, %v2524_v51  ;;  %4252 = vmatpush1.bf16.msra.mxu0 %v4251_v39 }
 0x490   : > { %2889 = vrot.lane.b32.xlu0 %v2660_v0, %s4591_s30  ;;  %v4126_v0 = vld [vmem:[%s6695_s1 + $0x150] sm:$0xff]  ;;  %4253 = vmatprep.subr.bf16.mxu0 %v4592_v49 }
 0x491   : > { %v2422_v21 = vpop.f32.mrb[58].mxu1 }
 0x492   : > { %v2525_v60 = vmax.f32 %v2422_v21, 0.0  ;;  %v2424_v26 = vpop.f32.mrb[59].mxu1  ;;  %v2625_v28 = vld [vmem:[#allocation2 + $0xe8] sm:$0xff]  ;;  %v4127_v21 = vld [vmem:[%s6695_s1 + $0x158] sm:$0xff] }
 0x493   : > { %2747 = vrot.lane.b32.xlu1 %v2625_v28, %s4590_s29  ;;  %v4254_v26 = vpack.c.bf16 %v4127_v21, %v4126_v0 }
 0x494   : > { %2557 = vst.msk [vmem:[#allocation2 + $0x108] sm:$0xff] %vm169_vm0, %v2525_v60 }
 0x495   : > { %v2427_v45 = vpop.f32.mrb[60].mxu1  ;;  %4255 = vmatpush1.bf16.msra.mxu0 %v4254_v26 }
 0x496   : > { %v2526_v15 = vmax.f32 %v2427_v45, 0.0  ;;  %v2429_v27 = vpop.f32.mrb[61].mxu1  ;;  %v2626_v40 = vld [vmem:[#allocation2 + $0xf0] sm:$0xff]  ;;  %4256 = vmatprep.subr.bf16.mxu0 %v4592_v49 }
 0x497   : > { %v2661_v48 = vld [vmem:[#allocation2 + $0xe9] sm:$0xff]  ;;  %2749 = vrot.lane.b32.xlu1 %v2626_v40, %s4590_s29  ;;  %v2662_v35 = vld [vmem:[#allocation2 + $0xf1] sm:$0xff]  ;;  %v4128_v40 = vld [vmem:[%s6695_s1 + $0x160] sm:$0xff] }
 0x498   : > { %2891 = vrot.lane.b32.xlu0 %v2661_v48, %s4591_s30  ;;  %2558 = vst.msk [vmem:[#allocation2 + $0x110] sm:$0xff] %vm169_vm0, %v2526_v15 }
 0x499   : > { %v2432_v41 = vpop.f32.mrb[62].mxu1 }
 0x49a   : > { %v2527_v59 = vmax.f32 %v2432_v41, 0.0  ;;  %v2434_v34 = vpop.f32.mrb[63].mxu1  ;;  %v4129_v41 = vld [vmem:[%s6695_s1 + $0x168] sm:$0xff] }
 0x49b   : > { %v2627_v53 = vld [vmem:[#allocation2 + $0x108] sm:$0xff] }
 0x49c   : > { %2893 = vrot.lane.b32.xlu0 %v2662_v35, %s4591_s30  ;;  %2559 = vst.msk [vmem:[#allocation2 + $0x128] sm:$0xff] %vm169_vm0, %v2527_v59  ;;  %2751 = vrot.lane.b32.xlu1 %v2627_v53, %s4590_s29  ;;  %v4257_v35 = vpack.c.bf16 %v4129_v41, %v4128_v40 }
 0x49d   : > { %v2437_v20 = vpop.f32.mrb[64].mxu1 }
 0x49e   : > { %v2528_v62 = vmax.f32 %v2437_v20, 0.0  ;;  %v2439_v57 = vpop.f32.mrb[65].mxu1  ;;  %4258 = vmatpush1.bf16.msra.mxu0 %v4257_v35 }
 0x49f   : > { %v2628_v5 = vld [vmem:[#allocation2 + $0x110] sm:$0xff]  ;;  %v4131_v57 = vld [vmem:[%s6695_s1 + $0x178] sm:$0xff]  ;;  %4259 = vmatprep.subr.bf16.mxu0 %v4592_v49 }
 0x4a0   : > { %v2663_v8 = vld [vmem:[#allocation2 + $0x109] sm:$0xff]  ;;  %2560 = vst.msk [vmem:[#allocation2 + $0x130] sm:$0xff] %vm169_vm0, %v2528_v62  ;;  %2753 = vrot.lane.b32.xlu1 %v2628_v5, %s4590_s29  ;;  %v2664_v2 = vld [vmem:[#allocation2 + $0x111] sm:$0xff] }
 0x4a1   : > { %2895 = vrot.lane.b32.xlu0 %v2663_v8, %s4591_s30  ;;  %v2442_v63 = vpop.f32.mrb[66].mxu1  ;;  %v4130_v62 = vld [vmem:[%s6695_s1 + $0x170] sm:$0xff] }
 0x4a2   : > { %v2529_v13 = vmax.f32 %v2442_v63, 0.0  ;;  %v2444_v43 = vpop.f32.mrb[67].mxu1  ;;  %v4260_v8 = vpack.c.bf16 %v4131_v57, %v4130_v62 }
 0x4a3   : > { %v2629_v33 = vld [vmem:[#allocation2 + $0x128] sm:$0xff] }
 0x4a4   : > { %2561 = vst.msk [vmem:[#allocation2 + $0x148] sm:$0xff] %vm169_vm0, %v2529_v13  ;;  %2755 = vrot.lane.b32.xlu1 %v2629_v33, %s4590_s29  ;;  %v4132_v33 = vld [vmem:[%s6695_s1 + $0x180] sm:$0xff]  ;;  %4261 = vmatpush1.bf16.msra.mxu0 %v4260_v8 }
 0x4a5   : > { %2897 = vrot.lane.b32.xlu0 %v2664_v2, %s4591_s30  ;;  %v2447_v58 = vpop.f32.mrb[68].mxu1  ;;  %4262 = vmatprep.subr.bf16.mxu0 %v4592_v49 }
 0x4a6   : > { %v2530_v14 = vmax.f32 %v2447_v58, 0.0  ;;  %v2449_v36 = vpop.f32.mrb[69].mxu1  ;;  %v4133_v58 = vld [vmem:[%s6695_s1 + $0x188] sm:$0xff] }
 0x4a7   : > { %v2665_v29 = vld [vmem:[#allocation2 + $0x129] sm:$0xff]  ;;  %v2666_v7 = vld [vmem:[#allocation2 + $0x131] sm:$0xff] }
 0x4a8   : > { %v2630_v56 = vld [vmem:[#allocation2 + $0x130] sm:$0xff]  ;;  %2562 = vst.msk [vmem:[#allocation2 + $0x150] sm:$0xff] %vm169_vm0, %v2530_v14  ;;  %2899 = vrot.lane.b32.xlu1 %v2665_v29, %s4591_s30  ;;  %v6084_v14 = vpop.permute.xlu0 %4466  ;;  %v4263_v29 = vpack.c.bf16 %v4133_v58, %v4132_v33 }
 0x4a9   : > { %2757 = vrot.lane.b32.xlu0 %v2630_v56, %s4590_s29  ;;  %v2452_v47 = vpop.f32.mrb[70].mxu1  ;;  %v4477_v56 = vpop.permute.xlu1 %4476 }
 0x4aa   : > { %v2531_v1 = vmax.f32 %v2452_v47, 0.0  ;;  %v2454_v52 = vpop.f32.mrb[71].mxu1  ;;  %4264 = vmatpush1.bf16.msra.mxu0 %v4263_v29 }
 0x4ab   : > { %v2631_v44 = vld [vmem:[#allocation2 + $0x148] sm:$0xff]  ;;  %4265 = vmatprep.subr.bf16.mxu0 %v4592_v49 }
 0x4ac   : > { %2563 = vst.msk [vmem:[#allocation2 + $0x168] sm:$0xff] %vm169_vm0, %v2531_v1  ;;  %2759 = vrot.lane.b32.xlu1 %v2631_v44, %s4590_s29  ;;  %v4134_v44 = vld [vmem:[%s6695_s1 + $0x190] sm:$0xff]  ;;  %v6097_v50 = vpop.permute.xlu0 %4471 }
 0x4ad   : > { %2901 = vrot.lane.b32.xlu0 %v2666_v7, %s4591_s30  ;;  %v2457_v16 = vpop.f32.mrb[72].mxu1  ;;  %v4482_v4 = vpop.permute.xlu1 %4481 }
 0x4ae   : > { %v2532_v19 = vmax.f32 %v2457_v16, 0.0  ;;  %v2459_v30 = vpop.f32.mrb[73].mxu1  ;;  %v4135_v16 = vld [vmem:[%s6695_s1 + $0x198] sm:$0xff]  ;;  %v4483_v17 = vunpack.i.l.bf16 %v4482_v4 }
 0x4af   : > { %v2667_v9 = vld [vmem:[#allocation2 + $0x149] sm:$0xff]  ;;  %v2668_v3 = vld [vmem:[#allocation2 + $0x151] sm:$0xff] }
 0x4b0   : > { %2564 = vst.msk [vmem:[#allocation2 + $0x170] sm:$0xff] %vm169_vm0, %v2532_v19  ;;  %2903 = vrot.lane.b32.xlu1 %v2667_v9, %s4591_s30  ;;  %v2632_v55 = vld [vmem:[#allocation2 + $0x150] sm:$0xff]  ;;  %v4266_v19 = vpack.c.bf16 %v4135_v16, %v4134_v44 }
 0x4b1   : > { %v2462_v22 = vpop.f32.mrb[74].mxu1 }
 0x4b2   : > { %v2533_v23 = vmax.f32 %v2462_v22, 0.0  ;;  %v2464_v6 = vpop.f32.mrb[75].mxu1  ;;  %v4136_v22 = vld [vmem:[%s6695_s1 + $0x1a0] sm:$0xff]  ;;  %4267 = vmatpush1.bf16.msra.mxu0 %v4266_v19 }
 0x4b3   : > { %v2633_v46 = vld [vmem:[#allocation2 + $0x168] sm:$0xff]  ;;  %v4478_v6 = vunpack.i.l.bf16 %v4477_v56  ;;  %4268 = vmatprep.subr.bf16.mxu0 %v4592_v49 }
 0x4b4   : > { %2565 = vst.msk [vmem:[#allocation2 + $0x188] sm:$0xff] %vm169_vm0, %v2533_v23  ;;  %2761 = vrot.lane.b32.xlu1 %v2632_v55, %s4590_s29  ;;  %2763 = vrot.lane.b32.xlu0 %v2633_v46, %s4590_s29  ;;  %v4479_v23 = vunpack.i.h.bf16 %v4477_v56  ;;  %v4269_v55 = vpack.c.bf16 %v4137_v31, %v4136_v22  ;;  %v4484_v46 = vunpack.i.h.bf16 %v4482_v4 }
 0x4b5   : > { %v2467_v61 = vpop.f32.mrb[76].mxu1 }
 0x4b6   : > { %v2534_v10 = vmax.f32 %v2467_v61, 0.0  ;;  %v2469_v42 = vpop.f32.mrb[77].mxu1  ;;  %4270 = vmatpush1.bf16.msra.mxu0 %v4269_v55 }
 0x4b7   : > { %v2669_v54 = vld [vmem:[#allocation2 + $0x169] sm:$0xff]  ;;  %v2670_v15 = vld [vmem:[#allocation2 + $0x171] sm:$0xff] }
 0x4b8   : > { %2566 = vst.msk [vmem:[#allocation2 + $0x190] sm:$0xff] %vm169_vm0, %v2534_v10  ;;  %2905 = vrot.lane.b32.xlu1 %v2668_v3, %s4591_s30  ;;  %2907 = vrot.lane.b32.xlu0 %v2669_v54, %s4591_s30  ;;  %v2634_v51 = vld [vmem:[#allocation2 + $0x170] sm:$0xff]  ;;  %v2973_v3 = vsel %vm169_vm0, %v2577_v18, %v4478_v6  ;;  %v2728_v54 = vpop.permute.xlu0 %2727 }
 0x4b9   : > { %v2472_v11 = vpop.f32.mrb[78].mxu1  ;;  %v2578_v10 = vld [vmem:[#allocation2 + $0x2f] sm:$0xff]  ;;  %v6113_v24 = vsel %vm745_vm2, %v2973_v3, %v4483_v17 }
 0x4ba   : > { %v2535_v32 = vmax.f32 %v2472_v11, 0.0  ;;  %v2474_v12 = vpop.f32.mrb[79].mxu1  ;;  %v2974_v42 = vsel %vm169_vm0, %v2578_v10, %v4479_v23  ;;  %v2730_v11 = vpop.permute.xlu1 %2729 }
 0x4bb   : > { %v2635_v37 = vld [vmem:[#allocation2 + $0x188] sm:$0xff]  ;;  %v6116_v49 = vsel %vm745_vm2, %v2974_v42, %v4484_v46 }
 0x4bc   : > { %2567 = vst.msk [vmem:[#allocation2 + $0x1a8] sm:$0xff] %vm169_vm0, %v2535_v32  ;;  %2765 = vrot.lane.b32.xlu0 %v2634_v51, %s4590_s29  ;;  %2767 = vrot.lane.b32.xlu1 %v2635_v37, %s4590_s29  ;;  %v4485_v39 = vpack.i.bf16 %v6116_v49, %v6113_v24  ;;  %v2872_v32 = vpop.permute.xlu0 %2871  ;;  %v2579_v12 = vld [vmem:[#allocation2 + $0x47] sm:$0xff] }
 0x4bd   : > { %v2477_v60 = vpop.f32.mrb[80].mxu1  ;;  %v2975_v37 = vsel %vm169_vm0, %v2579_v12, %v2728_v54  ;;  %v2583_v46 = vld [vmem:[#allocation2 + $0x87] sm:$0xff] }
 0x4be   : > { %v2536_v28 = vmax.f32 %v2477_v60, 0.0  ;;  %v2479_v45 = vpop.f32.mrb[81].mxu1  ;;  %v2732_v51 = vpop.permute.xlu1 %2731  ;;  %v6124_v0 = vsel %vm745_vm2, %v2975_v37, %v2872_v32  ;;  %v2585_v37 = vld [vmem:[#allocation2 + $0xa7] sm:$0xff] }
 0x4bf   : > { %v2671_v27 = vld [vmem:[#allocation2 + $0x189] sm:$0xff]  ;;  %v2672_v43 = vld [vmem:[#allocation2 + $0x191] sm:$0xff] }
 0x4c0   : > { %2568 = vst.msk [vmem:[#allocation2 + $0x1b0] sm:$0xff] %vm169_vm0, %v2536_v28  ;;  %2909 = vrot.lane.b32.xlu0 %v2670_v15, %s4591_s30  ;;  %2911 = vrot.lane.b32.xlu1 %v2671_v27, %s4591_s30  ;;  %v2636_v53 = vld [vmem:[#allocation2 + $0x190] sm:$0xff]  ;;  %v2874_v45 = vpop.permute.xlu0 %2873 }
 0x4c1   : > { %v2482_v48 = vpop.f32.mrb[82].mxu1 }
 0x4c2   : > { %v2537_v59 = vmax.f32 %v2482_v48, 0.0  ;;  %v2484_v34 = vpop.f32.mrb[83].mxu1  ;;  %v2734_v21 = vpop.permute.xlu1 %2733 }
 0x4c3   : > { %v2637_v20 = vld [vmem:[#allocation2 + $0x1a8] sm:$0xff] }
 0x4c4   : > { %2569 = vst.msk [vmem:[#allocation2 + $0x1c8] sm:$0xff] %vm169_vm0, %v2537_v59  ;;  %2769 = vrot.lane.b32.xlu1 %v2636_v53, %s4590_s29  ;;  %2771 = vrot.lane.b32.xlu0 %v2637_v20, %s4590_s29  ;;  %v2876_v27 = vpop.permute.xlu0 %2875 }
 0x4c5   : > { %v2487_v5 = vpop.f32.mrb[84].mxu1 }
 0x4c6   : > { %v2538_v63 = vmax.f32 %v2487_v5, 0.0  ;;  %v2489_v13 = vpop.f32.mrb[85].mxu1 }
 0x4c7   : > { %v2673_v2 = vld [vmem:[#allocation2 + $0x1a9] sm:$0xff]  ;;  %v2674_v30 = vld [vmem:[#allocation2 + $0x1b1] sm:$0xff] }
 0x4c8   : > { %2570 = vst.msk [vmem:[#allocation2 + $0x1d0] sm:$0xff] %vm169_vm0, %v2538_v63  ;;  %2913 = vrot.lane.b32.xlu1 %v2672_v43, %s4591_s30  ;;  %2915 = vrot.lane.b32.xlu0 %v2673_v2, %s4591_s30  ;;  %v2638_v52 = vld [vmem:[#allocation2 + $0x1b0] sm:$0xff]  ;;  %v2878_v48 = vpop.permute.xlu0 %2877 }
 0x4c9   : > { %v2492_v36 = vpop.f32.mrb[86].mxu1 }
 0x4ca   : > { %v2539_v47 = vmax.f32 %v2492_v36, 0.0  ;;  %v2494_v1 = vpop.f32.mrb[87].mxu1 }
 0x4cb   : > { %v2639_v7 = vld [vmem:[#allocation2 + $0x1c8] sm:$0xff] }
 0x4cc   : > { %2571 = vst.msk [vmem:[#allocation2 + $0x1e8] sm:$0xff] %vm169_vm0, %v2539_v47  ;;  %2773 = vrot.lane.b32.xlu0 %v2638_v52, %s4590_s29  ;;  %2775 = vrot.lane.b32.xlu1 %v2639_v7, %s4590_s29  ;;  %v2580_v47 = vld [vmem:[#allocation2 + $0x4f] sm:$0xff] }
 0x4cd   : > { %v2582_v1 = vld [vmem:[#allocation2 + $0x6f] sm:$0xff]  ;;  %v2976_v52 = vsel %vm169_vm0, %v2580_v47, %v2730_v11 }
 0x4ce   : > { %v2978_v7 = vsel %vm169_vm0, %v2582_v1, %v2734_v21  ;;  %v6155_v19 = vsel %vm745_vm2, %v2976_v52, %v2874_v45  ;;  %v2586_v11 = vld [vmem:[#allocation2 + $0xaf] sm:$0xff] }
 0x4cf   : > { %v2675_v9 = vld [vmem:[#allocation2 + $0x1c9] sm:$0xff]  ;;  %v2676_v25 = vld [vmem:[#allocation2 + $0x1d1] sm:$0xff]  ;;  %v4490_v31 = vpack.i.bf16 %v6155_v19, %v6124_v0 }
 0x4d0   : > { %2917 = vrot.lane.b32.xlu0 %v2674_v30, %s4591_s30  ;;  %2919 = vrot.lane.b32.xlu1 %v2675_v9, %s4591_s30  ;;  %v2640_v38 = vld [vmem:[#allocation2 + $0x1d0] sm:$0xff]  ;;  %v2581_v30 = vld [vmem:[#allocation2 + $0x67] sm:$0xff]  ;;  %v6158_v9 = vsel %vm745_vm2, %v2978_v7, %v2878_v48 }
 0x4d1   : > { %v2977_v4 = vsel %vm169_vm0, %v2581_v30, %v2732_v51  ;;  %v2645_v7 = vld [vmem:[#allocation2 + $0x228] sm:$0xff] }
 0x4d2   : > { %v6166_v22 = vsel %vm745_vm2, %v2977_v4, %v2876_v27 }
 0x4d3   : > { %v2641_v61 = vld [vmem:[#allocation2 + $0x1e8] sm:$0xff]  ;;  %v4495_v23 = vpack.i.bf16 %v6158_v9, %v6166_v22 }
 0x4d4   : > { %2777 = vrot.lane.b32.xlu1 %v2640_v38, %s4590_s29  ;;  %2779 = vrot.lane.b32.xlu0 %v2641_v61, %s4590_s29 }
 0x4d8   : > { %2921 = vrot.lane.b32.xlu1 %v2676_v25, %s4591_s30  ;;  %v2584_v25 = vld [vmem:[#allocation2 + $0x8f] sm:$0xff] }
 0x4dc   : > { %4486 = vrot.lane.b32.xlu1 %v4485_v39, %s4593_s8 }
 0x4e0   : > { %3173 = vrot.lane.b32.xlu1 %v6124_v0, %s4594_s9 }
 0x4e1   : > { %v2736_v60 = vpop.permute.xlu1 %2735 }
 0x4e2   : > { %v2979_v17 = vsel %vm169_vm0, %v2583_v46, %v2736_v60 }
 0x4e5   : > { %v6128_v26 = vpop.permute.xlu1 %2737 }
 0x4e6   : > { %v2880_v34 = vpop.permute.xlu0 %2879  ;;  %v2980_v39 = vsel %vm169_vm0, %v2584_v25, %v6128_v26 }
 0x4e7   : > { %v6180_v61 = vsel %vm745_vm2, %v2979_v17, %v2880_v34  ;;  %v2593_v17 = vld [vmem:[#allocation2 + $0x127] sm:$0xff] }
 0x4ea   : > { %v2882_v8 = vpop.permute.xlu0 %2881 }
 0x4eb   : > { %v6197_v51 = vsel %vm745_vm2, %v2980_v39, %v2882_v8 }
 0x4ec   : > { %v4500_v45 = vpack.i.bf16 %v6197_v51, %v6180_v61 }
 0x4ed   : > { %v6130_v28 = vpop.permute.xlu1 %2739 }
 0x4ee   : > { %v2981_v60 = vsel %vm169_vm0, %v2585_v37, %v6130_v28  ;;  %v2587_v28 = vld [vmem:[#allocation2 + $0xc7] sm:$0xff] }
 0x4f1   : > { %v6132_v15 = vpop.permute.xlu1 %2741 }
 0x4f2   : > { %v2884_v43 = vpop.permute.xlu0 %2883  ;;  %v2982_v32 = vsel %vm169_vm0, %v2586_v11, %v6132_v15 }
 0x4f3   : > { %v6209_v26 = vsel %vm745_vm2, %v2981_v60, %v2884_v43 }
 0x4f6   : > { %v2886_v44 = vpop.permute.xlu0 %2885 }
 0x4f7   : > { %v6200_v21 = vsel %vm745_vm2, %v2982_v32, %v2886_v44 }
 0x4f8   : > { %v4505_v15 = vpack.i.bf16 %v6200_v21, %v6209_v26 }
 0x4f9   : > { %v6134_v40 = vpop.permute.xlu1 %2743 }
 0x4fd   : > { %v6136_v41 = vpop.permute.xlu1 %2745 }
 0x4fe   : > { %v2888_v6 = vpop.permute.xlu0 %2887 }
 0x501   : > { %v2497_v59 = vpop.f32.mrb[88].mxu1 }
 0x502   : > { %v2540_v35 = vmax.f32 %v2497_v59, 0.0  ;;  %v2499_v53 = vpop.f32.mrb[89].mxu1  ;;  %v2890_v18 = vpop.permute.xlu0 %2889  ;;  %v2983_v59 = vsel %vm169_vm0, %v2587_v28, %v6134_v40 }
 0x504   : > { %2572 = vst.msk [vmem:[#allocation2 + $0x1f0] sm:$0xff] %vm169_vm0, %v2540_v35  ;;  %v6224_v35 = vsel %vm745_vm2, %v2983_v59, %v2888_v6 }
 0x505   : > { %v2502_v20 = vpop.f32.mrb[90].mxu1  ;;  %v6139_v62 = vpop.permute.xlu1 %2747 }
 0x506   : > { %v2541_v57 = vmax.f32 %v2502_v20, 0.0  ;;  %v2504_v5 = vpop.f32.mrb[91].mxu1  ;;  %v2588_v20 = vld [vmem:[#allocation2 + $0xcf] sm:$0xff] }
 0x508   : > { %2573 = vst.msk [vmem:[#allocation2 + $0x208] sm:$0xff] %vm169_vm0, %v2541_v57  ;;  %v2984_v57 = vsel %vm169_vm0, %v2588_v20, %v6136_v41 }
 0x509   : > { %v6142_v63 = vpop.permute.xlu1 %2749  ;;  %v6235_v40 = vsel %vm745_vm2, %v2984_v57, %v2890_v18  ;;  %v2646_v57 = vld [vmem:[#allocation2 + $0x230] sm:$0xff] }
 0x50a   : > { %v2892_v54 = vpop.permute.xlu0 %2891  ;;  %v4510_v43 = vpack.i.bf16 %v6235_v40, %v6224_v35 }
 0x50b   : > { %v2677_v13 = vld [vmem:[#allocation2 + $0x1e9] sm:$0xff]  ;;  %v2678_v42 = vld [vmem:[#allocation2 + $0x1f1] sm:$0xff] }
 0x50c   : > { %2923 = vrot.lane.b32.xlu0 %v2677_v13, %s4591_s30  ;;  %v2642_v29 = vld [vmem:[#allocation2 + $0x1f0] sm:$0xff] }
 0x50d   : > { %v2507_v2 = vpop.f32.mrb[92].mxu1  ;;  %v2590_v13 = vld [vmem:[#allocation2 + $0xef] sm:$0xff] }
 0x50e   : > { %v2542_v33 = vmax.f32 %v2507_v2, 0.0  ;;  %v6145_v58 = vpop.permute.xlu1 %2751  ;;  %v2509_v36 = vpop.f32.mrb[93].mxu1  ;;  %v2986_v2 = vsel %vm169_vm0, %v2590_v13, %v6142_v63 }
 0x50f   : > { %v2643_v56 = vld [vmem:[#allocation2 + $0x208] sm:$0xff]  ;;  %v2894_v27 = vpop.permute.xlu0 %2893 }
 0x510   : > { %2574 = vst.msk [vmem:[#allocation2 + $0x210] sm:$0xff] %vm169_vm0, %v2542_v33  ;;  %2781 = vrot.lane.b32.xlu0 %v2642_v29, %s4590_s29  ;;  %2783 = vrot.lane.b32.xlu1 %v2643_v56, %s4590_s29  ;;  %v2589_v36 = vld [vmem:[#allocation2 + $0xe7] sm:$0xff]  ;;  %v6247_v29 = vsel %vm745_vm2, %v2986_v2, %v2894_v27  ;;  %v2682_v2 = vld [vmem:[#allocation2 + $0x231] sm:$0xff] }
 0x511   : > { %v2985_v56 = vsel %vm169_vm0, %v2589_v36, %v6139_v62  ;;  %v2591_v62 = vld [vmem:[#allocation2 + $0x107] sm:$0xff] }
 0x512   : > { %v6152_v16 = vpop.permute.xlu1 %2753  ;;  %v6255_v47 = vsel %vm745_vm2, %v2985_v56, %v2892_v54  ;;  %v2987_v44 = vsel %vm169_vm0, %v2591_v62, %v6145_v58  ;;  %v2592_v58 = vld [vmem:[#allocation2 + $0x10f] sm:$0xff] }
 0x513   : > { %v2896_v53 = vpop.permute.xlu0 %2895  ;;  %v4515_v63 = vpack.i.bf16 %v6247_v29, %v6255_v47  ;;  %v2988_v18 = vsel %vm169_vm0, %v2592_v58, %v6152_v16  ;;  %v2594_v16 = vld [vmem:[#allocation2 + $0x12f] sm:$0xff] }
 0x514   : > { %3175 = vrot.lane.b32.xlu0 %v6155_v19, %s4594_s9  ;;  %3179 = vrot.lane.b32.xlu1 %v6158_v9, %s4594_s9  ;;  %v6269_v4 = vsel %vm745_vm2, %v2987_v44, %v2896_v53  ;;  %v4473_v53 = vunpack.i.l.bf16 %v6097_v50 }
 0x516   : > { %v6172_v55 = vpop.permute.xlu1 %2755 }
 0x517   : > { %v2679_v3 = vld [vmem:[#allocation2 + $0x209] sm:$0xff]  ;;  %v2898_v33 = vpop.permute.xlu0 %2897  ;;  %v2680_v46 = vld [vmem:[#allocation2 + $0x211] sm:$0xff] }
 0x518   : > { %4491 = vrot.lane.b32.xlu0 %v4490_v31, %s4593_s8  ;;  %4496 = vrot.lane.b32.xlu1 %v4495_v23, %s4593_s8  ;;  %v2644_v8 = vld [vmem:[#allocation2 + $0x210] sm:$0xff]  ;;  %v6285_v25 = vsel %vm745_vm2, %v2988_v18, %v2898_v33 }
 0x519   : > { %v2681_v31 = vld [vmem:[#allocation2 + $0x229] sm:$0xff] }
 0x51a   : > { %v6177_v38 = vpop.permute.xlu1 %2899 }
 0x51b   : > { %v2758_v52 = vpop.permute.xlu0 %2757 }
 0x51c   : > { %3177 = vrot.lane.b32.xlu0 %v6166_v22, %s4594_s9  ;;  %3181 = vrot.lane.b32.xlu1 %v6180_v61, %s4594_s9  ;;  %v2990_v39 = vsel %vm169_vm0, %v2594_v16, %v2758_v52 }
 0x51e   : > { %v6186_v10 = vpop.permute.xlu1 %2759 }
 0x51f   : > { %v2902_v23 = vpop.permute.xlu0 %2901 }
 0x520   : > { %2925 = vrot.lane.b32.xlu0 %v2678_v42, %s4591_s30  ;;  %2927 = vrot.lane.b32.xlu1 %v2679_v3, %s4591_s30  ;;  %v2989_v42 = vsel %vm169_vm0, %v2593_v17, %v6172_v55  ;;  %v4520_v55 = vpack.i.bf16 %v6285_v25, %v6269_v4  ;;  %v6301_v37 = vsel %vm745_vm2, %v2990_v39, %v2902_v23  ;;  %v2599_v17 = vld [vmem:[#allocation2 + $0x187] sm:$0xff] }
 0x521   : > { %v6289_v11 = vsel %vm745_vm2, %v2989_v42, %v6177_v38  ;;  %v4468_v38 = vunpack.i.l.bf16 %v6084_v14 }
 0x522   : > { %v6194_v12 = vpop.permute.xlu1 %2903 }
 0x524   : > { %3183 = vrot.lane.b32.xlu0 %v6197_v51, %s4594_s9  ;;  %3187 = vrot.lane.b32.xlu1 %v6200_v21, %s4594_s9 }
 0x526   : > { %v6215_v48 = vpop.permute.xlu1 %2761  ;;  %v2764_v3 = vpop.permute.xlu0 %2763 }
 0x528   : > { %4501 = vrot.lane.b32.xlu0 %v4500_v45, %s4593_s8  ;;  %4506 = vrot.lane.b32.xlu1 %v4505_v15, %s4593_s8  ;;  %v2595_v45 = vld [vmem:[#allocation2 + $0x147] sm:$0xff] }
 0x529   : > { %v2575_v15 = vld [vmem:[#allocation2 + $0x7] sm:$0xff]  ;;  %v2991_v27 = vsel %vm169_vm0, %v2595_v45, %v6186_v10 }
 0x52a   : > { %v6221_v34 = vpop.permute.xlu1 %2905  ;;  %v2908_v60 = vpop.permute.xlu0 %2907  ;;  %v6313_v59 = vsel %vm745_vm2, %v2991_v27, %v6194_v12  ;;  %v2971_v20 = vsel %vm169_vm0, %v2575_v15, %v4468_v38  ;;  %v2603_v15 = vld [vmem:[#allocation2 + $0x1c7] sm:$0xff] }
 0x52b   : > { %v3007_v12 = vsel %vm745_vm2, %v2971_v20, %v4473_v53  ;;  %v2604_v20 = vld [vmem:[#allocation2 + $0x1cf] sm:$0xff] }
 0x52c   : > { %3185 = vrot.lane.b32.xlu0 %v6209_v26, %s4594_s9  ;;  %3189 = vrot.lane.b32.xlu1 %v6224_v35, %s4594_s9 }
 0x52e   : > { %v6232_v5 = vpop.permute.xlu1 %2767 }
 0x52f   : > { %v2995_v18 = vsel %vm169_vm0, %v2599_v17, %v6232_v5  ;;  %v2601_v5 = vld [vmem:[#allocation2 + $0x1a7] sm:$0xff] }
 0x530   : > { %2785 = vrot.lane.b32.xlu1 %v2644_v8, %s4590_s29  ;;  %3191 = vrot.lane.b32.xlu0 %v6235_v40, %s4594_s9  ;;  %v2766_v8 = vpop.permute.xlu0 %2765 }
 0x532   : > { %v6244_v41 = vpop.permute.xlu1 %2911 }
 0x533   : > { %v6364_v42 = vsel %vm745_vm2, %v2995_v18, %v6244_v41 }
 0x534   : > { %4511 = vrot.lane.b32.xlu0 %v4510_v43, %s4593_s8  ;;  %3195 = vrot.lane.b32.xlu1 %v6247_v29, %s4594_s9  ;;  %v2910_v56 = vpop.permute.xlu0 %2909 }
 0x536   : > { %v6259_v1 = vpop.permute.xlu1 %2769 }
 0x538   : > { %3193 = vrot.lane.b32.xlu0 %v6255_v47, %s4594_s9  ;;  %4516 = vrot.lane.b32.xlu1 %v4515_v63, %s4593_s8  ;;  %v2596_v63 = vld [vmem:[#allocation2 + $0x14f] sm:$0xff] }
 0x539   : > { %v2992_v52 = vsel %vm169_vm0, %v2596_v63, %v6215_v48  ;;  %v2598_v48 = vld [vmem:[#allocation2 + $0x16f] sm:$0xff] }
 0x53a   : > { %v6266_v30 = vpop.permute.xlu1 %2913  ;;  %v6338_v62 = vsel %vm745_vm2, %v2992_v52, %v6221_v34  ;;  %v2994_v34 = vsel %vm169_vm0, %v2598_v48, %v2766_v8 }
 0x53c   : > { %2787 = vrot.lane.b32.xlu0 %v2645_v7, %s4590_s29  ;;  %3197 = vrot.lane.b32.xlu1 %v6269_v4, %s4594_s9  ;;  %v2597_v7 = vld [vmem:[#allocation2 + $0x167] sm:$0xff] }
 0x53d   : > { %v2993_v44 = vsel %vm169_vm0, %v2597_v7, %v2764_v3  ;;  %v2600_v3 = vld [vmem:[#allocation2 + $0x18f] sm:$0xff] }
 0x53e   : > { %v6274_v6 = vpop.permute.xlu1 %2775  ;;  %v6346_v23 = vsel %vm745_vm2, %v2993_v44, %v2908_v60  ;;  %v2996_v16 = vsel %vm169_vm0, %v2600_v3, %v6259_v1  ;;  %v2602_v1 = vld [vmem:[#allocation2 + $0x1af] sm:$0xff] }
 0x53f   : > { %v6374_v39 = vsel %vm745_vm2, %v2996_v16, %v6266_v30  ;;  %v2999_v27 = vsel %vm169_vm0, %v2603_v15, %v6274_v6  ;;  %v2606_v16 = vld [vmem:[#allocation2 + $0x1ef] sm:$0xff]  ;;  %v2607_v15 = vld [vmem:[#allocation2 + $0x207] sm:$0xff] }
 0x540   : > { %2931 = vrot.lane.b32.xlu0 %v2681_v31, %s4591_s30  ;;  %2929 = vrot.lane.b32.xlu1 %v2680_v46, %s4591_s30  ;;  %v2772_v31 = vpop.permute.xlu0 %2771  ;;  %v6354_v46 = vsel %vm745_vm2, %v2994_v34, %v2910_v56 }
 0x541   : > { %v2997_v41 = vsel %vm169_vm0, %v2601_v5, %v2772_v31 }
 0x542   : > { %v6282_v54 = vpop.permute.xlu1 %2919 }
 0x543   : > { %v6400_v53 = vsel %vm745_vm2, %v2999_v27, %v6282_v54  ;;  %v2605_v54 = vld [vmem:[#allocation2 + $0x1e7] sm:$0xff] }
 0x544   : > { %3107 = vrot.lane.b32.xlu1 %v6289_v11, %s4593_s8  ;;  %3199 = vrot.lane.b32.xlu0 %v6285_v25, %s4594_s9  ;;  %v2916_v58 = vpop.permute.xlu0 %2915 }
 0x545   : > { %v6382_v60 = vsel %vm745_vm2, %v2997_v41, %v2916_v58 }
 0x546   : > { %v6298_v32 = vpop.permute.xlu1 %2777 }
 0x548   : > { %4521 = vrot.lane.b32.xlu0 %v4520_v55, %s4593_s8  ;;  %3203 = vrot.lane.b32.xlu1 %v6301_v37, %s4594_s9  ;;  %v2774_v55 = vpop.permute.xlu0 %2773 }
 0x549   : > { %v2998_v30 = vsel %vm169_vm0, %v2602_v1, %v2774_v55 }
 0x54a   : > { %v6309_v28 = vpop.permute.xlu1 %2921 }
 0x54c   : > { %3201 = vrot.lane.b32.xlu0 %v6289_v11, %s4594_s9  ;;  %3205 = vrot.lane.b32.xlu1 %v6313_v59, %s4594_s9  ;;  %v2918_v38 = vpop.permute.xlu0 %2917 }
 0x54d   : > { %v6390_v45 = vsel %vm745_vm2, %v2998_v30, %v2918_v38 }
 0x54e   : > { %v6321_v13 = vpop.permute.xlu1 %4486 }
 0x54f   : > { %v4488_v10 = vunpack.i.l.bf16 %v6321_v13 }
 0x550   : > { %2789 = vrot.lane.b32.xlu0 %v2646_v57, %s4590_s29  ;;  %3109 = vrot.lane.b32.xlu1 %v6301_v37, %s4593_s8  ;;  %v3000_v57 = vsel %vm169_vm0, %v2604_v20, %v6298_v32  ;;  %v2780_v6 = vpop.permute.xlu0 %2779 }
 0x551   : > { %v3269_v43 = vsel %vm1008_vm3, %v3007_v12, %v4488_v10  ;;  %v6410_v8 = vsel %vm745_vm2, %v3000_v57, %v6309_v28  ;;  %v4469_v10 = vunpack.i.h.bf16 %v6084_v14  ;;  %v3001_v12 = vsel %vm169_vm0, %v2605_v54, %v2780_v6 }
 0x552   : > { %v3174_v33 = vpop.permute.xlu1 %3173  ;;  %v4474_v28 = vunpack.i.h.bf16 %v6097_v50 }
 0x553   : > { %v3301_v36 = vsel %vm1041_vm4, %v3269_v43, %v3174_v33  ;;  %4138 = vmatprep.mubr.msk.f32.mxu0 %vm169_vm0, %v3174_v33 }
 0x554   : > { %2933 = vrot.lane.b32.xlu0 %v2682_v2, %s4591_s30  ;;  %3111 = vrot.lane.b32.xlu1 %v6313_v59, %s4593_s8  ;;  %v2576_v2 = vld [vmem:[#allocation2 + $0xf] sm:$0xff] }
 0x555   : > { %3481 = vmatmul.mubr.f32.vlgmr.msra.gmra.mrb[34].mxu0 %v3301_v36  ;;  %v2972_v33 = vsel %vm169_vm0, %v2576_v2, %v4469_v10  ;;  %v4489_v36 = vunpack.i.h.bf16 %v6321_v13 }
 0x556   : > { %v3008_v63 = vsel %vm745_vm2, %v2972_v33, %v4474_v28 }
 0x557   : > { %v3270_v44 = vsel %vm1008_vm3, %v3008_v63, %v4489_v36 }
 0x558   : > { %3207 = vrot.lane.b32.xlu0 %v6338_v62, %s4594_s9  ;;  %3113 = vrot.lane.b32.xlu1 %v6338_v62, %s4593_s8 }
 0x55c   : > { %3115 = vrot.lane.b32.xlu1 %v6346_v23, %s4593_s8  ;;  %3209 = vrot.lane.b32.xlu0 %v6346_v23, %s4594_s9 }
 0x560   : > { %3117 = vrot.lane.b32.xlu1 %v6354_v46, %s4593_s8  ;;  %3211 = vrot.lane.b32.xlu0 %v6354_v46, %s4594_s9 }
 0x564   : > { %3119 = vrot.lane.b32.xlu1 %v6364_v42, %s4593_s8  ;;  %3213 = vrot.lane.b32.xlu0 %v6364_v42, %s4594_s9 }
 0x568   : > { %3121 = vrot.lane.b32.xlu1 %v6374_v39, %s4593_s8  ;;  %3215 = vrot.lane.b32.xlu0 %v6374_v39, %s4594_s9 }
 0x56c   : > { %3123 = vrot.lane.b32.xlu1 %v6382_v60, %s4593_s8  ;;  %3217 = vrot.lane.b32.xlu0 %v6382_v60, %s4594_s9 }
 0x570   : > { %3125 = vrot.lane.b32.xlu1 %v6390_v45, %s4593_s8  ;;  %3219 = vrot.lane.b32.xlu0 %v6390_v45, %s4594_s9 }
 0x574   : > { %3127 = vrot.lane.b32.xlu1 %v6400_v53, %s4593_s8  ;;  %3221 = vrot.lane.b32.xlu0 %v6400_v53, %s4594_s9 }
 0x578   : > { %3129 = vrot.lane.b32.xlu1 %v6410_v8, %s4593_s8  ;;  %3223 = vrot.lane.b32.xlu0 %v6410_v8, %s4594_s9 }
 0x57e   : > { %v2924_v43 = vpop.permute.xlu0 %2923 }
 0x57f   : > { %v6419_v32 = vsel %vm745_vm2, %v3001_v12, %v2924_v43 }
 0x580   : > { %3131 = vrot.lane.b32.xlu1 %v6419_v32, %s4593_s8  ;;  %3225 = vrot.lane.b32.xlu0 %v6419_v32, %s4594_s9 }
 0x582   : > { %v2784_v14 = vpop.permute.xlu1 %2783  ;;  %v2782_v56 = vpop.permute.xlu0 %2781 }
 0x583   : > { %v3002_v41 = vsel %vm169_vm0, %v2606_v16, %v2782_v56  ;;  %v3003_v27 = vsel %vm169_vm0, %v2607_v15, %v2784_v14 }
 0x586   : > { %v3180_v52 = vpop.permute.xlu1 %3179  ;;  %v3176_v7 = vpop.permute.xlu0 %3175 }
 0x587   : > { %4139 = vmatprep.mubr.msk.f32.mxu0 %vm169_vm0, %v3176_v7  ;;  %v3302_v31 = vsel %vm1041_vm4, %v3270_v44, %v3176_v7 }
 0x588   : > { %3486 = vmatmul.mubr.f32.gmra.mrb[36].mxu0 %v3302_v31 }
 0x58a   : > { %v4497_v48 = vpop.permute.xlu1 %4496  ;;  %v4492_v34 = vpop.permute.xlu0 %4491 }
 0x58b   : > { %v4493_v50 = vunpack.i.l.bf16 %v4492_v34  ;;  %v4494_v58 = vunpack.i.h.bf16 %v4492_v34  ;;  %v4498_v55 = vunpack.i.l.bf16 %v4497_v48  ;;  %v4499_v6 = vunpack.i.h.bf16 %v4497_v48 }
 0x58d   : > { %v3271_v13 = vsel %vm1008_vm3, %v6113_v24, %v4493_v50  ;;  %v3272_v5 = vsel %vm1008_vm3, %v6116_v49, %v4494_v58  ;;  %v3273_v49 = vsel %vm1008_vm3, %v6124_v0, %v4498_v55  ;;  %v3274_v2 = vsel %vm1008_vm3, %v6155_v19, %v4499_v6 }
 0x58e   : > { %v3182_v17 = vpop.permute.xlu1 %3181  ;;  %v3178_v18 = vpop.permute.xlu0 %3177  ;;  %v3304_v30 = vsel %vm1041_vm4, %v3272_v5, %v3180_v52 }
 0x58f   : > { %4140 = vmatprep.mubr.msk.f32.mxu0 %vm169_vm0, %v3178_v18  ;;  %v3303_v3 = vsel %vm1041_vm4, %v3271_v13, %v3178_v18  ;;  %v3305_v10 = vsel %vm1041_vm4, %v3273_v49, %v3182_v17 }
 0x590   : > { %3491 = vmatmul.mubr.f32.gmra.mrb[38].mxu0 %v3303_v3 }
 0x591   : > { %4141 = vmatprep.mubr.msk.f32.mxu0 %vm169_vm0, %v3180_v52 }
 0x592   : > { %v2928_v38 = vpop.permute.xlu1 %2927  ;;  %v2926_v1 = vpop.permute.xlu0 %2925 }
 0x593   : > { %v6441_v24 = vsel %vm745_vm2, %v3002_v41, %v2926_v1  ;;  %v3039_v54 = vsel %vm745_vm2, %v3003_v27, %v2928_v38  ;;  %v2608_v38 = vld [vmem:[#allocation2 + $0x20f] sm:$0xff]  ;;  %v2609_v27 = vld [vmem:[#allocation2 + $0x227] sm:$0xff] }
 0x594   : > { %3133 = vrot.lane.b32.xlu1 %v6441_v24, %s4593_s8  ;;  %3227 = vrot.lane.b32.xlu0 %v6441_v24, %s4594_s9 }
 0x595   : > { %3496 = vmatmul.mubr.f32.gmra.mrb[40].mxu0 %v3304_v30 }
 0x596   : > { %4142 = vmatprep.mubr.msk.f32.mxu0 %vm169_vm0, %v3182_v17  ;;  %v3188_v20 = vpop.permute.xlu1 %3187  ;;  %v3184_v57 = vpop.permute.xlu0 %3183 }
 0x597   : > { %v3306_v28 = vsel %vm1041_vm4, %v3274_v2, %v3184_v57 }
 0x598   : > { %3135 = vrot.lane.b32.xlu1 %v3039_v54, %s4593_s8  ;;  %3229 = vrot.lane.b32.xlu0 %v3039_v54, %s4594_s9 }
 0x599   : > { %3501 = vmatmul.mubr.f32.gmra.mrb[42].mxu0 %v3305_v10 }
 0x59a   : > { %4143 = vmatprep.mubr.msk.f32.mxu0 %vm169_vm0, %v3184_v57  ;;  %v4507_v12 = vpop.permute.xlu1 %4506  ;;  %v4502_v0 = vpop.permute.xlu0 %4501 }
 0x59b   : > { %v4503_v43 = vunpack.i.l.bf16 %v4502_v0  ;;  %v4504_v33 = vunpack.i.h.bf16 %v4502_v0  ;;  %v4508_v52 = vunpack.i.l.bf16 %v4507_v12  ;;  %v4509_v50 = vunpack.i.h.bf16 %v4507_v12 }
 0x59d   : > { %3506 = vmatmul.mubr.f32.gmra.mrb[44].mxu0 %v3306_v28  ;;  %v3275_v36 = vsel %vm1008_vm3, %v6166_v22, %v4503_v43  ;;  %v3276_v7 = vsel %vm1008_vm3, %v6158_v9, %v4504_v33  ;;  %v3277_v22 = vsel %vm1008_vm3, %v6180_v61, %v4508_v52  ;;  %v3278_v18 = vsel %vm1008_vm3, %v6197_v51, %v4509_v50 }
 0x59e   : > { %v3190_v14 = vpop.permute.xlu1 %3189  ;;  %v3186_v56 = vpop.permute.xlu0 %3185  ;;  %v3308_v31 = vsel %vm1041_vm4, %v3276_v7, %v3188_v20 }
 0x59f   : > { %4144 = vmatprep.mubr.msk.f32.mxu0 %vm169_vm0, %v3186_v56  ;;  %v3307_v63 = vsel %vm1041_vm4, %v3275_v36, %v3186_v56  ;;  %v3309_v58 = vsel %vm1041_vm4, %v3277_v22, %v3190_v14 }
 0x5a1   : > { %3511 = vmatmul.mubr.f32.gmra.mrb[46].mxu0 %v3307_v63 }
 0x5a2   : > { %4145 = vmatprep.mubr.msk.f32.mxu0 %vm169_vm0, %v3188_v20  ;;  %v2786_v19 = vpop.permute.xlu1 %2785  ;;  %v3192_v44 = vpop.permute.xlu0 %3191 }
 0x5a3   : > { %v3310_v3 = vsel %vm1041_vm4, %v3278_v18, %v3192_v44  ;;  %v3004_v51 = vsel %vm169_vm0, %v2608_v38, %v2786_v19 }
 0x5a5   : > { %3516 = vmatmul.mubr.f32.gmra.mrb[48].mxu0 %v3308_v31 }
 0x5a6   : > { %4146 = vmatprep.mubr.msk.f32.mxu0 %vm169_vm0, %v3190_v14  ;;  %v3196_v48 = vpop.permute.xlu1 %3195  ;;  %v4512_v34 = vpop.permute.xlu0 %4511 }
 0x5a7   : > { %v4513_v13 = vunpack.i.l.bf16 %v4512_v34  ;;  %v4514_v16 = vunpack.i.h.bf16 %v4512_v34 }
 0x5a9   : > { %3521 = vmatmul.mubr.f32.gmra.mrb[50].mxu0 %v3309_v58  ;;  %v3279_v61 = vsel %vm1008_vm3, %v6209_v26, %v4513_v13  ;;  %v3280_v30 = vsel %vm1008_vm3, %v6200_v21, %v4514_v16 }
 0x5aa   : > { %4147 = vmatprep.mubr.msk.f32.mxu0 %vm169_vm0, %v3192_v44  ;;  %v4517_v9 = vpop.permute.xlu1 %4516  ;;  %v3194_v17 = vpop.permute.xlu0 %3193  ;;  %v3312_v20 = vsel %vm1041_vm4, %v3280_v30, %v3196_v48  ;;  %v2610_v44 = vld [vmem:[#allocation2 + $0x22f] sm:$0xff] }
 0x5ab   : > { %v3311_v41 = vsel %vm1041_vm4, %v3279_v61, %v3194_v17  ;;  %v4518_v1 = vunpack.i.l.bf16 %v4517_v9  ;;  %v4519_v10 = vunpack.i.h.bf16 %v4517_v9 }
 0x5ad   : > { %3526 = vmatmul.mubr.f32.gmra.mrb[52].mxu0 %v3310_v3  ;;  %v3281_v57 = vsel %vm1008_vm3, %v6224_v35, %v4518_v1  ;;  %v3282_v35 = vsel %vm1008_vm3, %v6235_v40, %v4519_v10 }
 0x5ae   : > { %4148 = vmatprep.mubr.msk.f32.mxu0 %vm169_vm0, %v3194_v17  ;;  %v3198_v55 = vpop.permute.xlu1 %3197  ;;  %v2788_v5 = vpop.permute.xlu0 %2787 }
 0x5af   : > { %v3005_v21 = vsel %vm169_vm0, %v2609_v27, %v2788_v5  ;;  %v3313_v0 = vsel %vm1041_vm4, %v3281_v57, %v3198_v55 }
 0x5b1   : > { %3531 = vmatmul.mubr.f32.gmra.mrb[54].mxu0 %v3311_v41 }
 0x5b2   : > { %4149 = vmatprep.mubr.msk.f32.mxu0 %vm169_vm0, %v3196_v48  ;;  %v2930_v15 = vpop.permute.xlu1 %2929  ;;  %v2932_v49 = vpop.permute.xlu0 %2931 }
 0x5b3   : > { %v3040_v26 = vsel %vm745_vm2, %v3004_v51, %v2930_v15  ;;  %v3041_v12 = vsel %vm745_vm2, %v3005_v21, %v2932_v49 }
 0x5b4   : > { %3137 = vrot.lane.b32.xlu1 %v3040_v26, %s4593_s8  ;;  %3231 = vrot.lane.b32.xlu0 %v3040_v26, %s4594_s9 }
 0x5b5   : > { %3536 = vmatmul.mubr.f32.gmra.mrb[56].mxu0 %v3312_v20 }
 0x5b6   : > { %4150 = vmatprep.mubr.msk.f32.mxu0 %vm169_vm0, %v3198_v55  ;;  %v3108_v6 = vpop.permute.xlu1 %3107  ;;  %v3200_v54 = vpop.permute.xlu0 %3199 }
 0x5b7   : > { %v3314_v33 = vsel %vm1041_vm4, %v3282_v35, %v3200_v54  ;;  %v3285_v34 = vsel %vm1008_vm3, %v6269_v4, %v3108_v6 }
 0x5b8   : > { %3233 = vrot.lane.b32.xlu0 %v3041_v12, %s4594_s9 }
 0x5b9   : > { %3541 = vmatmul.mubr.f32.gmra.mrb[58].mxu0 %v3313_v0 }
 0x5ba   : > { %4151 = vmatprep.mubr.msk.f32.mxu0 %vm169_vm0, %v3200_v54  ;;  %v3204_v43 = vpop.permute.xlu1 %3203  ;;  %v4522_v2 = vpop.permute.xlu0 %4521 }
 0x5bb   : > { %v4523_v28 = vunpack.i.l.bf16 %v4522_v2  ;;  %v4524_v36 = vunpack.i.h.bf16 %v4522_v2 }
 0x5bd   : > { %3546 = vmatmul.mubr.f32.gmra.mrb[60].mxu0 %v3314_v33  ;;  %v3283_v14 = vsel %vm1008_vm3, %v6255_v47, %v4523_v28  ;;  %v3284_v7 = vsel %vm1008_vm3, %v6247_v29, %v4524_v36 }
 0x5be   : > { %v3206_v56 = vpop.permute.xlu1 %3205  ;;  %v3202_v63 = vpop.permute.xlu0 %3201  ;;  %v3316_v31 = vsel %vm1041_vm4, %v3284_v7, %v3204_v43 }
 0x5bf   : > { %4152 = vmatprep.mubr.msk.f32.mxu0 %vm169_vm0, %v3202_v63  ;;  %v3315_v52 = vsel %vm1041_vm4, %v3283_v14, %v3202_v63  ;;  %v3317_v29 = vsel %vm1041_vm4, %v3285_v34, %v3206_v56 }
 0x5c1   : > { %3551 = vmatmul.mubr.f32.gmra.mrb[62].mxu0 %v3315_v52 }
 0x5c2   : > { %4153 = vmatprep.mubr.msk.f32.mxu0 %vm169_vm0, %v3204_v43  ;;  %v3110_v40 = vpop.permute.xlu1 %3109  ;;  %v2790_v19 = vpop.permute.xlu0 %2789 }
 0x5c3   : > { %v3006_v47 = vsel %vm169_vm0, %v2610_v44, %v2790_v19  ;;  %v3286_v58 = vsel %vm1008_vm3, %v6285_v25, %v3110_v40  ;;  %v3835_v19 = vld [vmem:[%s6696_s2 + $0x8] sm:$0xff] }
 0x5c5   : > { %3556 = vmatmul.mubr.f32.gmra.mrb[64].mxu0 %v3316_v31 }
 0x5c6   : > { %4154 = vmatprep.mubr.msk.f32.mxu0 %vm169_vm0, %v3206_v56  ;;  %v3112_v22 = vpop.permute.xlu1 %3111  ;;  %v2934_v48 = vpop.permute.xlu0 %2933 }
 0x5c7   : > { %v3042_v50 = vsel %vm745_vm2, %v3006_v47, %v2934_v48  ;;  %v3287_v4 = vsel %vm1008_vm3, %v6289_v11, %v3112_v22 }
 0x5c8   : > { %3235 = vrot.lane.b32.xlu0 %v3042_v50, %s4594_s9 }
 0x5c9   : > { %3561 = vmatmul.mubr.f32.gmra.mrb[66].mxu0 %v3317_v29 }
 0x5ca   : > { %v3114_v13 = vpop.permute.xlu1 %3113  ;;  %v3208_v9 = vpop.permute.xlu0 %3207 }
 0x5cb   : > { %4155 = vmatprep.mubr.msk.f32.mxu0 %vm169_vm0, %v3208_v9  ;;  %v3318_v17 = vsel %vm1041_vm4, %v3286_v58, %v3208_v9  ;;  %v3288_v25 = vsel %vm1008_vm3, %v6301_v37, %v3114_v13 }
 0x5cd   : > { %3566 = vmatmul.mubr.f32.gmra.mrb[68].mxu0 %v3318_v17 }
 0x5ce   : > { %v3116_v18 = vpop.permute.xlu1 %3115  ;;  %v3210_v3 = vpop.permute.xlu0 %3209 }
 0x5cf   : > { %4156 = vmatprep.mubr.msk.f32.mxu0 %vm169_vm0, %v3210_v3  ;;  %v3319_v16 = vsel %vm1041_vm4, %v3287_v4, %v3210_v3  ;;  %v3289_v11 = vsel %vm1008_vm3, %v6313_v59, %v3116_v18 }
 0x5d1   : > { %3571 = vmatmul.mubr.f32.gmra.mrb[70].mxu0 %v3319_v16 }
 0x5d2   : > { %v3118_v61 = vpop.permute.xlu1 %3117  ;;  %v3212_v55 = vpop.permute.xlu0 %3211 }
 0x5d3   : > { %4157 = vmatprep.mubr.msk.f32.mxu0 %vm169_vm0, %v3212_v55  ;;  %v3320_v5 = vsel %vm1041_vm4, %v3288_v25, %v3212_v55  ;;  %v3290_v37 = vsel %vm1008_vm3, %v6338_v62, %v3118_v61 }
 0x5d5   : > { %3576 = vmatmul.mubr.f32.gmra.mrb[72].mxu0 %v3320_v5 }
 0x5d6   : > { %v3120_v41 = vpop.permute.xlu1 %3119  ;;  %v3214_v38 = vpop.permute.xlu0 %3213 }
 0x5d7   : > { %4158 = vmatprep.mubr.msk.f32.mxu0 %vm169_vm0, %v3214_v38  ;;  %v3321_v1 = vsel %vm1041_vm4, %v3289_v11, %v3214_v38  ;;  %v3291_v59 = vsel %vm1008_vm3, %v6346_v23, %v3120_v41 }
 0x5d9   : > { %3581 = vmatmul.mubr.f32.gmra.mrb[74].mxu0 %v3321_v1 }
 0x5da   : > { %v3216_v30 = vpop.permute.xlu0 %3215  ;;  %v3122_v51 = vpop.permute.xlu1 %3121 }
 0x5db   : > { %4159 = vmatprep.mubr.msk.f32.mxu0 %vm169_vm0, %v3216_v30  ;;  %v3322_v15 = vsel %vm1041_vm4, %v3290_v37, %v3216_v30  ;;  %v3292_v62 = vsel %vm1008_vm3, %v6354_v46, %v3122_v51 }
 0x5dd   : > { %3586 = vmatmul.mubr.f32.gmra.mrb[76].mxu0 %v3322_v15 }
 0x5de   : > { %v3218_v49 = vpop.permute.xlu0 %3217  ;;  %v3124_v26 = vpop.permute.xlu1 %3123 }
 0x5df   : > { %4160 = vmatprep.mubr.msk.f32.mxu0 %vm169_vm0, %v3218_v49  ;;  %v3323_v27 = vsel %vm1041_vm4, %v3291_v59, %v3218_v49  ;;  %v3293_v21 = vsel %vm1008_vm3, %v6364_v42, %v3124_v26 }
 0x5e1   : > { %3591 = vmatmul.mubr.f32.gmra.mrb[78].mxu0 %v3323_v27 }
 0x5e2   : > { %v3220_v20 = vpop.permute.xlu0 %3219  ;;  %v3126_v6 = vpop.permute.xlu1 %3125 }
 0x5e3   : > { %4161 = vmatprep.mubr.msk.f32.mxu0 %vm169_vm0, %v3220_v20  ;;  %v3324_v57 = vsel %vm1041_vm4, %v3292_v62, %v3220_v20  ;;  %v3294_v10 = vsel %vm1008_vm3, %v6374_v39, %v3126_v6 }
 0x5e5   : > { %3596 = vmatmul.mubr.f32.gmra.mrb[80].mxu0 %v3324_v57 }
 0x5e6   : > { %v3222_v23 = vpop.permute.xlu0 %3221  ;;  %v3128_v0 = vpop.permute.xlu1 %3127 }
 0x5e7   : > { %4162 = vmatprep.mubr.msk.f32.mxu0 %vm169_vm0, %v3222_v23  ;;  %v3325_v54 = vsel %vm1041_vm4, %v3293_v21, %v3222_v23  ;;  %v3295_v42 = vsel %vm1008_vm3, %v6382_v60, %v3128_v0 }
 0x5e9   : > { %3601 = vmatmul.mubr.f32.gmra.mrb[82].mxu0 %v3325_v54 }
 0x5ea   : > { %v3224_v46 = vpop.permute.xlu0 %3223  ;;  %v3130_v28 = vpop.permute.xlu1 %3129 }
 0x5eb   : > { %4163 = vmatprep.mubr.msk.f32.mxu0 %vm169_vm0, %v3224_v46  ;;  %v3326_v12 = vsel %vm1041_vm4, %v3294_v10, %v3224_v46  ;;  %v3296_v39 = vsel %vm1008_vm3, %v6390_v45, %v3130_v28 }
 0x5ed   : > { %3606 = vmatmul.mubr.f32.gmra.mrb[84].mxu0 %v3326_v12 }
 0x5f2   : > { %v3226_v43 = vpop.permute.xlu0 %3225  ;;  %v3132_v33 = vpop.permute.xlu1 %3131 }
 0x5f3   : > { %4164 = vmatprep.mubr.msk.f32.mxu0 %vm169_vm0, %v3226_v43  ;;  %v3327_v2 = vsel %vm1041_vm4, %v3295_v42, %v3226_v43  ;;  %v3297_v60 = vsel %vm1008_vm3, %v6400_v53, %v3132_v33  ;;  %v3834_v53 = vld [vmem:[%s6696_s2] sm:$0xff] }
 0x5f4   : > { %3611 = vmatmul.mubr.f32.gmra.mrb[86].mxu0 %v3327_v2  ;;  %v4271_v31 = vpack.c.bf16 %v3835_v19, %v3834_v53 }
 0x5f6   : > { %4272 = vmatprep.subr.bf16.mxu1 %v4271_v31 }
 0x5f7   : > { %4274 = vmatpush3.bf16.msra.mxu1 %v4271_v31 }
 0x606   : > { %v3228_v35 = vpop.permute.xlu0 %3227  ;;  %v3134_v63 = vpop.permute.xlu1 %3133 }
 0x607   : > { %4165 = vmatprep.mubr.msk.f32.mxu0 %vm169_vm0, %v3228_v35  ;;  %v3328_v36 = vsel %vm1041_vm4, %v3296_v39, %v3228_v35  ;;  %v3298_v45 = vsel %vm1008_vm3, %v6410_v8, %v3134_v63 }
 0x608   : > { %3616 = vmatmul.mubr.f32.gmra.mrb[88].mxu0 %v3328_v36 }
 0x60a   : > { %v3230_v14 = vpop.permute.xlu0 %3229  ;;  %v3136_v7 = vpop.permute.xlu1 %3135 }
 0x60b   : > { %4166 = vmatprep.mubr.msk.f32.mxu0 %vm169_vm0, %v3230_v14  ;;  %v3329_v56 = vsel %vm1041_vm4, %v3297_v60, %v3230_v14  ;;  %v3299_v8 = vsel %vm1008_vm3, %v6419_v32, %v3136_v7 }
 0x60c   : > { %3621 = vmatmul.mubr.f32.gmra.mrb[90].mxu0 %v3329_v56 }
 0x626   : > { %v3232_v52 = vpop.permute.xlu0 %3231  ;;  %v3138_v34 = vpop.permute.xlu1 %3137 }
 0x627   : > { %4167 = vmatprep.mubr.msk.f32.mxu0 %vm169_vm0, %v3232_v52  ;;  %v3330_v40 = vsel %vm1041_vm4, %v3298_v45, %v3232_v52  ;;  %v3300_v50 = vsel %vm1008_vm3, %v6441_v24, %v3138_v34 }
 0x628   : > { %v3482_v44 = vpop.f32.mrb[34].mxu0  ;;  %3626 = vmatmul.mubr.f32.gmra.mrb[92].mxu0 %v3330_v40 }
 0x629   : > { %v3484_v47 = vpop.f32.mrb[35].mxu0  ;;  %v3641_v17 = vsel %vm169_vm0, %v3482_v44, -inf }
 0x62a   : > { %v3234_v22 = vpop.permute.xlu0 %3233 }
 0x62b   : > { %4168 = vmatprep.mubr.msk.f32.mxu0 %vm169_vm0, %v3234_v22  ;;  %v3331_v48 = vsel %vm1041_vm4, %v3299_v8, %v3234_v22 }
 0x62c   : > { %3631 = vmatmul.mubr.f32.gmra.mrb[94].mxu0 %v3331_v48 }
 0x63a   : > { %v3236_v29 = vpop.permute.xlu0 %3235 }
 0x63b   : > { %4169 = vmatprep.mubr.msk.f32.mxu0 %vm169_vm0, %v3236_v29  ;;  %v3332_v58 = vsel %vm1041_vm4, %v3300_v50, %v3236_v29 }
 0x63c   : > { %3636 = vmatmul.mubr.f32.gmra.mrb[96].mxu0 %v3332_v58 }
 0x65b   : > { %v3487_v13 = vpop.f32.mrb[36].mxu0 }
 0x65c   : > { %v3489_v32 = vpop.f32.mrb[37].mxu0  ;;  %v3648_v25 = vsel %vm169_vm0, %v3487_v13, -inf }
 0x663   : > { %v3492_v9 = vpop.f32.mrb[38].mxu0 }
 0x664   : > { %v3642_v4 = vsel %vm169_vm0, %v3492_v9, -inf  ;;  %v3494_v18 = vpop.f32.mrb[39].mxu0 }
 0x665   : > { %v3643_v3 = vmax.f32 %v3641_v17, %v3642_v4 }
 0x668   : > { %v3497_v16 = vpop.f32.mrb[40].mxu0 }
 0x669   : > { %v3649_v24 = vsel %vm169_vm0, %v3497_v16, -inf  ;;  %v3499_v61 = vpop.f32.mrb[41].mxu0 }
 0x66a   : > { %v3650_v55 = vmax.f32 %v3648_v25, %v3649_v24 }
 0x66c   : > { %v3502_v5 = vpop.f32.mrb[42].mxu0 }
 0x66d   : > { %v3644_v11 = vsel %vm169_vm0, %v3502_v5, -inf  ;;  %v3504_v41 = vpop.f32.mrb[43].mxu0 }
 0x66e   : > { %v3645_v38 = vmax.f32 %v3643_v3, %v3644_v11 }
 0x670   : > { %v3507_v1 = vpop.f32.mrb[44].mxu0 }
 0x671   : > { %v3651_v37 = vsel %vm169_vm0, %v3507_v1, -inf  ;;  %v3509_v30 = vpop.f32.mrb[45].mxu0 }
 0x672   : > { %v3652_v51 = vmax.f32 %v3650_v55, %v3651_v37 }
 0x674   : > { %v3512_v15 = vpop.f32.mrb[46].mxu0 }
 0x675   : > { %v3646_v59 = vsel %vm169_vm0, %v3512_v15, -inf  ;;  %v3514_v49 = vpop.f32.mrb[47].mxu0 }
 0x676   : > { %v3647_v27 = vmax.f32 %v3645_v38, %v3646_v59 }
 0x678   : > { %v3705_v26 = vcombine.high %v3647_v27, %v3647_v27  ;;  %v3722_v62 = vsel %vm3721_vm5, %v3647_v27, -inf  ;;  %v3517_v20 = vpop.f32.mrb[48].mxu0 }
 0x679   : > { %v3723_v57 = vrot.slane %v3722_v62, 4  ;;  %v3653_v21 = vsel %vm169_vm0, %v3517_v20, -inf  ;;  %v3519_v23 = vpop.f32.mrb[49].mxu0 }
 0x67a   : > { %v3729_v6 = vsel %vm3721_vm5, %v3705_v26, -inf  ;;  %v3654_v54 = vmax.f32 %v3652_v51, %v3653_v21 }
 0x67b   : > { %v3724_v10 = vmax.f32 %v3722_v62, %v3723_v57  ;;  %v3730_v46 = vrot.slane %v3729_v6, 4 }
 0x67c   : > { %v3706_v12 = vcombine.high %v3654_v54, %v3654_v54  ;;  %v3736_v0 = vsel %vm3721_vm5, %v3654_v54, -inf  ;;  %v3522_v42 = vpop.f32.mrb[50].mxu0 }
 0x67d   : > { %v3725_v43 = vrot.slane %v3724_v10, 2  ;;  %v3731_v2 = vmax.f32 %v3729_v6, %v3730_v46  ;;  %v3737_v28 = vrot.slane %v3736_v0, 4  ;;  %v3524_v39 = vpop.f32.mrb[51].mxu0  ;;  %v3655_v47 = vsel %vm169_vm0, %v3522_v42, -inf }
 0x67e   : > { %v3743_v35 = vsel %vm3721_vm5, %v3706_v12, -inf }
 0x67f   : > { %v3726_v33 = vmax.f32 %v3724_v10, %v3725_v43  ;;  %v3732_v36 = vrot.slane %v3731_v2, 2  ;;  %v3738_v60 = vmax.f32 %v3736_v0, %v3737_v28  ;;  %v3744_v14 = vrot.slane %v3743_v35, 4 }
 0x680   : > { %v3527_v56 = vpop.f32.mrb[52].mxu0 }
 0x681   : > { %v3727_v63 = vrot.slane %v3726_v33, 1  ;;  %v3733_v45 = vmax.f32 %v3731_v2, %v3732_v36  ;;  %v3739_v52 = vrot.slane %v3738_v60, 2  ;;  %v3745_v7 = vmax.f32 %v3743_v35, %v3744_v14  ;;  %v3529_v40 = vpop.f32.mrb[53].mxu0 }
 0x682   : > { %v3662_v3 = vsel %vm169_vm0, %v3527_v56, -inf }
 0x683   : > { %v3734_v53 = vrot.slane %v3733_v45, 1  ;;  %v3740_v19 = vmax.f32 %v3738_v60, %v3739_v52  ;;  %v3746_v44 = vrot.slane %v3745_v7, 2  ;;  %v3728_v31 = vmax.f32 %v3726_v33, %v3727_v63 }
 0x684   : > { %v3532_v8 = vpop.f32.mrb[54].mxu0 }
 0x685   : > { %v3735_v22 = vmax.f32 %v3733_v45, %v3734_v53  ;;  %v3741_v48 = vrot.slane %v3740_v19, 1  ;;  %v3747_v34 = vmax.f32 %v3745_v7, %v3746_v44  ;;  %v3656_v50 = vsel %vm169_vm0, %v3532_v8, -inf  ;;  %v3534_v29 = vpop.f32.mrb[55].mxu0 }
 0x686   : > { %v3657_v58 = vmax.f32 %v3655_v47, %v3656_v50 }
 0x687   : > { %v3853_v13 = vsel %vm3852_vm6, %v3735_v22, %v3728_v31  ;;  %v3742_v32 = vmax.f32 %v3740_v19, %v3741_v48  ;;  %v3748_v9 = vrot.slane %v3747_v34, 1 }
 0x688   : > { %v3537_v17 = vpop.f32.mrb[56].mxu0 }
 0x689   : > { %v3749_v4 = vmax.f32 %v3747_v34, %v3748_v9  ;;  %v3855_v18 = vsel %vm3854_vm7, %v3742_v32, %v3853_v13  ;;  %v3663_v16 = vsel %vm169_vm0, %v3537_v17, -inf  ;;  %v3539_v25 = vpop.f32.mrb[57].mxu0 }
 0x68a   : > { %v3664_v24 = vmax.f32 %v3662_v3, %v3663_v16 }
 0x68b   : > { %v3857_v61 = vsel %vm3856_vm8, %v3749_v4, %v3855_v18 }
 0x68c   : > { %v3542_v55 = vpop.f32.mrb[58].mxu0 }
 0x68d   : > { %v3658_v5 = vsel %vm169_vm0, %v3542_v55, -inf  ;;  %v3544_v11 = vpop.f32.mrb[59].mxu0 }
 0x68e   : > { %v3659_v41 = vmax.f32 %v3657_v58, %v3658_v5 }
 0x690   : > { %v3547_v38 = vpop.f32.mrb[60].mxu0 }
 0x691   : > { %v3665_v1 = vsel %vm169_vm0, %v3547_v38, -inf  ;;  %v3549_v37 = vpop.f32.mrb[61].mxu0 }
 0x692   : > { %v3666_v30 = vmax.f32 %v3664_v24, %v3665_v1 }
 0x694   : > { %v3552_v51 = vpop.f32.mrb[62].mxu0 }
 0x695   : > { %v3660_v15 = vsel %vm169_vm0, %v3552_v51, -inf  ;;  %v3554_v59 = vpop.f32.mrb[63].mxu0 }
 0x696   : > { %v3661_v49 = vmax.f32 %v3659_v41, %v3660_v15 }
 0x698   : > { %v3707_v27 = vcombine.high %v3661_v49, %v3661_v49  ;;  %v3750_v26 = vsel %vm3721_vm5, %v3661_v49, -inf  ;;  %v3557_v62 = vpop.f32.mrb[64].mxu0 }
 0x699   : > { %v3751_v20 = vrot.slane %v3750_v26, 4  ;;  %v3667_v57 = vsel %vm169_vm0, %v3557_v62, -inf  ;;  %v3559_v21 = vpop.f32.mrb[65].mxu0 }
 0x69a   : > { %v3757_v23 = vsel %vm3721_vm5, %v3707_v27, -inf  ;;  %v3668_v6 = vmax.f32 %v3666_v30, %v3667_v57 }
 0x69b   : > { %v3752_v54 = vmax.f32 %v3750_v26, %v3751_v20  ;;  %v3758_v10 = vrot.slane %v3757_v23, 4 }
 0x69c   : > { %v3708_v46 = vcombine.high %v3668_v6, %v3668_v6  ;;  %v3764_v12 = vsel %vm3721_vm5, %v3668_v6, -inf  ;;  %v3562_v0 = vpop.f32.mrb[66].mxu0 }
 0x69d   : > { %v3753_v42 = vrot.slane %v3752_v54, 2  ;;  %v3759_v43 = vmax.f32 %v3757_v23, %v3758_v10  ;;  %v3765_v2 = vrot.slane %v3764_v12, 4  ;;  %v3564_v28 = vpop.f32.mrb[67].mxu0  ;;  %v3669_v31 = vsel %vm169_vm0, %v3562_v0, -inf }
 0x69e   : > { %v3771_v39 = vsel %vm3721_vm5, %v3708_v46, -inf }
 0x69f   : > { %v3754_v35 = vmax.f32 %v3752_v54, %v3753_v42  ;;  %v3760_v33 = vrot.slane %v3759_v43, 2  ;;  %v3766_v36 = vmax.f32 %v3764_v12, %v3765_v2  ;;  %v3772_v60 = vrot.slane %v3771_v39, 4 }
 0x6a0   : > { %v3567_v14 = vpop.f32.mrb[68].mxu0 }
 0x6a1   : > { %v3755_v56 = vrot.slane %v3754_v35, 1  ;;  %v3761_v63 = vmax.f32 %v3759_v43, %v3760_v33  ;;  %v3767_v45 = vrot.slane %v3766_v36, 2  ;;  %v3773_v52 = vmax.f32 %v3771_v39, %v3772_v60  ;;  %v3569_v7 = vpop.f32.mrb[69].mxu0 }
 0x6a2   : > { %v3676_v4 = vsel %vm169_vm0, %v3567_v14, -inf }
 0x6a3   : > { %v3756_v40 = vmax.f32 %v3754_v35, %v3755_v56  ;;  %v3762_v53 = vrot.slane %v3761_v63, 1  ;;  %v3768_v19 = vmax.f32 %v3766_v36, %v3767_v45  ;;  %v3774_v44 = vrot.slane %v3773_v52, 2 }
 0x6a4   : > { %v3572_v47 = vpop.f32.mrb[70].mxu0 }
 0x6a5   : > { %v3763_v8 = vmax.f32 %v3761_v63, %v3762_v53  ;;  %v3769_v22 = vrot.slane %v3768_v19, 1  ;;  %v3775_v48 = vmax.f32 %v3773_v52, %v3774_v44  ;;  %v3670_v34 = vsel %vm169_vm0, %v3572_v47, -inf  ;;  %v3574_v50 = vpop.f32.mrb[71].mxu0 }
 0x6a6   : > { %v3671_v29 = vmax.f32 %v3669_v31, %v3670_v34  ;;  %v3859_v58 = vsel %vm3858_vm9, %v3756_v40, %v3857_v61 }
 0x6a7   : > { %v3770_v13 = vmax.f32 %v3768_v19, %v3769_v22  ;;  %v3776_v32 = vrot.slane %v3775_v48, 1  ;;  %v3861_v9 = vsel %vm3860_vm10, %v3763_v8, %v3859_v58 }
 0x6a8   : > { %v3577_v17 = vpop.f32.mrb[72].mxu0 }
 0x6a9   : > { %v3677_v18 = vsel %vm169_vm0, %v3577_v17, -inf  ;;  %v3579_v3 = vpop.f32.mrb[73].mxu0  ;;  %v3777_v16 = vmax.f32 %v3775_v48, %v3776_v32  ;;  %v3863_v25 = vsel %vm3862_vm11, %v3770_v13, %v3861_v9 }
 0x6aa   : > { %v3678_v24 = vmax.f32 %v3676_v4, %v3677_v18 }
 0x6ab   : > { %v3865_v55 = vsel %vm3864_vm12, %v3777_v16, %v3863_v25 }
 0x6ac   : > { %v3582_v5 = vpop.f32.mrb[74].mxu0  ;;  %4187 = vmatprep.mubr.msk.f32.mxu1 %vm169_vm0, %v3865_v55 }
 0x6ad   : > { %v3672_v61 = vsel %vm169_vm0, %v3582_v5, -inf  ;;  %v3584_v11 = vpop.f32.mrb[75].mxu0 }
 0x6ae   : > { %v3673_v41 = vmax.f32 %v3671_v29, %v3672_v61 }
 0x6b0   : > { %v3587_v38 = vpop.f32.mrb[76].mxu0 }
 0x6b1   : > { %v3679_v1 = vsel %vm169_vm0, %v3587_v38, -inf  ;;  %v3589_v37 = vpop.f32.mrb[77].mxu0 }
 0x6b2   : > { %v3680_v30 = vmax.f32 %v3678_v24, %v3679_v1 }
 0x6b4   : > { %v3592_v51 = vpop.f32.mrb[78].mxu0 }
 0x6b5   : > { %v3674_v15 = vsel %vm169_vm0, %v3592_v51, -inf  ;;  %v3594_v59 = vpop.f32.mrb[79].mxu0 }
 0x6b6   : > { %v3675_v49 = vmax.f32 %v3673_v41, %v3674_v15 }
 0x6b8   : > { %v3709_v27 = vcombine.high %v3675_v49, %v3675_v49  ;;  %v3778_v26 = vsel %vm3721_vm5, %v3675_v49, -inf  ;;  %v3597_v62 = vpop.f32.mrb[80].mxu0 }
 0x6b9   : > { %v3779_v20 = vrot.slane %v3778_v26, 4  ;;  %v3681_v57 = vsel %vm169_vm0, %v3597_v62, -inf  ;;  %v3599_v21 = vpop.f32.mrb[81].mxu0 }
 0x6ba   : > { %v3785_v23 = vsel %vm3721_vm5, %v3709_v27, -inf  ;;  %v3682_v6 = vmax.f32 %v3680_v30, %v3681_v57 }
 0x6bb   : > { %v3780_v54 = vmax.f32 %v3778_v26, %v3779_v20  ;;  %v3786_v10 = vrot.slane %v3785_v23, 4 }
 0x6bc   : > { %v3710_v46 = vcombine.high %v3682_v6, %v3682_v6  ;;  %v3792_v12 = vsel %vm3721_vm5, %v3682_v6, -inf  ;;  %v3602_v0 = vpop.f32.mrb[82].mxu0 }
 0x6bd   : > { %v3781_v42 = vrot.slane %v3780_v54, 2  ;;  %v3787_v43 = vmax.f32 %v3785_v23, %v3786_v10  ;;  %v3793_v2 = vrot.slane %v3792_v12, 4  ;;  %v3604_v28 = vpop.f32.mrb[83].mxu0  ;;  %v3683_v29 = vsel %vm169_vm0, %v3602_v0, -inf }
 0x6be   : > { %v3799_v39 = vsel %vm3721_vm5, %v3710_v46, -inf }
 0x6bf   : > { %v3782_v35 = vmax.f32 %v3780_v54, %v3781_v42  ;;  %v3788_v33 = vrot.slane %v3787_v43, 2  ;;  %v3794_v36 = vmax.f32 %v3792_v12, %v3793_v2  ;;  %v3800_v60 = vrot.slane %v3799_v39, 4 }
 0x6c0   : > { %v3607_v14 = vpop.f32.mrb[84].mxu0 }
 0x6c1   : > { %v3783_v56 = vrot.slane %v3782_v35, 1  ;;  %v3789_v63 = vmax.f32 %v3787_v43, %v3788_v33  ;;  %v3795_v45 = vrot.slane %v3794_v36, 2  ;;  %v3801_v52 = vmax.f32 %v3799_v39, %v3800_v60  ;;  %v3609_v7 = vpop.f32.mrb[85].mxu0 }
 0x6c2   : > { %v3690_v3 = vsel %vm169_vm0, %v3607_v14, -inf }
 0x6c3   : > { %v3790_v40 = vrot.slane %v3789_v63, 1  ;;  %v3796_v53 = vmax.f32 %v3794_v36, %v3795_v45  ;;  %v3802_v19 = vrot.slane %v3801_v52, 2  ;;  %v3784_v44 = vmax.f32 %v3782_v35, %v3783_v56 }
 0x6c5   : > { %v3791_v31 = vmax.f32 %v3789_v63, %v3790_v40  ;;  %v3797_v47 = vrot.slane %v3796_v53, 1  ;;  %v3803_v8 = vmax.f32 %v3801_v52, %v3802_v19 }
 0x6c7   : > { %v3866_v22 = vsel %vm3852_vm6, %v3791_v31, %v3784_v44  ;;  %v3798_v48 = vmax.f32 %v3796_v53, %v3797_v47  ;;  %v3804_v34 = vrot.slane %v3803_v8, 1  ;;  %v3612_v50 = vpop.f32.mrb[86].mxu0 }
 0x6c8   : > { %v3684_v58 = vsel %vm169_vm0, %v3612_v50, -inf  ;;  %v3614_v13 = vpop.f32.mrb[87].mxu0 }
 0x6c9   : > { %v3805_v32 = vmax.f32 %v3803_v8, %v3804_v34  ;;  %v3867_v9 = vsel %vm3854_vm7, %v3798_v48, %v3866_v22  ;;  %v3685_v17 = vmax.f32 %v3683_v29, %v3684_v58 }
 0x6cb   : > { %v3868_v4 = vsel %vm3856_vm8, %v3805_v32, %v3867_v9 }
 0x6db   : > { %v3617_v18 = vpop.f32.mrb[88].mxu0 }
 0x6dc   : > { %v3691_v16 = vsel %vm169_vm0, %v3617_v18, -inf  ;;  %v3619_v25 = vpop.f32.mrb[89].mxu0 }
 0x6dd   : > { %v3692_v24 = vmax.f32 %v3690_v3, %v3691_v16 }
 0x6df   : > { %v3622_v55 = vpop.f32.mrb[90].mxu0 }
 0x6e0   : > { %v3686_v5 = vsel %vm169_vm0, %v3622_v55, -inf  ;;  %v3624_v61 = vpop.f32.mrb[91].mxu0 }
 0x6e1   : > { %v3687_v11 = vmax.f32 %v3685_v17, %v3686_v5 }
 0x6fb   : > { %v3627_v41 = vpop.f32.mrb[92].mxu0 }
 0x6fc   : > { %v3693_v38 = vsel %vm169_vm0, %v3627_v41, -inf  ;;  %v3629_v1 = vpop.f32.mrb[93].mxu0 }
 0x6fd   : > { %v3694_v37 = vmax.f32 %v3692_v24, %v3693_v38 }
 0x6ff   : > { %v3632_v30 = vpop.f32.mrb[94].mxu0 }
 0x700   : > { %v3688_v51 = vsel %vm169_vm0, %v3632_v30, -inf  ;;  %v3634_v15 = vpop.f32.mrb[95].mxu0 }
 0x701   : > { %v3689_v59 = vmax.f32 %v3687_v11, %v3688_v51 }
 0x703   : > { %v3711_v49 = vcombine.high %v3689_v59, %v3689_v59  ;;  %v3806_v27 = vsel %vm3721_vm5, %v3689_v59, -inf }
 0x704   : > { %v3807_v26 = vrot.slane %v3806_v27, 4 }
 0x705   : > { %v3813_v62 = vsel %vm3721_vm5, %v3711_v49, -inf }
 0x706   : > { %v3808_v20 = vmax.f32 %v3806_v27, %v3807_v26  ;;  %v3814_v57 = vrot.slane %v3813_v62, 4 }
 0x708   : > { %v3809_v21 = vrot.slane %v3808_v20, 2  ;;  %v3815_v23 = vmax.f32 %v3813_v62, %v3814_v57 }
 0x70a   : > { %v3810_v6 = vmax.f32 %v3808_v20, %v3809_v21  ;;  %v3816_v54 = vrot.slane %v3815_v23, 2 }
 0x70c   : > { %v3811_v10 = vrot.slane %v3810_v6, 1  ;;  %v3817_v46 = vmax.f32 %v3815_v23, %v3816_v54 }
 0x70e   : > { %v3812_v12 = vmax.f32 %v3810_v6, %v3811_v10  ;;  %v3818_v0 = vrot.slane %v3817_v46, 1 }
 0x70f   : > { %v3637_v42 = vpop.f32.mrb[96].mxu0 }
 0x710   : > { %v3819_v43 = vmax.f32 %v3817_v46, %v3818_v0  ;;  %v3869_v2 = vsel %vm3858_vm9, %v3812_v12, %v3868_v4  ;;  %v3695_v28 = vsel %vm169_vm0, %v3637_v42, -inf  ;;  %v3639_v39 = vpop.f32.mrb[97].mxu0 }
 0x711   : > { %v3696_v35 = vmax.f32 %v3694_v37, %v3695_v28 }
 0x712   : > { %v3870_v33 = vsel %vm3860_vm10, %v3819_v43, %v3869_v2 }
 0x713   : > { %v3712_v36 = vcombine.high %v3696_v35, %v3696_v35  ;;  %v3820_v60 = vsel %vm3721_vm5, %v3696_v35, -inf }
 0x714   : > { %v3821_v14 = vrot.slane %v3820_v60, 4 }
 0x715   : > { %v3827_v56 = vsel %vm3721_vm5, %v3712_v36, -inf }
 0x716   : > { %v3822_v63 = vmax.f32 %v3820_v60, %v3821_v14  ;;  %v3828_v45 = vrot.slane %v3827_v56, 4 }
 0x718   : > { %v3823_v52 = vrot.slane %v3822_v63, 2  ;;  %v3829_v7 = vmax.f32 %v3827_v56, %v3828_v45 }
 0x71a   : > { %v3824_v40 = vmax.f32 %v3822_v63, %v3823_v52  ;;  %v3830_v53 = vrot.slane %v3829_v7, 2 }
 0x71c   : > { %v3825_v19 = vrot.slane %v3824_v40, 1  ;;  %v3831_v44 = vmax.f32 %v3829_v7, %v3830_v53 }
 0x71e   : > { %v3826_v31 = vmax.f32 %v3824_v40, %v3825_v19  ;;  %v3832_v47 = vrot.slane %v3831_v44, 1 }
 0x720   : > { %v3833_v8 = vmax.f32 %v3831_v44, %v3832_v47  ;;  %v3871_v22 = vsel %vm3862_vm11, %v3826_v31, %v3870_v33 }
 0x722   : > { %v3872_v48 = vsel %vm3864_vm12, %v3833_v8, %v3871_v22 }
 0x723   : > { %4188 = vmatmul.mubr.msk.f32.vlgmr.msra.gmra.mrb[94].mxu1 %vm169_vm0, %v3872_v48 }
 0x7f6   : > { %v4189_v34 = vpop.f32.mrb[94].mxu1 }
 0x7f7   : > { %3954 = vst.msk [vmem:[%s163_s20 + $0x8] sm:$0xff] %vm3952_vm13, %v4189_v34  ;;  %v3943_v50 = vpop.f32.mrb[95].mxu1 }
 0x7f8   : > { %3953 = vst.msk [vmem:[%s163_s20] sm:$0xff] %vm3952_vm13, %v3943_v50 }
 0x7f9   : > { %4538 = shalt.err (!%p4535_p3)
}
 0x7fa   : > { %s4539_s10 = scalar_lea.hbm %s6651_s28, 256  ;;  %s4543_s30 = scalar_lea.hbm %s6697_s3, 512 }
 0x7fb   : > { %p4540_p4 = scmp.ne.s32.totalorder %s6651_s28, %s4539_s10  ;;  %p4544_p9 = scmp.lt.u32.totalorder %s6651_s28, %s6697_s3 }
 0x7fc   : > { %p4545_p10 = scmp.lt.u32.totalorder %s4543_s30, %s4539_s10  ;;  %p4547_p12 = scmp.lt.u32.totalorder %s4539_s10, %s6651_s28 }
 0x7fd   : > { %p4541_p7 = pnand %p4540_p4, %p4656_p5 }
 0x7fe   : > { %p4546_p11 = por %p4545_p10, %p4544_p9 }
 0x7ff   : > { %p4542_p8 = pneg %p4541_p7 }
 0x800   : > { %p4548_p13 = por %p4547_p12, %p4546_p11 }
 0x802   : > { %p4549_p0 = pnand %p4548_p13, %p4542_p8 }
 0x804   : > { %4552 = shalt.err (!%p4549_p0)
}
 0x805   : > { %s4596_s17 = smov 128   ;;  %s4597_s19 = smov 8  }
 0x806   : > { %4293 = dma.vmem_to_hbm [thread:$0]  (%p4656_p5), %s6646_s24, 256, %s6651_s28, %s6653_s4, %s4596_s17, %s4596_s17, %s4597_s19  }
 0x807 PF: > { %p4299_p1 = scmp.ge.s32.totalorder %s4587_s15, 2  ;;  %s3984_s20 = sand.u32 1, %s4575_s12  }
 0x808   : > { %s3985_s25 = scalar_lea.sflag [#allocation4], %s3984_s20 }
 0x809   : > { %p4296_p2 = pnand %p4299_p1, %p4660_p6 }
 0x80b   : > { %4570 = dma.done.wait (!%p4296_p2), %s3985_s25, 256  }
 0x80c   : > { %4572 = vsyncadd (!%p4296_p2), %s3985_s25, 4294967040  ;;  %p13_p3 = scmp.ge.s32.totalorder %s4643_s18, 4   ;;  %s6700_s12 = smov %s4579_s13 }
 0x80d   : > { %s6701_s13 = smov %s4583_s14  ;;  %s6702_s14 = smov %s4654_s21 }
 0x80e   : > { %s6703_s15 = smov %s4643_s18  ;;  %15 = sbr.rel (!%p13_p3) target bundleno = 3 (0x3), region = 71 }
 0x815   :  { %3990 = vsyncpa [#allocation4], 1 }
 0x816   :  { %3992 = vsyncpa [#allocation4 + $0x1], 1 }

</bundles_post_ra>
